<compile_context>
chip_gen: v6e
topology: v6e:2x2x1
jax: 0.10.0
libtpu: 0.0.40
codegen_flags: <defaults>
</compile_context>

<pallas_src>
import jax
import jax.numpy as jnp
from jax.experimental import pallas as pl
from jax.experimental.pallas import tpu as pltpu

# ----------------------------- model config ---------------------------------
VOCAB = 16
B, S = 2, 8          # batch, sequence length
D = 32               # d_model
H = 4                # attention heads
HD = D // H          # head dim
FFN = 64             # feed-forward hidden dim
N_LAYERS = 2
LN_EPS = 1e-12
SCALE = 1.0 / (HD ** 0.5)

# --------------------------- packed parameter slab --------------------------
# One lane-dense (TOTAL_ROWS, 128) f32 slab holds every parameter.
LANES = 128

# vector rows (one parameter vector per row, lanes 0:len used)
ROW_EMB_G = 0
ROW_EMB_B = 1
VBASE = 2
VROWS_PER_LAYER = 8
V_BQKV, V_BO, V_LN1G, V_LN1B, V_B1, V_B2, V_LN2G, V_LN2B = range(8)
VEC_ROWS = VBASE + N_LAYERS * VROWS_PER_LAYER

# matrix rows (row-block per matrix, 8-aligned starts)
MBASE = ((VEC_ROWS + 7) // 8) * 8
ROFF_WQKV = 0            # (D, 3D): [wq | wk | wv], head-major inside each D block
ROFF_WO = D              # (D, D)
ROFF_W1 = 2 * D          # (D, FFN)
ROFF_W2 = 3 * D          # (FFN, D)
MROWS_PER_LAYER = 3 * D + FFN
TOTAL_ROWS = MBASE + N_LAYERS * MROWS_PER_LAYER


# ------------------------------ fused kernel --------------------------------
def _layernorm(h, g, b):
    mu = jnp.mean(h, axis=-1, keepdims=True)
    c = h - mu
    var = jnp.mean(c * c, axis=-1, keepdims=True)
    return c * jax.lax.rsqrt(var + LN_EPS) * g + b


def _fused_encoder_kernel(x_ref, mask_ref, slab_ref, o_ref):
    """Single grid step: whole (B*S, D) batch slab, weights from one VMEM slab."""

    def vec(row, n):
        return slab_ref[row:row + 1, 0:n]                       # (1, n) static ref load

    # Embedding LayerNorm over the whole token slab (LN is per-row).
    h = _layernorm(x_ref[...], vec(ROW_EMB_G, D), vec(ROW_EMB_B, D))   # (B*S, D)

    for l in range(N_LAYERS):
        vb = VBASE + l * VROWS_PER_LAYER
        mb = MBASE + l * MROWS_PER_LAYER

        # ---- per-head Q/K/V via static lane slices of the WEIGHT ref -------
        # (no lane slicing of computed activations; matmuls run on all B*S rows)
        q_heads, k_heads, v_heads = [], [], []
        for hi in range(H):
            c0 = hi * HD
            wq = slab_ref[mb + ROFF_WQKV:mb + ROFF_WQKV + D, c0:c0 + HD]
            wk = slab_ref[mb + ROFF_WQKV:mb + ROFF_WQKV + D, D + c0:D + c0 + HD]
            wv = slab_ref[mb + ROFF_WQKV:mb + ROFF_WQKV + D, 2 * D + c0:2 * D + c0 + HD]
            bq = slab_ref[vb + V_BQKV:vb + V_BQKV + 1, c0:c0 + HD]
            bk = slab_ref[vb + V_BQKV:vb + V_BQKV + 1, D + c0:D + c0 + HD]
            bv = slab_ref[vb + V_BQKV:vb + V_BQKV + 1, 2 * D + c0:2 * D + c0 + HD]
            q_heads.append(jnp.dot(h, wq, preferred_element_type=jnp.float32) + bq)
            k_heads.append(jnp.dot(h, wk, preferred_element_type=jnp.float32) + bk)
            v_heads.append(jnp.dot(h, wv, preferred_element_type=jnp.float32) + bv)

        # ---- attention per batch element; softmax batched over all heads ----
        ctx_rows = []
        for b in range(B):
            r0 = b * S
            sc = []
            for hi in range(H):
                qh = q_heads[hi][r0:r0 + S, :]                   # (S, HD), 8-row aligned
                kh = k_heads[hi][r0:r0 + S, :]
                sc.append(jax.lax.dot_general(
                    qh, kh, (((1,), (1,)), ((), ())),
                    preferred_element_type=jnp.float32))         # (S, S)
            scores = jnp.concatenate(sc, axis=0) * SCALE         # (H*S, S)
            scores = scores + mask_ref[b:b + 1, :]               # additive key mask
            scores = scores - jnp.max(scores, axis=-1, keepdims=True)
            p = jnp.exp(scores)
            p = p / jnp.sum(p, axis=-1, keepdims=True)           # exact softmax

            # context + output projection as a sum of per-head products:
            #   sum_h (p_h @ v_h) @ Wo[h*HD:(h+1)*HD, :]
            # -> no attn scratch buffer, no masked partial stores.
            ctx = jnp.zeros((S, D), jnp.float32)
            for hi in range(H):
                ph = p[hi * S:(hi + 1) * S, :]                   # (S, S)
                vh = v_heads[hi][r0:r0 + S, :]                   # (S, HD)
                u = jnp.dot(ph, vh, preferred_element_type=jnp.float32)
                wo_h = slab_ref[mb + ROFF_WO + hi * HD:
                                mb + ROFF_WO + (hi + 1) * HD, 0:D]
                ctx = ctx + jnp.dot(u, wo_h, preferred_element_type=jnp.float32)
            ctx_rows.append(ctx)

        attn = jnp.concatenate(ctx_rows, axis=0) + vec(vb + V_BO, D)     # (B*S, D)
        h = _layernorm(attn + h, vec(vb + V_LN1G, D), vec(vb + V_LN1B, D))

        # ---- feed-forward on the full (B*S, D) slab -------------------------
        w1 = slab_ref[mb + ROFF_W1:mb + ROFF_W1 + D, 0:FFN]
        w2 = slab_ref[mb + ROFF_W2:mb + ROFF_W2 + FFN, 0:D]
        ff = jnp.dot(h, w1, preferred_element_type=jnp.float32) + vec(vb + V_B1, FFN)
        # TODO(synk): HF BERT's default GELU is the exact erf form; tanh approximation used here.
        ff = jax.nn.gelu(ff, approximate=True)
        ff = jnp.dot(ff, w2, preferred_element_type=jnp.float32) + vec(vb + V_B2, D)
        h = _layernorm(ff + h, vec(vb + V_LN2G, D), vec(vb + V_LN2B, D))

    o_ref[...] = h


# ----------------------------- parameter setup -------------------------------
def init_params(key):
    """Deterministic synthetic backbone weights, packed into one lane-dense slab."""
    def nrm(k, shape, std=0.02):
        return (std * jax.random.normal(k, shape)).astype(jnp.float32)

    keys = jax.random.split(key, 2 + N_LAYERS)
    slab = jnp.zeros((TOTAL_ROWS, LANES), jnp.float32)

    def put_vec(s, row, v):
        return s.at[row, :v.shape[0]].set(v.astype(jnp.float32))

    def put_mat(s, r0, m):
        return s.at[r0:r0 + m.shape[0], :m.shape[1]].set(m.astype(jnp.float32))

    slab = put_vec(slab, ROW_EMB_G, jnp.ones((D,)))
    slab = put_vec(slab, ROW_EMB_B, jnp.zeros((D,)))

    for l in range(N_LAYERS):
        lk = jax.random.split(keys[2 + l], 6)
        wq = nrm(lk[0], (D, D))
        wk = nrm(lk[1], (D, D))
        wv = nrm(lk[2], (D, D))
        wqkv = jnp.concatenate([wq, wk, wv], axis=1)             # (D, 3D)
        wo = nrm(lk[3], (D, D))
        w1 = nrm(lk[4], (D, FFN))
        w2 = nrm(lk[5], (FFN, D))

        vb = VBASE + l * VROWS_PER_LAYER
        mb = MBASE + l * MROWS_PER_LAYER
        slab = put_vec(slab, vb + V_BQKV, jnp.zeros((3 * D,)))
        slab = put_vec(slab, vb + V_BO, jnp.zeros((D,)))
        slab = put_vec(slab, vb + V_LN1G, jnp.ones((D,)))
        slab = put_vec(slab, vb + V_LN1B, jnp.zeros((D,)))
        slab = put_vec(slab, vb + V_B1, jnp.zeros((FFN,)))
        slab = put_vec(slab, vb + V_B2, jnp.zeros((D,)))
        slab = put_vec(slab, vb + V_LN2G, jnp.ones((D,)))
        slab = put_vec(slab, vb + V_LN2B, jnp.zeros((D,)))
        slab = put_mat(slab, mb + ROFF_WQKV, wqkv)
        slab = put_mat(slab, mb + ROFF_WO, wo)
        slab = put_mat(slab, mb + ROFF_W1, w1)
        slab = put_mat(slab, mb + ROFF_W2, w2)

    return {
        "tok_emb": nrm(keys[0], (VOCAB, D)),
        "pos_emb": nrm(keys[1], (S, D)),
        "slab": slab,
    }


# ------------------------------ cost estimate --------------------------------
def _cost_estimate():
    per_layer_flops = 2 * B * S * (3 * D * D + 2 * S * D + D * D + 2 * D * FFN)
    flops = N_LAYERS * per_layer_flops
    transcendentals = (N_LAYERS * (B * H * S * S            # softmax exp
                                   + B * S * FFN            # gelu (tanh)
                                   + 2 * B * S)             # LayerNorm rsqrt
                       + B * S)                              # embedding LN rsqrt
    bytes_accessed = 4 * (B * S * D                          # activations in
                          + B * S                            # additive mask
                          + TOTAL_ROWS * LANES               # packed params
                          + B * S * D)                       # activations out
    return pl.CostEstimate(flops=flops, transcendentals=transcendentals,
                           bytes_accessed=bytes_accessed)


# ------------------------------- forward pass --------------------------------
def dna_embedding_forward(params, input_ids, mask):
    """Equivalent of DNAEmbeddingModelCustom.forward for the BERT-style path.

    input_ids: (B, S) int32, mask: (B, S) {0,1}.
    Returns (hidden_states (B, S, D) f32, None).
    """
    # Embedding lookup + position embedding (glue, plain JAX gather).
    x = params["tok_emb"][input_ids] + params["pos_emb"][None, :, :]     # (B, S, D)
    x_flat = x.reshape(B * S, D)
    # additive attention mask, (B, S): -1e9 where masked.
    add_mask = (1.0 - mask.astype(jnp.float32)) * -1e9

    slab = params["slab"]
    hidden_flat = pl.pallas_call(
        _fused_encoder_kernel,
        out_shape=jax.ShapeDtypeStruct((B * S, D), jnp.float32),
        grid=(1,),                                                       # batch grid collapsed
        in_specs=[
            pl.BlockSpec((B * S, D), lambda i: (0, 0)),                  # activations
            pl.BlockSpec((B, S), lambda i: (0, 0)),                      # additive mask
            pl.BlockSpec((TOTAL_ROWS, LANES), lambda i: (0, 0)),         # packed params (1 DMA)
        ],
        out_specs=pl.BlockSpec((B * S, D), lambda i: (0, 0)),
        compiler_params=pltpu.CompilerParams(
            dimension_semantics=("arbitrary",)),
        cost_estimate=_cost_estimate(),
    )(x_flat, add_mask, slab)

    # Output stays (B*S, D) from the kernel: it is a single tiny tile, and
    # lane-widening to (B, S*D) would need an in-kernel relayout costing more
    # than the one masked store it removes.  Reshape back in the wrapper.
    return hidden_flat.reshape(B, S, D), None


# ------------------------- pure-JAX reference (check) ------------------------
def _reference_forward(params, input_ids, mask):
    slab = params["slab"]
    x = params["tok_emb"][input_ids] + params["pos_emb"][None, :, :]
    h = x.reshape(B * S, D)

    def ln(t, g, b):
        mu = t.mean(-1, keepdims=True)
        c = t - mu
        var = (c * c).mean(-1, keepdims=True)
        return c * jax.lax.rsqrt(var + LN_EPS) * g + b

    def vec(row, n):
        return slab[row, :n]

    h = ln(h, vec(ROW_EMB_G, D), vec(ROW_EMB_B, D))
    add_mask = (1.0 - mask.astype(jnp.float32)) * -1e9                   # (B, S)

    for l in range(N_LAYERS):
        vb = VBASE + l * VROWS_PER_LAYER
        mb = MBASE + l * MROWS_PER_LAYER
        wqkv = slab[mb + ROFF_WQKV:mb + ROFF_WQKV + D, :3 * D]
        wo = slab[mb + ROFF_WO:mb + ROFF_WO + D, :D]
        w1 = slab[mb + ROFF_W1:mb + ROFF_W1 + D, :FFN]
        w2 = slab[mb + ROFF_W2:mb + ROFF_W2 + FFN, :D]

        qkv = h @ wqkv + vec(vb + V_BQKV, 3 * D)
        q, k, v = qkv[:, :D], qkv[:, D:2 * D], qkv[:, 2 * D:]
        qb = q.reshape(B, S, H, HD).transpose(0, 2, 1, 3)
        kb = k.reshape(B, S, H, HD).transpose(0, 2, 1, 3)
        vv = v.reshape(B, S, H, HD).transpose(0, 2, 1, 3)
        sc = jnp.einsum("bhqd,bhkd->bhqk", qb, kb) * SCALE
        sc = sc + add_mask[:, None, None, :]
        p = jax.nn.softmax(sc, axis=-1)
        ctx = jnp.einsum("bhqk,bhkd->bhqd", p, vv)
        ctx = ctx.transpose(0, 2, 1, 3).reshape(B * S, D)
        attn = ctx @ wo + vec(vb + V_BO, D)
        h = ln(attn + h, vec(vb + V_LN1G, D), vec(vb + V_LN1B, D))
        ff = jax.nn.gelu(h @ w1 + vec(vb + V_B1, FFN), approximate=True)
        ff = ff @ w2 + vec(vb + V_B2, D)
        h = ln(ff + h, vec(vb + V_LN2G, D), vec(vb + V_LN2B, D))
    return h.reshape(B, S, D)


# ---------------------------------- main -------------------------------------
if __name__ == "__main__":
    key = jax.random.PRNGKey(0)
    pkey, ikey = jax.random.split(key)
    params = init_params(pkey)

    input_ids = jax.random.randint(ikey, (B, S), 0, VOCAB, dtype=jnp.int32)
    mask = jnp.ones((B, S), dtype=jnp.int32)

    fwd = jax.jit(dna_embedding_forward)
    hidden_states, extra = fwd(params, input_ids, mask)
    hidden_states = jax.block_until_ready(hidden_states)

    assert hidden_states.shape == (B, S, D)
    assert extra is None
    assert bool(jnp.all(jnp.isfinite(hidden_states)))

    ref = _reference_forward(params, input_ids, mask)
    max_err = float(jnp.max(jnp.abs(hidden_states - ref)))
    assert max_err < 2e-3, f"max abs error vs reference: {max_err}"

    print("KERNEL_OK")
</pallas_src>

<mosaic_0001>
module attributes {stable_mosaic.version = 11 : i64} {
  func.func @_fused_encoder_kernel(%arg0: i32, %arg1: memref<16x32xf32, #tpu.memory_space<vmem>>, %arg2: memref<2x8xf32, #tpu.memory_space<vmem>>, %arg3: memref<344x128xf32, #tpu.memory_space<vmem>>, %arg4: memref<16x32xf32, #tpu.memory_space<vmem>>) attributes {dimension_semantics = [#tpu.dimension_semantics<arbitrary>], iteration_bounds = array<i64: 1>, scalar_prefetch = 0 : i64, scratch_operands = 0 : i64, tpu.core_type = #tpu.core_type<tc>, window_params = [{pipeline_mode = #tpu.pipeline_mode<synchronous>, transform_indices = @transform_0, window_bounds = array<i64: 16, 32>}, {pipeline_mode = #tpu.pipeline_mode<synchronous>, transform_indices = @transform_1, window_bounds = array<i64: 2, 8>}, {pipeline_mode = #tpu.pipeline_mode<synchronous>, transform_indices = @transform_2, window_bounds = array<i64: 344, 128>}, {pipeline_mode = #tpu.pipeline_mode<synchronous>, transform_indices = @transform_3, window_bounds = array<i64: 16, 32>}]} {
    %c0 = arith.constant 0 : index
    %c0_0 = arith.constant 0 : index
    %0 = vector.load %arg1[%c0, %c0_0] : memref<16x32xf32, #tpu.memory_space<vmem>>, vector<16x32xf32>
    %c0_1 = arith.constant 0 : index
    %c0_2 = arith.constant 0 : index
    %1 = vector.load %arg3[%c0_1, %c0_2] : memref<344x128xf32, #tpu.memory_space<vmem>>, vector<1x32xf32>
    %c1 = arith.constant 1 : index
    %c0_3 = arith.constant 0 : index
    %2 = vector.load %arg3[%c1, %c0_3] : memref<344x128xf32, #tpu.memory_space<vmem>>, vector<1x32xf32>
    %cst = arith.constant dense<0.000000e+00> : vector<16xf32>
    %3 = vector.multi_reduction <add>, %0, %cst [1] : vector<16x32xf32> to vector<16xf32>
    %4 = vector.shape_cast %3 : vector<16xf32> to vector<16x1xf32>
    %cst_4 = arith.constant 3.200000e+01 : f32
    %5 = vector.broadcast %cst_4 : f32 to vector<16x1xf32>
    %6 = arith.divf %4, %5 : vector<16x1xf32>
    %7 = vector.broadcast %6 : vector<16x1xf32> to vector<16x32xf32>
    %8 = arith.subf %0, %7 : vector<16x32xf32>
    %9 = arith.mulf %8, %8 : vector<16x32xf32>
    %cst_5 = arith.constant dense<0.000000e+00> : vector<16xf32>
    %10 = vector.multi_reduction <add>, %9, %cst_5 [1] : vector<16x32xf32> to vector<16xf32>
    %11 = vector.shape_cast %10 : vector<16xf32> to vector<16x1xf32>
    %cst_6 = arith.constant 3.200000e+01 : f32
    %12 = vector.broadcast %cst_6 : f32 to vector<16x1xf32>
    %13 = arith.divf %11, %12 : vector<16x1xf32>
    %cst_7 = arith.constant 9.99999996E-13 : f32
    %14 = vector.broadcast %cst_7 : f32 to vector<16x1xf32>
    %15 = arith.addf %13, %14 : vector<16x1xf32>
    %16 = math.rsqrt %15 : vector<16x1xf32>
    %17 = vector.broadcast %16 : vector<16x1xf32> to vector<16x32xf32>
    %18 = arith.mulf %8, %17 : vector<16x32xf32>
    %19 = vector.broadcast %1 : vector<1x32xf32> to vector<16x32xf32>
    %20 = arith.mulf %18, %19 : vector<16x32xf32>
    %21 = vector.broadcast %2 : vector<1x32xf32> to vector<16x32xf32>
    %22 = arith.addf %20, %21 : vector<16x32xf32>
    %c24 = arith.constant 24 : index
    %c0_8 = arith.constant 0 : index
    %23 = vector.load %arg3[%c24, %c0_8] : memref<344x128xf32, #tpu.memory_space<vmem>>, vector<32x8xf32>
    %c24_9 = arith.constant 24 : index
    %c32 = arith.constant 32 : index
    %24 = vector.load %arg3[%c24_9, %c32] : memref<344x128xf32, #tpu.memory_space<vmem>>, vector<32x8xf32>
    %c24_10 = arith.constant 24 : index
    %c64 = arith.constant 64 : index
    %25 = vector.load %arg3[%c24_10, %c64] : memref<344x128xf32, #tpu.memory_space<vmem>>, vector<32x8xf32>
    %c2 = arith.constant 2 : index
    %c0_11 = arith.constant 0 : index
    %26 = vector.load %arg3[%c2, %c0_11] : memref<344x128xf32, #tpu.memory_space<vmem>>, vector<1x8xf32>
    %c2_12 = arith.constant 2 : index
    %c32_13 = arith.constant 32 : index
    %27 = vector.load %arg3[%c2_12, %c32_13] : memref<344x128xf32, #tpu.memory_space<vmem>>, vector<1x8xf32>
    %c2_14 = arith.constant 2 : index
    %c64_15 = arith.constant 64 : index
    %28 = vector.load %arg3[%c2_14, %c64_15] : memref<344x128xf32, #tpu.memory_space<vmem>>, vector<1x8xf32>
    %cst_16 = arith.constant dense<0.000000e+00> : vector<16x8xf32>
    %29 = tpu.matmul %22, %23, %cst_16 {dimension_numbers = #tpu.dot_dimension_numbers<[1], [0], [0], [1], [0, 0, 1, 1], [], []>} : vector<16x32xf32>, vector<32x8xf32>, vector<16x8xf32> -> vector<16x8xf32>
    %30 = vector.broadcast %26 : vector<1x8xf32> to vector<16x8xf32>
    %31 = arith.addf %29, %30 : vector<16x8xf32>
    %cst_17 = arith.constant dense<0.000000e+00> : vector<16x8xf32>
    %32 = tpu.matmul %22, %24, %cst_17 {dimension_numbers = #tpu.dot_dimension_numbers<[1], [0], [0], [1], [0, 0, 1, 1], [], []>} : vector<16x32xf32>, vector<32x8xf32>, vector<16x8xf32> -> vector<16x8xf32>
    %33 = vector.broadcast %27 : vector<1x8xf32> to vector<16x8xf32>
    %34 = arith.addf %32, %33 : vector<16x8xf32>
    %cst_18 = arith.constant dense<0.000000e+00> : vector<16x8xf32>
    %35 = tpu.matmul %22, %25, %cst_18 {dimension_numbers = #tpu.dot_dimension_numbers<[1], [0], [0], [1], [0, 0, 1, 1], [], []>} : vector<16x32xf32>, vector<32x8xf32>, vector<16x8xf32> -> vector<16x8xf32>
    %36 = vector.broadcast %28 : vector<1x8xf32> to vector<16x8xf32>
    %37 = arith.addf %35, %36 : vector<16x8xf32>
    %c24_19 = arith.constant 24 : index
    %c8 = arith.constant 8 : index
    %38 = vector.load %arg3[%c24_19, %c8] : memref<344x128xf32, #tpu.memory_space<vmem>>, vector<32x8xf32>
    %c24_20 = arith.constant 24 : index
    %c40 = arith.constant 40 : index
    %39 = vector.load %arg3[%c24_20, %c40] : memref<344x128xf32, #tpu.memory_space<vmem>>, vector<32x8xf32>
    %c24_21 = arith.constant 24 : index
    %c72 = arith.constant 72 : index
    %40 = vector.load %arg3[%c24_21, %c72] : memref<344x128xf32, #tpu.memory_space<vmem>>, vector<32x8xf32>
    %c2_22 = arith.constant 2 : index
    %c8_23 = arith.constant 8 : index
    %41 = vector.load %arg3[%c2_22, %c8_23] : memref<344x128xf32, #tpu.memory_space<vmem>>, vector<1x8xf32>
    %c2_24 = arith.constant 2 : index
    %c40_25 = arith.constant 40 : index
    %42 = vector.load %arg3[%c2_24, %c40_25] : memref<344x128xf32, #tpu.memory_space<vmem>>, vector<1x8xf32>
    %c2_26 = arith.constant 2 : index
    %c72_27 = arith.constant 72 : index
    %43 = vector.load %arg3[%c2_26, %c72_27] : memref<344x128xf32, #tpu.memory_space<vmem>>, vector<1x8xf32>
    %cst_28 = arith.constant dense<0.000000e+00> : vector<16x8xf32>
    %44 = tpu.matmul %22, %38, %cst_28 {dimension_numbers = #tpu.dot_dimension_numbers<[1], [0], [0], [1], [0, 0, 1, 1], [], []>} : vector<16x32xf32>, vector<32x8xf32>, vector<16x8xf32> -> vector<16x8xf32>
    %45 = vector.broadcast %41 : vector<1x8xf32> to vector<16x8xf32>
    %46 = arith.addf %44, %45 : vector<16x8xf32>
    %cst_29 = arith.constant dense<0.000000e+00> : vector<16x8xf32>
    %47 = tpu.matmul %22, %39, %cst_29 {dimension_numbers = #tpu.dot_dimension_numbers<[1], [0], [0], [1], [0, 0, 1, 1], [], []>} : vector<16x32xf32>, vector<32x8xf32>, vector<16x8xf32> -> vector<16x8xf32>
    %48 = vector.broadcast %42 : vector<1x8xf32> to vector<16x8xf32>
    %49 = arith.addf %47, %48 : vector<16x8xf32>
    %cst_30 = arith.constant dense<0.000000e+00> : vector<16x8xf32>
    %50 = tpu.matmul %22, %40, %cst_30 {dimension_numbers = #tpu.dot_dimension_numbers<[1], [0], [0], [1], [0, 0, 1, 1], [], []>} : vector<16x32xf32>, vector<32x8xf32>, vector<16x8xf32> -> vector<16x8xf32>
    %51 = vector.broadcast %43 : vector<1x8xf32> to vector<16x8xf32>
    %52 = arith.addf %50, %51 : vector<16x8xf32>
    %c24_31 = arith.constant 24 : index
    %c16 = arith.constant 16 : index
    %53 = vector.load %arg3[%c24_31, %c16] : memref<344x128xf32, #tpu.memory_space<vmem>>, vector<32x8xf32>
    %c24_32 = arith.constant 24 : index
    %c48 = arith.constant 48 : index
    %54 = vector.load %arg3[%c24_32, %c48] : memref<344x128xf32, #tpu.memory_space<vmem>>, vector<32x8xf32>
    %c24_33 = arith.constant 24 : index
    %c80 = arith.constant 80 : index
    %55 = vector.load %arg3[%c24_33, %c80] : memref<344x128xf32, #tpu.memory_space<vmem>>, vector<32x8xf32>
    %c2_34 = arith.constant 2 : index
    %c16_35 = arith.constant 16 : index
    %56 = vector.load %arg3[%c2_34, %c16_35] : memref<344x128xf32, #tpu.memory_space<vmem>>, vector<1x8xf32>
    %c2_36 = arith.constant 2 : index
    %c48_37 = arith.constant 48 : index
    %57 = vector.load %arg3[%c2_36, %c48_37] : memref<344x128xf32, #tpu.memory_space<vmem>>, vector<1x8xf32>
    %c2_38 = arith.constant 2 : index
    %c80_39 = arith.constant 80 : index
    %58 = vector.load %arg3[%c2_38, %c80_39] : memref<344x128xf32, #tpu.memory_space<vmem>>, vector<1x8xf32>
    %cst_40 = arith.constant dense<0.000000e+00> : vector<16x8xf32>
    %59 = tpu.matmul %22, %53, %cst_40 {dimension_numbers = #tpu.dot_dimension_numbers<[1], [0], [0], [1], [0, 0, 1, 1], [], []>} : vector<16x32xf32>, vector<32x8xf32>, vector<16x8xf32> -> vector<16x8xf32>
    %60 = vector.broadcast %56 : vector<1x8xf32> to vector<16x8xf32>
    %61 = arith.addf %59, %60 : vector<16x8xf32>
    %cst_41 = arith.constant dense<0.000000e+00> : vector<16x8xf32>
    %62 = tpu.matmul %22, %54, %cst_41 {dimension_numbers = #tpu.dot_dimension_numbers<[1], [0], [0], [1], [0, 0, 1, 1], [], []>} : vector<16x32xf32>, vector<32x8xf32>, vector<16x8xf32> -> vector<16x8xf32>
    %63 = vector.broadcast %57 : vector<1x8xf32> to vector<16x8xf32>
    %64 = arith.addf %62, %63 : vector<16x8xf32>
    %cst_42 = arith.constant dense<0.000000e+00> : vector<16x8xf32>
    %65 = tpu.matmul %22, %55, %cst_42 {dimension_numbers = #tpu.dot_dimension_numbers<[1], [0], [0], [1], [0, 0, 1, 1], [], []>} : vector<16x32xf32>, vector<32x8xf32>, vector<16x8xf32> -> vector<16x8xf32>
    %66 = vector.broadcast %58 : vector<1x8xf32> to vector<16x8xf32>
    %67 = arith.addf %65, %66 : vector<16x8xf32>
    %c24_43 = arith.constant 24 : index
    %c24_44 = arith.constant 24 : index
    %68 = vector.load %arg3[%c24_43, %c24_44] : memref<344x128xf32, #tpu.memory_space<vmem>>, vector<32x8xf32>
    %c24_45 = arith.constant 24 : index
    %c56 = arith.constant 56 : index
    %69 = vector.load %arg3[%c24_45, %c56] : memref<344x128xf32, #tpu.memory_space<vmem>>, vector<32x8xf32>
    %c24_46 = arith.constant 24 : index
    %c88 = arith.constant 88 : index
    %70 = vector.load %arg3[%c24_46, %c88] : memref<344x128xf32, #tpu.memory_space<vmem>>, vector<32x8xf32>
    %c2_47 = arith.constant 2 : index
    %c24_48 = arith.constant 24 : index
    %71 = vector.load %arg3[%c2_47, %c24_48] : memref<344x128xf32, #tpu.memory_space<vmem>>, vector<1x8xf32>
    %c2_49 = arith.constant 2 : index
    %c56_50 = arith.constant 56 : index
    %72 = vector.load %arg3[%c2_49, %c56_50] : memref<344x128xf32, #tpu.memory_space<vmem>>, vector<1x8xf32>
    %c2_51 = arith.constant 2 : index
    %c88_52 = arith.constant 88 : index
    %73 = vector.load %arg3[%c2_51, %c88_52] : memref<344x128xf32, #tpu.memory_space<vmem>>, vector<1x8xf32>
    %cst_53 = arith.constant dense<0.000000e+00> : vector<16x8xf32>
    %74 = tpu.matmul %22, %68, %cst_53 {dimension_numbers = #tpu.dot_dimension_numbers<[1], [0], [0], [1], [0, 0, 1, 1], [], []>} : vector<16x32xf32>, vector<32x8xf32>, vector<16x8xf32> -> vector<16x8xf32>
    %75 = vector.broadcast %71 : vector<1x8xf32> to vector<16x8xf32>
    %76 = arith.addf %74, %75 : vector<16x8xf32>
    %cst_54 = arith.constant dense<0.000000e+00> : vector<16x8xf32>
    %77 = tpu.matmul %22, %69, %cst_54 {dimension_numbers = #tpu.dot_dimension_numbers<[1], [0], [0], [1], [0, 0, 1, 1], [], []>} : vector<16x32xf32>, vector<32x8xf32>, vector<16x8xf32> -> vector<16x8xf32>
    %78 = vector.broadcast %72 : vector<1x8xf32> to vector<16x8xf32>
    %79 = arith.addf %77, %78 : vector<16x8xf32>
    %cst_55 = arith.constant dense<0.000000e+00> : vector<16x8xf32>
    %80 = tpu.matmul %22, %70, %cst_55 {dimension_numbers = #tpu.dot_dimension_numbers<[1], [0], [0], [1], [0, 0, 1, 1], [], []>} : vector<16x32xf32>, vector<32x8xf32>, vector<16x8xf32> -> vector<16x8xf32>
    %81 = vector.broadcast %73 : vector<1x8xf32> to vector<16x8xf32>
    %82 = arith.addf %80, %81 : vector<16x8xf32>
    %83 = vector.extract_strided_slice %31 {offsets = [0, 0], sizes = [8, 8], strides = [1, 1]} : vector<16x8xf32> to vector<8x8xf32>
    %84 = vector.extract_strided_slice %34 {offsets = [0, 0], sizes = [8, 8], strides = [1, 1]} : vector<16x8xf32> to vector<8x8xf32>
    %cst_56 = arith.constant dense<0.000000e+00> : vector<8x8xf32>
    %85 = tpu.matmul %83, %84, %cst_56 {dimension_numbers = #tpu.dot_dimension_numbers<[1], [1], [0], [0], [0, 0, 1, 0], [], []>} : vector<8x8xf32>, vector<8x8xf32>, vector<8x8xf32> -> vector<8x8xf32>
    %86 = vector.extract_strided_slice %46 {offsets = [0, 0], sizes = [8, 8], strides = [1, 1]} : vector<16x8xf32> to vector<8x8xf32>
    %87 = vector.extract_strided_slice %49 {offsets = [0, 0], sizes = [8, 8], strides = [1, 1]} : vector<16x8xf32> to vector<8x8xf32>
    %cst_57 = arith.constant dense<0.000000e+00> : vector<8x8xf32>
    %88 = tpu.matmul %86, %87, %cst_57 {dimension_numbers = #tpu.dot_dimension_numbers<[1], [1], [0], [0], [0, 0, 1, 0], [], []>} : vector<8x8xf32>, vector<8x8xf32>, vector<8x8xf32> -> vector<8x8xf32>
    %89 = vector.extract_strided_slice %61 {offsets = [0, 0], sizes = [8, 8], strides = [1, 1]} : vector<16x8xf32> to vector<8x8xf32>
    %90 = vector.extract_strided_slice %64 {offsets = [0, 0], sizes = [8, 8], strides = [1, 1]} : vector<16x8xf32> to vector<8x8xf32>
    %cst_58 = arith.constant dense<0.000000e+00> : vector<8x8xf32>
    %91 = tpu.matmul %89, %90, %cst_58 {dimension_numbers = #tpu.dot_dimension_numbers<[1], [1], [0], [0], [0, 0, 1, 0], [], []>} : vector<8x8xf32>, vector<8x8xf32>, vector<8x8xf32> -> vector<8x8xf32>
    %92 = vector.extract_strided_slice %76 {offsets = [0, 0], sizes = [8, 8], strides = [1, 1]} : vector<16x8xf32> to vector<8x8xf32>
    %93 = vector.extract_strided_slice %79 {offsets = [0, 0], sizes = [8, 8], strides = [1, 1]} : vector<16x8xf32> to vector<8x8xf32>
    %cst_59 = arith.constant dense<0.000000e+00> : vector<8x8xf32>
    %94 = tpu.matmul %92, %93, %cst_59 {dimension_numbers = #tpu.dot_dimension_numbers<[1], [1], [0], [0], [0, 0, 1, 0], [], []>} : vector<8x8xf32>, vector<8x8xf32>, vector<8x8xf32> -> vector<8x8xf32>
    %95 = tpu.concatenate %85, %88, %91, %94 in 0 : vector<8x8xf32>, vector<8x8xf32>, vector<8x8xf32>, vector<8x8xf32> -> vector<32x8xf32>
    %cst_60 = arith.constant 0.353553385 : f32
    %96 = vector.broadcast %cst_60 : f32 to vector<32x8xf32>
    %97 = arith.mulf %95, %96 : vector<32x8xf32>
    %c0_61 = arith.constant 0 : index
    %c0_62 = arith.constant 0 : index
    %98 = vector.load %arg2[%c0_61, %c0_62] : memref<2x8xf32, #tpu.memory_space<vmem>>, vector<1x8xf32>
    %99 = vector.broadcast %98 : vector<1x8xf32> to vector<32x8xf32>
    %100 = arith.addf %97, %99 : vector<32x8xf32>
    %cst_63 = arith.constant dense<0xFF800000> : vector<32xf32>
    %101 = vector.multi_reduction <maximumf>, %100, %cst_63 [1] : vector<32x8xf32> to vector<32xf32>
    %102 = vector.shape_cast %101 : vector<32xf32> to vector<32x1xf32>
    %103 = vector.broadcast %102 : vector<32x1xf32> to vector<32x8xf32>
    %104 = arith.subf %100, %103 : vector<32x8xf32>
    %105 = math.exp %104 : vector<32x8xf32>
    %cst_64 = arith.constant dense<0.000000e+00> : vector<32xf32>
    %106 = vector.multi_reduction <add>, %105, %cst_64 [1] : vector<32x8xf32> to vector<32xf32>
    %107 = vector.shape_cast %106 : vector<32xf32> to vector<32x1xf32>
    %108 = vector.broadcast %107 : vector<32x1xf32> to vector<32x8xf32>
    %109 = arith.divf %105, %108 : vector<32x8xf32>
    %cst_65 = arith.constant 0.000000e+00 : f32
    %110 = vector.broadcast %cst_65 : f32 to vector<8x32xf32>
    %111 = vector.extract_strided_slice %109 {offsets = [0, 0], sizes = [8, 8], strides = [1, 1]} : vector<32x8xf32> to vector<8x8xf32>
    %112 = vector.extract_strided_slice %37 {offsets = [0, 0], sizes = [8, 8], strides = [1, 1]} : vector<16x8xf32> to vector<8x8xf32>
    %cst_66 = arith.constant dense<0.000000e+00> : vector<8x8xf32>
    %113 = tpu.matmul %111, %112, %cst_66 {dimension_numbers = #tpu.dot_dimension_numbers<[1], [0], [0], [1], [0, 0, 1, 1], [], []>} : vector<8x8xf32>, vector<8x8xf32>, vector<8x8xf32> -> vector<8x8xf32>
    %c56_67 = arith.constant 56 : index
    %c0_68 = arith.constant 0 : index
    %114 = vector.load %arg3[%c56_67, %c0_68] : memref<344x128xf32, #tpu.memory_space<vmem>>, vector<8x32xf32>
    %cst_69 = arith.constant dense<0.000000e+00> : vector<8x32xf32>
    %115 = tpu.matmul %113, %114, %cst_69 {dimension_numbers = #tpu.dot_dimension_numbers<[1], [0], [0], [1], [0, 0, 1, 1], [], []>} : vector<8x8xf32>, vector<8x32xf32>, vector<8x32xf32> -> vector<8x32xf32>
    %116 = arith.addf %110, %115 : vector<8x32xf32>
    %117 = vector.extract_strided_slice %109 {offsets = [8, 0], sizes = [8, 8], strides = [1, 1]} : vector<32x8xf32> to vector<8x8xf32>
    %118 = vector.extract_strided_slice %52 {offsets = [0, 0], sizes = [8, 8], strides = [1, 1]} : vector<16x8xf32> to vector<8x8xf32>
    %cst_70 = arith.constant dense<0.000000e+00> : vector<8x8xf32>
    %119 = tpu.matmul %117, %118, %cst_70 {dimension_numbers = #tpu.dot_dimension_numbers<[1], [0], [0], [1], [0, 0, 1, 1], [], []>} : vector<8x8xf32>, vector<8x8xf32>, vector<8x8xf32> -> vector<8x8xf32>
    %c64_71 = arith.constant 64 : index
    %c0_72 = arith.constant 0 : index
    %120 = vector.load %arg3[%c64_71, %c0_72] : memref<344x128xf32, #tpu.memory_space<vmem>>, vector<8x32xf32>
    %cst_73 = arith.constant dense<0.000000e+00> : vector<8x32xf32>
    %121 = tpu.matmul %119, %120, %cst_73 {dimension_numbers = #tpu.dot_dimension_numbers<[1], [0], [0], [1], [0, 0, 1, 1], [], []>} : vector<8x8xf32>, vector<8x32xf32>, vector<8x32xf32> -> vector<8x32xf32>
    %122 = arith.addf %116, %121 : vector<8x32xf32>
    %123 = vector.extract_strided_slice %109 {offsets = [16, 0], sizes = [8, 8], strides = [1, 1]} : vector<32x8xf32> to vector<8x8xf32>
    %124 = vector.extract_strided_slice %67 {offsets = [0, 0], sizes = [8, 8], strides = [1, 1]} : vector<16x8xf32> to vector<8x8xf32>
    %cst_74 = arith.constant dense<0.000000e+00> : vector<8x8xf32>
    %125 = tpu.matmul %123, %124, %cst_74 {dimension_numbers = #tpu.dot_dimension_numbers<[1], [0], [0], [1], [0, 0, 1, 1], [], []>} : vector<8x8xf32>, vector<8x8xf32>, vector<8x8xf32> -> vector<8x8xf32>
    %c72_75 = arith.constant 72 : index
    %c0_76 = arith.constant 0 : index
    %126 = vector.load %arg3[%c72_75, %c0_76] : memref<344x128xf32, #tpu.memory_space<vmem>>, vector<8x32xf32>
    %cst_77 = arith.constant dense<0.000000e+00> : vector<8x32xf32>
    %127 = tpu.matmul %125, %126, %cst_77 {dimension_numbers = #tpu.dot_dimension_numbers<[1], [0], [0], [1], [0, 0, 1, 1], [], []>} : vector<8x8xf32>, vector<8x32xf32>, vector<8x32xf32> -> vector<8x32xf32>
    %128 = arith.addf %122, %127 : vector<8x32xf32>
    %129 = vector.extract_strided_slice %109 {offsets = [24, 0], sizes = [8, 8], strides = [1, 1]} : vector<32x8xf32> to vector<8x8xf32>
    %130 = vector.extract_strided_slice %82 {offsets = [0, 0], sizes = [8, 8], strides = [1, 1]} : vector<16x8xf32> to vector<8x8xf32>
    %cst_78 = arith.constant dense<0.000000e+00> : vector<8x8xf32>
    %131 = tpu.matmul %129, %130, %cst_78 {dimension_numbers = #tpu.dot_dimension_numbers<[1], [0], [0], [1], [0, 0, 1, 1], [], []>} : vector<8x8xf32>, vector<8x8xf32>, vector<8x8xf32> -> vector<8x8xf32>
    %c80_79 = arith.constant 80 : index
    %c0_80 = arith.constant 0 : index
    %132 = vector.load %arg3[%c80_79, %c0_80] : memref<344x128xf32, #tpu.memory_space<vmem>>, vector<8x32xf32>
    %cst_81 = arith.constant dense<0.000000e+00> : vector<8x32xf32>
    %133 = tpu.matmul %131, %132, %cst_81 {dimension_numbers = #tpu.dot_dimension_numbers<[1], [0], [0], [1], [0, 0, 1, 1], [], []>} : vector<8x8xf32>, vector<8x32xf32>, vector<8x32xf32> -> vector<8x32xf32>
    %134 = arith.addf %128, %133 : vector<8x32xf32>
    %135 = vector.extract_strided_slice %31 {offsets = [8, 0], sizes = [8, 8], strides = [1, 1]} : vector<16x8xf32> to vector<8x8xf32>
    %136 = vector.extract_strided_slice %34 {offsets = [8, 0], sizes = [8, 8], strides = [1, 1]} : vector<16x8xf32> to vector<8x8xf32>
    %cst_82 = arith.constant dense<0.000000e+00> : vector<8x8xf32>
    %137 = tpu.matmul %135, %136, %cst_82 {dimension_numbers = #tpu.dot_dimension_numbers<[1], [1], [0], [0], [0, 0, 1, 0], [], []>} : vector<8x8xf32>, vector<8x8xf32>, vector<8x8xf32> -> vector<8x8xf32>
    %138 = vector.extract_strided_slice %46 {offsets = [8, 0], sizes = [8, 8], strides = [1, 1]} : vector<16x8xf32> to vector<8x8xf32>
    %139 = vector.extract_strided_slice %49 {offsets = [8, 0], sizes = [8, 8], strides = [1, 1]} : vector<16x8xf32> to vector<8x8xf32>
    %cst_83 = arith.constant dense<0.000000e+00> : vector<8x8xf32>
    %140 = tpu.matmul %138, %139, %cst_83 {dimension_numbers = #tpu.dot_dimension_numbers<[1], [1], [0], [0], [0, 0, 1, 0], [], []>} : vector<8x8xf32>, vector<8x8xf32>, vector<8x8xf32> -> vector<8x8xf32>
    %141 = vector.extract_strided_slice %61 {offsets = [8, 0], sizes = [8, 8], strides = [1, 1]} : vector<16x8xf32> to vector<8x8xf32>
    %142 = vector.extract_strided_slice %64 {offsets = [8, 0], sizes = [8, 8], strides = [1, 1]} : vector<16x8xf32> to vector<8x8xf32>
    %cst_84 = arith.constant dense<0.000000e+00> : vector<8x8xf32>
    %143 = tpu.matmul %141, %142, %cst_84 {dimension_numbers = #tpu.dot_dimension_numbers<[1], [1], [0], [0], [0, 0, 1, 0], [], []>} : vector<8x8xf32>, vector<8x8xf32>, vector<8x8xf32> -> vector<8x8xf32>
    %144 = vector.extract_strided_slice %76 {offsets = [8, 0], sizes = [8, 8], strides = [1, 1]} : vector<16x8xf32> to vector<8x8xf32>
    %145 = vector.extract_strided_slice %79 {offsets = [8, 0], sizes = [8, 8], strides = [1, 1]} : vector<16x8xf32> to vector<8x8xf32>
    %cst_85 = arith.constant dense<0.000000e+00> : vector<8x8xf32>
    %146 = tpu.matmul %144, %145, %cst_85 {dimension_numbers = #tpu.dot_dimension_numbers<[1], [1], [0], [0], [0, 0, 1, 0], [], []>} : vector<8x8xf32>, vector<8x8xf32>, vector<8x8xf32> -> vector<8x8xf32>
    %147 = tpu.concatenate %137, %140, %143, %146 in 0 : vector<8x8xf32>, vector<8x8xf32>, vector<8x8xf32>, vector<8x8xf32> -> vector<32x8xf32>
    %cst_86 = arith.constant 0.353553385 : f32
    %148 = vector.broadcast %cst_86 : f32 to vector<32x8xf32>
    %149 = arith.mulf %147, %148 : vector<32x8xf32>
    %c1_87 = arith.constant 1 : index
    %c0_88 = arith.constant 0 : index
    %150 = vector.load %arg2[%c1_87, %c0_88] : memref<2x8xf32, #tpu.memory_space<vmem>>, vector<1x8xf32>
    %151 = vector.broadcast %150 : vector<1x8xf32> to vector<32x8xf32>
    %152 = arith.addf %149, %151 : vector<32x8xf32>
    %cst_89 = arith.constant dense<0xFF800000> : vector<32xf32>
    %153 = vector.multi_reduction <maximumf>, %152, %cst_89 [1] : vector<32x8xf32> to vector<32xf32>
    %154 = vector.shape_cast %153 : vector<32xf32> to vector<32x1xf32>
    %155 = vector.broadcast %154 : vector<32x1xf32> to vector<32x8xf32>
    %156 = arith.subf %152, %155 : vector<32x8xf32>
    %157 = math.exp %156 : vector<32x8xf32>
    %cst_90 = arith.constant dense<0.000000e+00> : vector<32xf32>
    %158 = vector.multi_reduction <add>, %157, %cst_90 [1] : vector<32x8xf32> to vector<32xf32>
    %159 = vector.shape_cast %158 : vector<32xf32> to vector<32x1xf32>
    %160 = vector.broadcast %159 : vector<32x1xf32> to vector<32x8xf32>
    %161 = arith.divf %157, %160 : vector<32x8xf32>
    %cst_91 = arith.constant 0.000000e+00 : f32
    %162 = vector.broadcast %cst_91 : f32 to vector<8x32xf32>
    %163 = vector.extract_strided_slice %161 {offsets = [0, 0], sizes = [8, 8], strides = [1, 1]} : vector<32x8xf32> to vector<8x8xf32>
    %164 = vector.extract_strided_slice %37 {offsets = [8, 0], sizes = [8, 8], strides = [1, 1]} : vector<16x8xf32> to vector<8x8xf32>
    %cst_92 = arith.constant dense<0.000000e+00> : vector<8x8xf32>
    %165 = tpu.matmul %163, %164, %cst_92 {dimension_numbers = #tpu.dot_dimension_numbers<[1], [0], [0], [1], [0, 0, 1, 1], [], []>} : vector<8x8xf32>, vector<8x8xf32>, vector<8x8xf32> -> vector<8x8xf32>
    %c56_93 = arith.constant 56 : index
    %c0_94 = arith.constant 0 : index
    %166 = vector.load %arg3[%c56_93, %c0_94] : memref<344x128xf32, #tpu.memory_space<vmem>>, vector<8x32xf32>
    %cst_95 = arith.constant dense<0.000000e+00> : vector<8x32xf32>
    %167 = tpu.matmul %165, %166, %cst_95 {dimension_numbers = #tpu.dot_dimension_numbers<[1], [0], [0], [1], [0, 0, 1, 1], [], []>} : vector<8x8xf32>, vector<8x32xf32>, vector<8x32xf32> -> vector<8x32xf32>
    %168 = arith.addf %162, %167 : vector<8x32xf32>
    %169 = vector.extract_strided_slice %161 {offsets = [8, 0], sizes = [8, 8], strides = [1, 1]} : vector<32x8xf32> to vector<8x8xf32>
    %170 = vector.extract_strided_slice %52 {offsets = [8, 0], sizes = [8, 8], strides = [1, 1]} : vector<16x8xf32> to vector<8x8xf32>
    %cst_96 = arith.constant dense<0.000000e+00> : vector<8x8xf32>
    %171 = tpu.matmul %169, %170, %cst_96 {dimension_numbers = #tpu.dot_dimension_numbers<[1], [0], [0], [1], [0, 0, 1, 1], [], []>} : vector<8x8xf32>, vector<8x8xf32>, vector<8x8xf32> -> vector<8x8xf32>
    %c64_97 = arith.constant 64 : index
    %c0_98 = arith.constant 0 : index
    %172 = vector.load %arg3[%c64_97, %c0_98] : memref<344x128xf32, #tpu.memory_space<vmem>>, vector<8x32xf32>
    %cst_99 = arith.constant dense<0.000000e+00> : vector<8x32xf32>
    %173 = tpu.matmul %171, %172, %cst_99 {dimension_numbers = #tpu.dot_dimension_numbers<[1], [0], [0], [1], [0, 0, 1, 1], [], []>} : vector<8x8xf32>, vector<8x32xf32>, vector<8x32xf32> -> vector<8x32xf32>
    %174 = arith.addf %168, %173 : vector<8x32xf32>
    %175 = vector.extract_strided_slice %161 {offsets = [16, 0], sizes = [8, 8], strides = [1, 1]} : vector<32x8xf32> to vector<8x8xf32>
    %176 = vector.extract_strided_slice %67 {offsets = [8, 0], sizes = [8, 8], strides = [1, 1]} : vector<16x8xf32> to vector<8x8xf32>
    %cst_100 = arith.constant dense<0.000000e+00> : vector<8x8xf32>
    %177 = tpu.matmul %175, %176, %cst_100 {dimension_numbers = #tpu.dot_dimension_numbers<[1], [0], [0], [1], [0, 0, 1, 1], [], []>} : vector<8x8xf32>, vector<8x8xf32>, vector<8x8xf32> -> vector<8x8xf32>
    %c72_101 = arith.constant 72 : index
    %c0_102 = arith.constant 0 : index
    %178 = vector.load %arg3[%c72_101, %c0_102] : memref<344x128xf32, #tpu.memory_space<vmem>>, vector<8x32xf32>
    %cst_103 = arith.constant dense<0.000000e+00> : vector<8x32xf32>
    %179 = tpu.matmul %177, %178, %cst_103 {dimension_numbers = #tpu.dot_dimension_numbers<[1], [0], [0], [1], [0, 0, 1, 1], [], []>} : vector<8x8xf32>, vector<8x32xf32>, vector<8x32xf32> -> vector<8x32xf32>
    %180 = arith.addf %174, %179 : vector<8x32xf32>
    %181 = vector.extract_strided_slice %161 {offsets = [24, 0], sizes = [8, 8], strides = [1, 1]} : vector<32x8xf32> to vector<8x8xf32>
    %182 = vector.extract_strided_slice %82 {offsets = [8, 0], sizes = [8, 8], strides = [1, 1]} : vector<16x8xf32> to vector<8x8xf32>
    %cst_104 = arith.constant dense<0.000000e+00> : vector<8x8xf32>
    %183 = tpu.matmul %181, %182, %cst_104 {dimension_numbers = #tpu.dot_dimension_numbers<[1], [0], [0], [1], [0, 0, 1, 1], [], []>} : vector<8x8xf32>, vector<8x8xf32>, vector<8x8xf32> -> vector<8x8xf32>
    %c80_105 = arith.constant 80 : index
    %c0_106 = arith.constant 0 : index
    %184 = vector.load %arg3[%c80_105, %c0_106] : memref<344x128xf32, #tpu.memory_space<vmem>>, vector<8x32xf32>
    %cst_107 = arith.constant dense<0.000000e+00> : vector<8x32xf32>
    %185 = tpu.matmul %183, %184, %cst_107 {dimension_numbers = #tpu.dot_dimension_numbers<[1], [0], [0], [1], [0, 0, 1, 1], [], []>} : vector<8x8xf32>, vector<8x32xf32>, vector<8x32xf32> -> vector<8x32xf32>
    %186 = arith.addf %180, %185 : vector<8x32xf32>
    %187 = tpu.concatenate %134, %186 in 0 : vector<8x32xf32>, vector<8x32xf32> -> vector<16x32xf32>
    %c3 = arith.constant 3 : index
    %c0_108 = arith.constant 0 : index
    %188 = vector.load %arg3[%c3, %c0_108] : memref<344x128xf32, #tpu.memory_space<vmem>>, vector<1x32xf32>
    %189 = vector.broadcast %188 : vector<1x32xf32> to vector<16x32xf32>
    %190 = arith.addf %187, %189 : vector<16x32xf32>
    %191 = arith.addf %190, %22 : vector<16x32xf32>
    %c4 = arith.constant 4 : index
    %c0_109 = arith.constant 0 : index
    %192 = vector.load %arg3[%c4, %c0_109] : memref<344x128xf32, #tpu.memory_space<vmem>>, vector<1x32xf32>
    %c5 = arith.constant 5 : index
    %c0_110 = arith.constant 0 : index
    %193 = vector.load %arg3[%c5, %c0_110] : memref<344x128xf32, #tpu.memory_space<vmem>>, vector<1x32xf32>
    %cst_111 = arith.constant dense<0.000000e+00> : vector<16xf32>
    %194 = vector.multi_reduction <add>, %191, %cst_111 [1] : vector<16x32xf32> to vector<16xf32>
    %195 = vector.shape_cast %194 : vector<16xf32> to vector<16x1xf32>
    %cst_112 = arith.constant 3.200000e+01 : f32
    %196 = vector.broadcast %cst_112 : f32 to vector<16x1xf32>
    %197 = arith.divf %195, %196 : vector<16x1xf32>
    %198 = vector.broadcast %197 : vector<16x1xf32> to vector<16x32xf32>
    %199 = arith.subf %191, %198 : vector<16x32xf32>
    %200 = arith.mulf %199, %199 : vector<16x32xf32>
    %cst_113 = arith.constant dense<0.000000e+00> : vector<16xf32>
    %201 = vector.multi_reduction <add>, %200, %cst_113 [1] : vector<16x32xf32> to vector<16xf32>
    %202 = vector.shape_cast %201 : vector<16xf32> to vector<16x1xf32>
    %cst_114 = arith.constant 3.200000e+01 : f32
    %203 = vector.broadcast %cst_114 : f32 to vector<16x1xf32>
    %204 = arith.divf %202, %203 : vector<16x1xf32>
    %cst_115 = arith.constant 9.99999996E-13 : f32
    %205 = vector.broadcast %cst_115 : f32 to vector<16x1xf32>
    %206 = arith.addf %204, %205 : vector<16x1xf32>
    %207 = math.rsqrt %206 : vector<16x1xf32>
    %208 = vector.broadcast %207 : vector<16x1xf32> to vector<16x32xf32>
    %209 = arith.mulf %199, %208 : vector<16x32xf32>
    %210 = vector.broadcast %192 : vector<1x32xf32> to vector<16x32xf32>
    %211 = arith.mulf %209, %210 : vector<16x32xf32>
    %212 = vector.broadcast %193 : vector<1x32xf32> to vector<16x32xf32>
    %213 = arith.addf %211, %212 : vector<16x32xf32>
    %c88_116 = arith.constant 88 : index
    %c0_117 = arith.constant 0 : index
    %214 = vector.load %arg3[%c88_116, %c0_117] : memref<344x128xf32, #tpu.memory_space<vmem>>, vector<32x64xf32>
    %c120 = arith.constant 120 : index
    %c0_118 = arith.constant 0 : index
    %215 = vector.load %arg3[%c120, %c0_118] : memref<344x128xf32, #tpu.memory_space<vmem>>, vector<64x32xf32>
    %cst_119 = arith.constant dense<0.000000e+00> : vector<16x64xf32>
    %216 = tpu.matmul %213, %214, %cst_119 {dimension_numbers = #tpu.dot_dimension_numbers<[1], [0], [0], [1], [0, 0, 1, 1], [], []>} : vector<16x32xf32>, vector<32x64xf32>, vector<16x64xf32> -> vector<16x64xf32>
    %c6 = arith.constant 6 : index
    %c0_120 = arith.constant 0 : index
    %217 = vector.load %arg3[%c6, %c0_120] : memref<344x128xf32, #tpu.memory_space<vmem>>, vector<1x64xf32>
    %218 = vector.broadcast %217 : vector<1x64xf32> to vector<16x64xf32>
    %219 = arith.addf %216, %218 : vector<16x64xf32>
    %220 = arith.mulf %219, %219 : vector<16x64xf32>
    %221 = arith.mulf %219, %220 : vector<16x64xf32>
    %cst_121 = arith.constant 4.471500e-02 : f32
    %222 = vector.broadcast %cst_121 : f32 to vector<16x64xf32>
    %223 = arith.mulf %222, %221 : vector<16x64xf32>
    %224 = arith.addf %219, %223 : vector<16x64xf32>
    %cst_122 = arith.constant 0.797884583 : f32
    %225 = vector.broadcast %cst_122 : f32 to vector<16x64xf32>
    %226 = arith.mulf %225, %224 : vector<16x64xf32>
    %227 = math.tanh %226 : vector<16x64xf32>
    %cst_123 = arith.constant 1.000000e+00 : f32
    %228 = vector.broadcast %cst_123 : f32 to vector<16x64xf32>
    %229 = arith.addf %228, %227 : vector<16x64xf32>
    %cst_124 = arith.constant 5.000000e-01 : f32
    %230 = vector.broadcast %cst_124 : f32 to vector<16x64xf32>
    %231 = arith.mulf %230, %229 : vector<16x64xf32>
    %232 = arith.mulf %219, %231 : vector<16x64xf32>
    %cst_125 = arith.constant dense<0.000000e+00> : vector<16x32xf32>
    %233 = tpu.matmul %232, %215, %cst_125 {dimension_numbers = #tpu.dot_dimension_numbers<[1], [0], [0], [1], [0, 0, 1, 1], [], []>} : vector<16x64xf32>, vector<64x32xf32>, vector<16x32xf32> -> vector<16x32xf32>
    %c7 = arith.constant 7 : index
    %c0_126 = arith.constant 0 : index
    %234 = vector.load %arg3[%c7, %c0_126] : memref<344x128xf32, #tpu.memory_space<vmem>>, vector<1x32xf32>
    %235 = vector.broadcast %234 : vector<1x32xf32> to vector<16x32xf32>
    %236 = arith.addf %233, %235 : vector<16x32xf32>
    %237 = arith.addf %236, %213 : vector<16x32xf32>
    %c8_127 = arith.constant 8 : index
    %c0_128 = arith.constant 0 : index
    %238 = vector.load %arg3[%c8_127, %c0_128] : memref<344x128xf32, #tpu.memory_space<vmem>>, vector<1x32xf32>
    %c9 = arith.constant 9 : index
    %c0_129 = arith.constant 0 : index
    %239 = vector.load %arg3[%c9, %c0_129] : memref<344x128xf32, #tpu.memory_space<vmem>>, vector<1x32xf32>
    %cst_130 = arith.constant dense<0.000000e+00> : vector<16xf32>
    %240 = vector.multi_reduction <add>, %237, %cst_130 [1] : vector<16x32xf32> to vector<16xf32>
    %241 = vector.shape_cast %240 : vector<16xf32> to vector<16x1xf32>
    %cst_131 = arith.constant 3.200000e+01 : f32
    %242 = vector.broadcast %cst_131 : f32 to vector<16x1xf32>
    %243 = arith.divf %241, %242 : vector<16x1xf32>
    %244 = vector.broadcast %243 : vector<16x1xf32> to vector<16x32xf32>
    %245 = arith.subf %237, %244 : vector<16x32xf32>
    %246 = arith.mulf %245, %245 : vector<16x32xf32>
    %cst_132 = arith.constant dense<0.000000e+00> : vector<16xf32>
    %247 = vector.multi_reduction <add>, %246, %cst_132 [1] : vector<16x32xf32> to vector<16xf32>
    %248 = vector.shape_cast %247 : vector<16xf32> to vector<16x1xf32>
    %cst_133 = arith.constant 3.200000e+01 : f32
    %249 = vector.broadcast %cst_133 : f32 to vector<16x1xf32>
    %250 = arith.divf %248, %249 : vector<16x1xf32>
    %cst_134 = arith.constant 9.99999996E-13 : f32
    %251 = vector.broadcast %cst_134 : f32 to vector<16x1xf32>
    %252 = arith.addf %250, %251 : vector<16x1xf32>
    %253 = math.rsqrt %252 : vector<16x1xf32>
    %254 = vector.broadcast %253 : vector<16x1xf32> to vector<16x32xf32>
    %255 = arith.mulf %245, %254 : vector<16x32xf32>
    %256 = vector.broadcast %238 : vector<1x32xf32> to vector<16x32xf32>
    %257 = arith.mulf %255, %256 : vector<16x32xf32>
    %258 = vector.broadcast %239 : vector<1x32xf32> to vector<16x32xf32>
    %259 = arith.addf %257, %258 : vector<16x32xf32>
    %c184 = arith.constant 184 : index
    %c0_135 = arith.constant 0 : index
    %260 = vector.load %arg3[%c184, %c0_135] : memref<344x128xf32, #tpu.memory_space<vmem>>, vector<32x8xf32>
    %c184_136 = arith.constant 184 : index
    %c32_137 = arith.constant 32 : index
    %261 = vector.load %arg3[%c184_136, %c32_137] : memref<344x128xf32, #tpu.memory_space<vmem>>, vector<32x8xf32>
    %c184_138 = arith.constant 184 : index
    %c64_139 = arith.constant 64 : index
    %262 = vector.load %arg3[%c184_138, %c64_139] : memref<344x128xf32, #tpu.memory_space<vmem>>, vector<32x8xf32>
    %c10 = arith.constant 10 : index
    %c0_140 = arith.constant 0 : index
    %263 = vector.load %arg3[%c10, %c0_140] : memref<344x128xf32, #tpu.memory_space<vmem>>, vector<1x8xf32>
    %c10_141 = arith.constant 10 : index
    %c32_142 = arith.constant 32 : index
    %264 = vector.load %arg3[%c10_141, %c32_142] : memref<344x128xf32, #tpu.memory_space<vmem>>, vector<1x8xf32>
    %c10_143 = arith.constant 10 : index
    %c64_144 = arith.constant 64 : index
    %265 = vector.load %arg3[%c10_143, %c64_144] : memref<344x128xf32, #tpu.memory_space<vmem>>, vector<1x8xf32>
    %cst_145 = arith.constant dense<0.000000e+00> : vector<16x8xf32>
    %266 = tpu.matmul %259, %260, %cst_145 {dimension_numbers = #tpu.dot_dimension_numbers<[1], [0], [0], [1], [0, 0, 1, 1], [], []>} : vector<16x32xf32>, vector<32x8xf32>, vector<16x8xf32> -> vector<16x8xf32>
    %267 = vector.broadcast %263 : vector<1x8xf32> to vector<16x8xf32>
    %268 = arith.addf %266, %267 : vector<16x8xf32>
    %cst_146 = arith.constant dense<0.000000e+00> : vector<16x8xf32>
    %269 = tpu.matmul %259, %261, %cst_146 {dimension_numbers = #tpu.dot_dimension_numbers<[1], [0], [0], [1], [0, 0, 1, 1], [], []>} : vector<16x32xf32>, vector<32x8xf32>, vector<16x8xf32> -> vector<16x8xf32>
    %270 = vector.broadcast %264 : vector<1x8xf32> to vector<16x8xf32>
    %271 = arith.addf %269, %270 : vector<16x8xf32>
    %cst_147 = arith.constant dense<0.000000e+00> : vector<16x8xf32>
    %272 = tpu.matmul %259, %262, %cst_147 {dimension_numbers = #tpu.dot_dimension_numbers<[1], [0], [0], [1], [0, 0, 1, 1], [], []>} : vector<16x32xf32>, vector<32x8xf32>, vector<16x8xf32> -> vector<16x8xf32>
    %273 = vector.broadcast %265 : vector<1x8xf32> to vector<16x8xf32>
    %274 = arith.addf %272, %273 : vector<16x8xf32>
    %c184_148 = arith.constant 184 : index
    %c8_149 = arith.constant 8 : index
    %275 = vector.load %arg3[%c184_148, %c8_149] : memref<344x128xf32, #tpu.memory_space<vmem>>, vector<32x8xf32>
    %c184_150 = arith.constant 184 : index
    %c40_151 = arith.constant 40 : index
    %276 = vector.load %arg3[%c184_150, %c40_151] : memref<344x128xf32, #tpu.memory_space<vmem>>, vector<32x8xf32>
    %c184_152 = arith.constant 184 : index
    %c72_153 = arith.constant 72 : index
    %277 = vector.load %arg3[%c184_152, %c72_153] : memref<344x128xf32, #tpu.memory_space<vmem>>, vector<32x8xf32>
    %c10_154 = arith.constant 10 : index
    %c8_155 = arith.constant 8 : index
    %278 = vector.load %arg3[%c10_154, %c8_155] : memref<344x128xf32, #tpu.memory_space<vmem>>, vector<1x8xf32>
    %c10_156 = arith.constant 10 : index
    %c40_157 = arith.constant 40 : index
    %279 = vector.load %arg3[%c10_156, %c40_157] : memref<344x128xf32, #tpu.memory_space<vmem>>, vector<1x8xf32>
    %c10_158 = arith.constant 10 : index
    %c72_159 = arith.constant 72 : index
    %280 = vector.load %arg3[%c10_158, %c72_159] : memref<344x128xf32, #tpu.memory_space<vmem>>, vector<1x8xf32>
    %cst_160 = arith.constant dense<0.000000e+00> : vector<16x8xf32>
    %281 = tpu.matmul %259, %275, %cst_160 {dimension_numbers = #tpu.dot_dimension_numbers<[1], [0], [0], [1], [0, 0, 1, 1], [], []>} : vector<16x32xf32>, vector<32x8xf32>, vector<16x8xf32> -> vector<16x8xf32>
    %282 = vector.broadcast %278 : vector<1x8xf32> to vector<16x8xf32>
    %283 = arith.addf %281, %282 : vector<16x8xf32>
    %cst_161 = arith.constant dense<0.000000e+00> : vector<16x8xf32>
    %284 = tpu.matmul %259, %276, %cst_161 {dimension_numbers = #tpu.dot_dimension_numbers<[1], [0], [0], [1], [0, 0, 1, 1], [], []>} : vector<16x32xf32>, vector<32x8xf32>, vector<16x8xf32> -> vector<16x8xf32>
    %285 = vector.broadcast %279 : vector<1x8xf32> to vector<16x8xf32>
    %286 = arith.addf %284, %285 : vector<16x8xf32>
    %cst_162 = arith.constant dense<0.000000e+00> : vector<16x8xf32>
    %287 = tpu.matmul %259, %277, %cst_162 {dimension_numbers = #tpu.dot_dimension_numbers<[1], [0], [0], [1], [0, 0, 1, 1], [], []>} : vector<16x32xf32>, vector<32x8xf32>, vector<16x8xf32> -> vector<16x8xf32>
    %288 = vector.broadcast %280 : vector<1x8xf32> to vector<16x8xf32>
    %289 = arith.addf %287, %288 : vector<16x8xf32>
    %c184_163 = arith.constant 184 : index
    %c16_164 = arith.constant 16 : index
    %290 = vector.load %arg3[%c184_163, %c16_164] : memref<344x128xf32, #tpu.memory_space<vmem>>, vector<32x8xf32>
    %c184_165 = arith.constant 184 : index
    %c48_166 = arith.constant 48 : index
    %291 = vector.load %arg3[%c184_165, %c48_166] : memref<344x128xf32, #tpu.memory_space<vmem>>, vector<32x8xf32>
    %c184_167 = arith.constant 184 : index
    %c80_168 = arith.constant 80 : index
    %292 = vector.load %arg3[%c184_167, %c80_168] : memref<344x128xf32, #tpu.memory_space<vmem>>, vector<32x8xf32>
    %c10_169 = arith.constant 10 : index
    %c16_170 = arith.constant 16 : index
    %293 = vector.load %arg3[%c10_169, %c16_170] : memref<344x128xf32, #tpu.memory_space<vmem>>, vector<1x8xf32>
    %c10_171 = arith.constant 10 : index
    %c48_172 = arith.constant 48 : index
    %294 = vector.load %arg3[%c10_171, %c48_172] : memref<344x128xf32, #tpu.memory_space<vmem>>, vector<1x8xf32>
    %c10_173 = arith.constant 10 : index
    %c80_174 = arith.constant 80 : index
    %295 = vector.load %arg3[%c10_173, %c80_174] : memref<344x128xf32, #tpu.memory_space<vmem>>, vector<1x8xf32>
    %cst_175 = arith.constant dense<0.000000e+00> : vector<16x8xf32>
    %296 = tpu.matmul %259, %290, %cst_175 {dimension_numbers = #tpu.dot_dimension_numbers<[1], [0], [0], [1], [0, 0, 1, 1], [], []>} : vector<16x32xf32>, vector<32x8xf32>, vector<16x8xf32> -> vector<16x8xf32>
    %297 = vector.broadcast %293 : vector<1x8xf32> to vector<16x8xf32>
    %298 = arith.addf %296, %297 : vector<16x8xf32>
    %cst_176 = arith.constant dense<0.000000e+00> : vector<16x8xf32>
    %299 = tpu.matmul %259, %291, %cst_176 {dimension_numbers = #tpu.dot_dimension_numbers<[1], [0], [0], [1], [0, 0, 1, 1], [], []>} : vector<16x32xf32>, vector<32x8xf32>, vector<16x8xf32> -> vector<16x8xf32>
    %300 = vector.broadcast %294 : vector<1x8xf32> to vector<16x8xf32>
    %301 = arith.addf %299, %300 : vector<16x8xf32>
    %cst_177 = arith.constant dense<0.000000e+00> : vector<16x8xf32>
    %302 = tpu.matmul %259, %292, %cst_177 {dimension_numbers = #tpu.dot_dimension_numbers<[1], [0], [0], [1], [0, 0, 1, 1], [], []>} : vector<16x32xf32>, vector<32x8xf32>, vector<16x8xf32> -> vector<16x8xf32>
    %303 = vector.broadcast %295 : vector<1x8xf32> to vector<16x8xf32>
    %304 = arith.addf %302, %303 : vector<16x8xf32>
    %c184_178 = arith.constant 184 : index
    %c24_179 = arith.constant 24 : index
    %305 = vector.load %arg3[%c184_178, %c24_179] : memref<344x128xf32, #tpu.memory_space<vmem>>, vector<32x8xf32>
    %c184_180 = arith.constant 184 : index
    %c56_181 = arith.constant 56 : index
    %306 = vector.load %arg3[%c184_180, %c56_181] : memref<344x128xf32, #tpu.memory_space<vmem>>, vector<32x8xf32>
    %c184_182 = arith.constant 184 : index
    %c88_183 = arith.constant 88 : index
    %307 = vector.load %arg3[%c184_182, %c88_183] : memref<344x128xf32, #tpu.memory_space<vmem>>, vector<32x8xf32>
    %c10_184 = arith.constant 10 : index
    %c24_185 = arith.constant 24 : index
    %308 = vector.load %arg3[%c10_184, %c24_185] : memref<344x128xf32, #tpu.memory_space<vmem>>, vector<1x8xf32>
    %c10_186 = arith.constant 10 : index
    %c56_187 = arith.constant 56 : index
    %309 = vector.load %arg3[%c10_186, %c56_187] : memref<344x128xf32, #tpu.memory_space<vmem>>, vector<1x8xf32>
    %c10_188 = arith.constant 10 : index
    %c88_189 = arith.constant 88 : index
    %310 = vector.load %arg3[%c10_188, %c88_189] : memref<344x128xf32, #tpu.memory_space<vmem>>, vector<1x8xf32>
    %cst_190 = arith.constant dense<0.000000e+00> : vector<16x8xf32>
    %311 = tpu.matmul %259, %305, %cst_190 {dimension_numbers = #tpu.dot_dimension_numbers<[1], [0], [0], [1], [0, 0, 1, 1], [], []>} : vector<16x32xf32>, vector<32x8xf32>, vector<16x8xf32> -> vector<16x8xf32>
    %312 = vector.broadcast %308 : vector<1x8xf32> to vector<16x8xf32>
    %313 = arith.addf %311, %312 : vector<16x8xf32>
    %cst_191 = arith.constant dense<0.000000e+00> : vector<16x8xf32>
    %314 = tpu.matmul %259, %306, %cst_191 {dimension_numbers = #tpu.dot_dimension_numbers<[1], [0], [0], [1], [0, 0, 1, 1], [], []>} : vector<16x32xf32>, vector<32x8xf32>, vector<16x8xf32> -> vector<16x8xf32>
    %315 = vector.broadcast %309 : vector<1x8xf32> to vector<16x8xf32>
    %316 = arith.addf %314, %315 : vector<16x8xf32>
    %cst_192 = arith.constant dense<0.000000e+00> : vector<16x8xf32>
    %317 = tpu.matmul %259, %307, %cst_192 {dimension_numbers = #tpu.dot_dimension_numbers<[1], [0], [0], [1], [0, 0, 1, 1], [], []>} : vector<16x32xf32>, vector<32x8xf32>, vector<16x8xf32> -> vector<16x8xf32>
    %318 = vector.broadcast %310 : vector<1x8xf32> to vector<16x8xf32>
    %319 = arith.addf %317, %318 : vector<16x8xf32>
    %320 = vector.extract_strided_slice %268 {offsets = [0, 0], sizes = [8, 8], strides = [1, 1]} : vector<16x8xf32> to vector<8x8xf32>
    %321 = vector.extract_strided_slice %271 {offsets = [0, 0], sizes = [8, 8], strides = [1, 1]} : vector<16x8xf32> to vector<8x8xf32>
    %cst_193 = arith.constant dense<0.000000e+00> : vector<8x8xf32>
    %322 = tpu.matmul %320, %321, %cst_193 {dimension_numbers = #tpu.dot_dimension_numbers<[1], [1], [0], [0], [0, 0, 1, 0], [], []>} : vector<8x8xf32>, vector<8x8xf32>, vector<8x8xf32> -> vector<8x8xf32>
    %323 = vector.extract_strided_slice %283 {offsets = [0, 0], sizes = [8, 8], strides = [1, 1]} : vector<16x8xf32> to vector<8x8xf32>
    %324 = vector.extract_strided_slice %286 {offsets = [0, 0], sizes = [8, 8], strides = [1, 1]} : vector<16x8xf32> to vector<8x8xf32>
    %cst_194 = arith.constant dense<0.000000e+00> : vector<8x8xf32>
    %325 = tpu.matmul %323, %324, %cst_194 {dimension_numbers = #tpu.dot_dimension_numbers<[1], [1], [0], [0], [0, 0, 1, 0], [], []>} : vector<8x8xf32>, vector<8x8xf32>, vector<8x8xf32> -> vector<8x8xf32>
    %326 = vector.extract_strided_slice %298 {offsets = [0, 0], sizes = [8, 8], strides = [1, 1]} : vector<16x8xf32> to vector<8x8xf32>
    %327 = vector.extract_strided_slice %301 {offsets = [0, 0], sizes = [8, 8], strides = [1, 1]} : vector<16x8xf32> to vector<8x8xf32>
    %cst_195 = arith.constant dense<0.000000e+00> : vector<8x8xf32>
    %328 = tpu.matmul %326, %327, %cst_195 {dimension_numbers = #tpu.dot_dimension_numbers<[1], [1], [0], [0], [0, 0, 1, 0], [], []>} : vector<8x8xf32>, vector<8x8xf32>, vector<8x8xf32> -> vector<8x8xf32>
    %329 = vector.extract_strided_slice %313 {offsets = [0, 0], sizes = [8, 8], strides = [1, 1]} : vector<16x8xf32> to vector<8x8xf32>
    %330 = vector.extract_strided_slice %316 {offsets = [0, 0], sizes = [8, 8], strides = [1, 1]} : vector<16x8xf32> to vector<8x8xf32>
    %cst_196 = arith.constant dense<0.000000e+00> : vector<8x8xf32>
    %331 = tpu.matmul %329, %330, %cst_196 {dimension_numbers = #tpu.dot_dimension_numbers<[1], [1], [0], [0], [0, 0, 1, 0], [], []>} : vector<8x8xf32>, vector<8x8xf32>, vector<8x8xf32> -> vector<8x8xf32>
    %332 = tpu.concatenate %322, %325, %328, %331 in 0 : vector<8x8xf32>, vector<8x8xf32>, vector<8x8xf32>, vector<8x8xf32> -> vector<32x8xf32>
    %cst_197 = arith.constant 0.353553385 : f32
    %333 = vector.broadcast %cst_197 : f32 to vector<32x8xf32>
    %334 = arith.mulf %332, %333 : vector<32x8xf32>
    %c0_198 = arith.constant 0 : index
    %c0_199 = arith.constant 0 : index
    %335 = vector.load %arg2[%c0_198, %c0_199] : memref<2x8xf32, #tpu.memory_space<vmem>>, vector<1x8xf32>
    %336 = vector.broadcast %335 : vector<1x8xf32> to vector<32x8xf32>
    %337 = arith.addf %334, %336 : vector<32x8xf32>
    %cst_200 = arith.constant dense<0xFF800000> : vector<32xf32>
    %338 = vector.multi_reduction <maximumf>, %337, %cst_200 [1] : vector<32x8xf32> to vector<32xf32>
    %339 = vector.shape_cast %338 : vector<32xf32> to vector<32x1xf32>
    %340 = vector.broadcast %339 : vector<32x1xf32> to vector<32x8xf32>
    %341 = arith.subf %337, %340 : vector<32x8xf32>
    %342 = math.exp %341 : vector<32x8xf32>
    %cst_201 = arith.constant dense<0.000000e+00> : vector<32xf32>
    %343 = vector.multi_reduction <add>, %342, %cst_201 [1] : vector<32x8xf32> to vector<32xf32>
    %344 = vector.shape_cast %343 : vector<32xf32> to vector<32x1xf32>
    %345 = vector.broadcast %344 : vector<32x1xf32> to vector<32x8xf32>
    %346 = arith.divf %342, %345 : vector<32x8xf32>
    %cst_202 = arith.constant 0.000000e+00 : f32
    %347 = vector.broadcast %cst_202 : f32 to vector<8x32xf32>
    %348 = vector.extract_strided_slice %346 {offsets = [0, 0], sizes = [8, 8], strides = [1, 1]} : vector<32x8xf32> to vector<8x8xf32>
    %349 = vector.extract_strided_slice %274 {offsets = [0, 0], sizes = [8, 8], strides = [1, 1]} : vector<16x8xf32> to vector<8x8xf32>
    %cst_203 = arith.constant dense<0.000000e+00> : vector<8x8xf32>
    %350 = tpu.matmul %348, %349, %cst_203 {dimension_numbers = #tpu.dot_dimension_numbers<[1], [0], [0], [1], [0, 0, 1, 1], [], []>} : vector<8x8xf32>, vector<8x8xf32>, vector<8x8xf32> -> vector<8x8xf32>
    %c216 = arith.constant 216 : index
    %c0_204 = arith.constant 0 : index
    %351 = vector.load %arg3[%c216, %c0_204] : memref<344x128xf32, #tpu.memory_space<vmem>>, vector<8x32xf32>
    %cst_205 = arith.constant dense<0.000000e+00> : vector<8x32xf32>
    %352 = tpu.matmul %350, %351, %cst_205 {dimension_numbers = #tpu.dot_dimension_numbers<[1], [0], [0], [1], [0, 0, 1, 1], [], []>} : vector<8x8xf32>, vector<8x32xf32>, vector<8x32xf32> -> vector<8x32xf32>
    %353 = arith.addf %347, %352 : vector<8x32xf32>
    %354 = vector.extract_strided_slice %346 {offsets = [8, 0], sizes = [8, 8], strides = [1, 1]} : vector<32x8xf32> to vector<8x8xf32>
    %355 = vector.extract_strided_slice %289 {offsets = [0, 0], sizes = [8, 8], strides = [1, 1]} : vector<16x8xf32> to vector<8x8xf32>
    %cst_206 = arith.constant dense<0.000000e+00> : vector<8x8xf32>
    %356 = tpu.matmul %354, %355, %cst_206 {dimension_numbers = #tpu.dot_dimension_numbers<[1], [0], [0], [1], [0, 0, 1, 1], [], []>} : vector<8x8xf32>, vector<8x8xf32>, vector<8x8xf32> -> vector<8x8xf32>
    %c224 = arith.constant 224 : index
    %c0_207 = arith.constant 0 : index
    %357 = vector.load %arg3[%c224, %c0_207] : memref<344x128xf32, #tpu.memory_space<vmem>>, vector<8x32xf32>
    %cst_208 = arith.constant dense<0.000000e+00> : vector<8x32xf32>
    %358 = tpu.matmul %356, %357, %cst_208 {dimension_numbers = #tpu.dot_dimension_numbers<[1], [0], [0], [1], [0, 0, 1, 1], [], []>} : vector<8x8xf32>, vector<8x32xf32>, vector<8x32xf32> -> vector<8x32xf32>
    %359 = arith.addf %353, %358 : vector<8x32xf32>
    %360 = vector.extract_strided_slice %346 {offsets = [16, 0], sizes = [8, 8], strides = [1, 1]} : vector<32x8xf32> to vector<8x8xf32>
    %361 = vector.extract_strided_slice %304 {offsets = [0, 0], sizes = [8, 8], strides = [1, 1]} : vector<16x8xf32> to vector<8x8xf32>
    %cst_209 = arith.constant dense<0.000000e+00> : vector<8x8xf32>
    %362 = tpu.matmul %360, %361, %cst_209 {dimension_numbers = #tpu.dot_dimension_numbers<[1], [0], [0], [1], [0, 0, 1, 1], [], []>} : vector<8x8xf32>, vector<8x8xf32>, vector<8x8xf32> -> vector<8x8xf32>
    %c232 = arith.constant 232 : index
    %c0_210 = arith.constant 0 : index
    %363 = vector.load %arg3[%c232, %c0_210] : memref<344x128xf32, #tpu.memory_space<vmem>>, vector<8x32xf32>
    %cst_211 = arith.constant dense<0.000000e+00> : vector<8x32xf32>
    %364 = tpu.matmul %362, %363, %cst_211 {dimension_numbers = #tpu.dot_dimension_numbers<[1], [0], [0], [1], [0, 0, 1, 1], [], []>} : vector<8x8xf32>, vector<8x32xf32>, vector<8x32xf32> -> vector<8x32xf32>
    %365 = arith.addf %359, %364 : vector<8x32xf32>
    %366 = vector.extract_strided_slice %346 {offsets = [24, 0], sizes = [8, 8], strides = [1, 1]} : vector<32x8xf32> to vector<8x8xf32>
    %367 = vector.extract_strided_slice %319 {offsets = [0, 0], sizes = [8, 8], strides = [1, 1]} : vector<16x8xf32> to vector<8x8xf32>
    %cst_212 = arith.constant dense<0.000000e+00> : vector<8x8xf32>
    %368 = tpu.matmul %366, %367, %cst_212 {dimension_numbers = #tpu.dot_dimension_numbers<[1], [0], [0], [1], [0, 0, 1, 1], [], []>} : vector<8x8xf32>, vector<8x8xf32>, vector<8x8xf32> -> vector<8x8xf32>
    %c240 = arith.constant 240 : index
    %c0_213 = arith.constant 0 : index
    %369 = vector.load %arg3[%c240, %c0_213] : memref<344x128xf32, #tpu.memory_space<vmem>>, vector<8x32xf32>
    %cst_214 = arith.constant dense<0.000000e+00> : vector<8x32xf32>
    %370 = tpu.matmul %368, %369, %cst_214 {dimension_numbers = #tpu.dot_dimension_numbers<[1], [0], [0], [1], [0, 0, 1, 1], [], []>} : vector<8x8xf32>, vector<8x32xf32>, vector<8x32xf32> -> vector<8x32xf32>
    %371 = arith.addf %365, %370 : vector<8x32xf32>
    %372 = vector.extract_strided_slice %268 {offsets = [8, 0], sizes = [8, 8], strides = [1, 1]} : vector<16x8xf32> to vector<8x8xf32>
    %373 = vector.extract_strided_slice %271 {offsets = [8, 0], sizes = [8, 8], strides = [1, 1]} : vector<16x8xf32> to vector<8x8xf32>
    %cst_215 = arith.constant dense<0.000000e+00> : vector<8x8xf32>
    %374 = tpu.matmul %372, %373, %cst_215 {dimension_numbers = #tpu.dot_dimension_numbers<[1], [1], [0], [0], [0, 0, 1, 0], [], []>} : vector<8x8xf32>, vector<8x8xf32>, vector<8x8xf32> -> vector<8x8xf32>
    %375 = vector.extract_strided_slice %283 {offsets = [8, 0], sizes = [8, 8], strides = [1, 1]} : vector<16x8xf32> to vector<8x8xf32>
    %376 = vector.extract_strided_slice %286 {offsets = [8, 0], sizes = [8, 8], strides = [1, 1]} : vector<16x8xf32> to vector<8x8xf32>
    %cst_216 = arith.constant dense<0.000000e+00> : vector<8x8xf32>
    %377 = tpu.matmul %375, %376, %cst_216 {dimension_numbers = #tpu.dot_dimension_numbers<[1], [1], [0], [0], [0, 0, 1, 0], [], []>} : vector<8x8xf32>, vector<8x8xf32>, vector<8x8xf32> -> vector<8x8xf32>
    %378 = vector.extract_strided_slice %298 {offsets = [8, 0], sizes = [8, 8], strides = [1, 1]} : vector<16x8xf32> to vector<8x8xf32>
    %379 = vector.extract_strided_slice %301 {offsets = [8, 0], sizes = [8, 8], strides = [1, 1]} : vector<16x8xf32> to vector<8x8xf32>
    %cst_217 = arith.constant dense<0.000000e+00> : vector<8x8xf32>
    %380 = tpu.matmul %378, %379, %cst_217 {dimension_numbers = #tpu.dot_dimension_numbers<[1], [1], [0], [0], [0, 0, 1, 0], [], []>} : vector<8x8xf32>, vector<8x8xf32>, vector<8x8xf32> -> vector<8x8xf32>
    %381 = vector.extract_strided_slice %313 {offsets = [8, 0], sizes = [8, 8], strides = [1, 1]} : vector<16x8xf32> to vector<8x8xf32>
    %382 = vector.extract_strided_slice %316 {offsets = [8, 0], sizes = [8, 8], strides = [1, 1]} : vector<16x8xf32> to vector<8x8xf32>
    %cst_218 = arith.constant dense<0.000000e+00> : vector<8x8xf32>
    %383 = tpu.matmul %381, %382, %cst_218 {dimension_numbers = #tpu.dot_dimension_numbers<[1], [1], [0], [0], [0, 0, 1, 0], [], []>} : vector<8x8xf32>, vector<8x8xf32>, vector<8x8xf32> -> vector<8x8xf32>
    %384 = tpu.concatenate %374, %377, %380, %383 in 0 : vector<8x8xf32>, vector<8x8xf32>, vector<8x8xf32>, vector<8x8xf32> -> vector<32x8xf32>
    %cst_219 = arith.constant 0.353553385 : f32
    %385 = vector.broadcast %cst_219 : f32 to vector<32x8xf32>
    %386 = arith.mulf %384, %385 : vector<32x8xf32>
    %c1_220 = arith.constant 1 : index
    %c0_221 = arith.constant 0 : index
    %387 = vector.load %arg2[%c1_220, %c0_221] : memref<2x8xf32, #tpu.memory_space<vmem>>, vector<1x8xf32>
    %388 = vector.broadcast %387 : vector<1x8xf32> to vector<32x8xf32>
    %389 = arith.addf %386, %388 : vector<32x8xf32>
    %cst_222 = arith.constant dense<0xFF800000> : vector<32xf32>
    %390 = vector.multi_reduction <maximumf>, %389, %cst_222 [1] : vector<32x8xf32> to vector<32xf32>
    %391 = vector.shape_cast %390 : vector<32xf32> to vector<32x1xf32>
    %392 = vector.broadcast %391 : vector<32x1xf32> to vector<32x8xf32>
    %393 = arith.subf %389, %392 : vector<32x8xf32>
    %394 = math.exp %393 : vector<32x8xf32>
    %cst_223 = arith.constant dense<0.000000e+00> : vector<32xf32>
    %395 = vector.multi_reduction <add>, %394, %cst_223 [1] : vector<32x8xf32> to vector<32xf32>
    %396 = vector.shape_cast %395 : vector<32xf32> to vector<32x1xf32>
    %397 = vector.broadcast %396 : vector<32x1xf32> to vector<32x8xf32>
    %398 = arith.divf %394, %397 : vector<32x8xf32>
    %cst_224 = arith.constant 0.000000e+00 : f32
    %399 = vector.broadcast %cst_224 : f32 to vector<8x32xf32>
    %400 = vector.extract_strided_slice %398 {offsets = [0, 0], sizes = [8, 8], strides = [1, 1]} : vector<32x8xf32> to vector<8x8xf32>
    %401 = vector.extract_strided_slice %274 {offsets = [8, 0], sizes = [8, 8], strides = [1, 1]} : vector<16x8xf32> to vector<8x8xf32>
    %cst_225 = arith.constant dense<0.000000e+00> : vector<8x8xf32>
    %402 = tpu.matmul %400, %401, %cst_225 {dimension_numbers = #tpu.dot_dimension_numbers<[1], [0], [0], [1], [0, 0, 1, 1], [], []>} : vector<8x8xf32>, vector<8x8xf32>, vector<8x8xf32> -> vector<8x8xf32>
    %c216_226 = arith.constant 216 : index
    %c0_227 = arith.constant 0 : index
    %403 = vector.load %arg3[%c216_226, %c0_227] : memref<344x128xf32, #tpu.memory_space<vmem>>, vector<8x32xf32>
    %cst_228 = arith.constant dense<0.000000e+00> : vector<8x32xf32>
    %404 = tpu.matmul %402, %403, %cst_228 {dimension_numbers = #tpu.dot_dimension_numbers<[1], [0], [0], [1], [0, 0, 1, 1], [], []>} : vector<8x8xf32>, vector<8x32xf32>, vector<8x32xf32> -> vector<8x32xf32>
    %405 = arith.addf %399, %404 : vector<8x32xf32>
    %406 = vector.extract_strided_slice %398 {offsets = [8, 0], sizes = [8, 8], strides = [1, 1]} : vector<32x8xf32> to vector<8x8xf32>
    %407 = vector.extract_strided_slice %289 {offsets = [8, 0], sizes = [8, 8], strides = [1, 1]} : vector<16x8xf32> to vector<8x8xf32>
    %cst_229 = arith.constant dense<0.000000e+00> : vector<8x8xf32>
    %408 = tpu.matmul %406, %407, %cst_229 {dimension_numbers = #tpu.dot_dimension_numbers<[1], [0], [0], [1], [0, 0, 1, 1], [], []>} : vector<8x8xf32>, vector<8x8xf32>, vector<8x8xf32> -> vector<8x8xf32>
    %c224_230 = arith.constant 224 : index
    %c0_231 = arith.constant 0 : index
    %409 = vector.load %arg3[%c224_230, %c0_231] : memref<344x128xf32, #tpu.memory_space<vmem>>, vector<8x32xf32>
    %cst_232 = arith.constant dense<0.000000e+00> : vector<8x32xf32>
    %410 = tpu.matmul %408, %409, %cst_232 {dimension_numbers = #tpu.dot_dimension_numbers<[1], [0], [0], [1], [0, 0, 1, 1], [], []>} : vector<8x8xf32>, vector<8x32xf32>, vector<8x32xf32> -> vector<8x32xf32>
    %411 = arith.addf %405, %410 : vector<8x32xf32>
    %412 = vector.extract_strided_slice %398 {offsets = [16, 0], sizes = [8, 8], strides = [1, 1]} : vector<32x8xf32> to vector<8x8xf32>
    %413 = vector.extract_strided_slice %304 {offsets = [8, 0], sizes = [8, 8], strides = [1, 1]} : vector<16x8xf32> to vector<8x8xf32>
    %cst_233 = arith.constant dense<0.000000e+00> : vector<8x8xf32>
    %414 = tpu.matmul %412, %413, %cst_233 {dimension_numbers = #tpu.dot_dimension_numbers<[1], [0], [0], [1], [0, 0, 1, 1], [], []>} : vector<8x8xf32>, vector<8x8xf32>, vector<8x8xf32> -> vector<8x8xf32>
    %c232_234 = arith.constant 232 : index
    %c0_235 = arith.constant 0 : index
    %415 = vector.load %arg3[%c232_234, %c0_235] : memref<344x128xf32, #tpu.memory_space<vmem>>, vector<8x32xf32>
    %cst_236 = arith.constant dense<0.000000e+00> : vector<8x32xf32>
    %416 = tpu.matmul %414, %415, %cst_236 {dimension_numbers = #tpu.dot_dimension_numbers<[1], [0], [0], [1], [0, 0, 1, 1], [], []>} : vector<8x8xf32>, vector<8x32xf32>, vector<8x32xf32> -> vector<8x32xf32>
    %417 = arith.addf %411, %416 : vector<8x32xf32>
    %418 = vector.extract_strided_slice %398 {offsets = [24, 0], sizes = [8, 8], strides = [1, 1]} : vector<32x8xf32> to vector<8x8xf32>
    %419 = vector.extract_strided_slice %319 {offsets = [8, 0], sizes = [8, 8], strides = [1, 1]} : vector<16x8xf32> to vector<8x8xf32>
    %cst_237 = arith.constant dense<0.000000e+00> : vector<8x8xf32>
    %420 = tpu.matmul %418, %419, %cst_237 {dimension_numbers = #tpu.dot_dimension_numbers<[1], [0], [0], [1], [0, 0, 1, 1], [], []>} : vector<8x8xf32>, vector<8x8xf32>, vector<8x8xf32> -> vector<8x8xf32>
    %c240_238 = arith.constant 240 : index
    %c0_239 = arith.constant 0 : index
    %421 = vector.load %arg3[%c240_238, %c0_239] : memref<344x128xf32, #tpu.memory_space<vmem>>, vector<8x32xf32>
    %cst_240 = arith.constant dense<0.000000e+00> : vector<8x32xf32>
    %422 = tpu.matmul %420, %421, %cst_240 {dimension_numbers = #tpu.dot_dimension_numbers<[1], [0], [0], [1], [0, 0, 1, 1], [], []>} : vector<8x8xf32>, vector<8x32xf32>, vector<8x32xf32> -> vector<8x32xf32>
    %423 = arith.addf %417, %422 : vector<8x32xf32>
    %424 = tpu.concatenate %371, %423 in 0 : vector<8x32xf32>, vector<8x32xf32> -> vector<16x32xf32>
    %c11 = arith.constant 11 : index
    %c0_241 = arith.constant 0 : index
    %425 = vector.load %arg3[%c11, %c0_241] : memref<344x128xf32, #tpu.memory_space<vmem>>, vector<1x32xf32>
    %426 = vector.broadcast %425 : vector<1x32xf32> to vector<16x32xf32>
    %427 = arith.addf %424, %426 : vector<16x32xf32>
    %428 = arith.addf %427, %259 : vector<16x32xf32>
    %c12 = arith.constant 12 : index
    %c0_242 = arith.constant 0 : index
    %429 = vector.load %arg3[%c12, %c0_242] : memref<344x128xf32, #tpu.memory_space<vmem>>, vector<1x32xf32>
    %c13 = arith.constant 13 : index
    %c0_243 = arith.constant 0 : index
    %430 = vector.load %arg3[%c13, %c0_243] : memref<344x128xf32, #tpu.memory_space<vmem>>, vector<1x32xf32>
    %cst_244 = arith.constant dense<0.000000e+00> : vector<16xf32>
    %431 = vector.multi_reduction <add>, %428, %cst_244 [1] : vector<16x32xf32> to vector<16xf32>
    %432 = vector.shape_cast %431 : vector<16xf32> to vector<16x1xf32>
    %cst_245 = arith.constant 3.200000e+01 : f32
    %433 = vector.broadcast %cst_245 : f32 to vector<16x1xf32>
    %434 = arith.divf %432, %433 : vector<16x1xf32>
    %435 = vector.broadcast %434 : vector<16x1xf32> to vector<16x32xf32>
    %436 = arith.subf %428, %435 : vector<16x32xf32>
    %437 = arith.mulf %436, %436 : vector<16x32xf32>
    %cst_246 = arith.constant dense<0.000000e+00> : vector<16xf32>
    %438 = vector.multi_reduction <add>, %437, %cst_246 [1] : vector<16x32xf32> to vector<16xf32>
    %439 = vector.shape_cast %438 : vector<16xf32> to vector<16x1xf32>
    %cst_247 = arith.constant 3.200000e+01 : f32
    %440 = vector.broadcast %cst_247 : f32 to vector<16x1xf32>
    %441 = arith.divf %439, %440 : vector<16x1xf32>
    %cst_248 = arith.constant 9.99999996E-13 : f32
    %442 = vector.broadcast %cst_248 : f32 to vector<16x1xf32>
    %443 = arith.addf %441, %442 : vector<16x1xf32>
    %444 = math.rsqrt %443 : vector<16x1xf32>
    %445 = vector.broadcast %444 : vector<16x1xf32> to vector<16x32xf32>
    %446 = arith.mulf %436, %445 : vector<16x32xf32>
    %447 = vector.broadcast %429 : vector<1x32xf32> to vector<16x32xf32>
    %448 = arith.mulf %446, %447 : vector<16x32xf32>
    %449 = vector.broadcast %430 : vector<1x32xf32> to vector<16x32xf32>
    %450 = arith.addf %448, %449 : vector<16x32xf32>
    %c248 = arith.constant 248 : index
    %c0_249 = arith.constant 0 : index
    %451 = vector.load %arg3[%c248, %c0_249] : memref<344x128xf32, #tpu.memory_space<vmem>>, vector<32x64xf32>
    %c280 = arith.constant 280 : index
    %c0_250 = arith.constant 0 : index
    %452 = vector.load %arg3[%c280, %c0_250] : memref<344x128xf32, #tpu.memory_space<vmem>>, vector<64x32xf32>
    %cst_251 = arith.constant dense<0.000000e+00> : vector<16x64xf32>
    %453 = tpu.matmul %450, %451, %cst_251 {dimension_numbers = #tpu.dot_dimension_numbers<[1], [0], [0], [1], [0, 0, 1, 1], [], []>} : vector<16x32xf32>, vector<32x64xf32>, vector<16x64xf32> -> vector<16x64xf32>
    %c14 = arith.constant 14 : index
    %c0_252 = arith.constant 0 : index
    %454 = vector.load %arg3[%c14, %c0_252] : memref<344x128xf32, #tpu.memory_space<vmem>>, vector<1x64xf32>
    %455 = vector.broadcast %454 : vector<1x64xf32> to vector<16x64xf32>
    %456 = arith.addf %453, %455 : vector<16x64xf32>
    %457 = arith.mulf %456, %456 : vector<16x64xf32>
    %458 = arith.mulf %456, %457 : vector<16x64xf32>
    %cst_253 = arith.constant 4.471500e-02 : f32
    %459 = vector.broadcast %cst_253 : f32 to vector<16x64xf32>
    %460 = arith.mulf %459, %458 : vector<16x64xf32>
    %461 = arith.addf %456, %460 : vector<16x64xf32>
    %cst_254 = arith.constant 0.797884583 : f32
    %462 = vector.broadcast %cst_254 : f32 to vector<16x64xf32>
    %463 = arith.mulf %462, %461 : vector<16x64xf32>
    %464 = math.tanh %463 : vector<16x64xf32>
    %cst_255 = arith.constant 1.000000e+00 : f32
    %465 = vector.broadcast %cst_255 : f32 to vector<16x64xf32>
    %466 = arith.addf %465, %464 : vector<16x64xf32>
    %cst_256 = arith.constant 5.000000e-01 : f32
    %467 = vector.broadcast %cst_256 : f32 to vector<16x64xf32>
    %468 = arith.mulf %467, %466 : vector<16x64xf32>
    %469 = arith.mulf %456, %468 : vector<16x64xf32>
    %cst_257 = arith.constant dense<0.000000e+00> : vector<16x32xf32>
    %470 = tpu.matmul %469, %452, %cst_257 {dimension_numbers = #tpu.dot_dimension_numbers<[1], [0], [0], [1], [0, 0, 1, 1], [], []>} : vector<16x64xf32>, vector<64x32xf32>, vector<16x32xf32> -> vector<16x32xf32>
    %c15 = arith.constant 15 : index
    %c0_258 = arith.constant 0 : index
    %471 = vector.load %arg3[%c15, %c0_258] : memref<344x128xf32, #tpu.memory_space<vmem>>, vector<1x32xf32>
    %472 = vector.broadcast %471 : vector<1x32xf32> to vector<16x32xf32>
    %473 = arith.addf %470, %472 : vector<16x32xf32>
    %474 = arith.addf %473, %450 : vector<16x32xf32>
    %c16_259 = arith.constant 16 : index
    %c0_260 = arith.constant 0 : index
    %475 = vector.load %arg3[%c16_259, %c0_260] : memref<344x128xf32, #tpu.memory_space<vmem>>, vector<1x32xf32>
    %c17 = arith.constant 17 : index
    %c0_261 = arith.constant 0 : index
    %476 = vector.load %arg3[%c17, %c0_261] : memref<344x128xf32, #tpu.memory_space<vmem>>, vector<1x32xf32>
    %cst_262 = arith.constant dense<0.000000e+00> : vector<16xf32>
    %477 = vector.multi_reduction <add>, %474, %cst_262 [1] : vector<16x32xf32> to vector<16xf32>
    %478 = vector.shape_cast %477 : vector<16xf32> to vector<16x1xf32>
    %cst_263 = arith.constant 3.200000e+01 : f32
    %479 = vector.broadcast %cst_263 : f32 to vector<16x1xf32>
    %480 = arith.divf %478, %479 : vector<16x1xf32>
    %481 = vector.broadcast %480 : vector<16x1xf32> to vector<16x32xf32>
    %482 = arith.subf %474, %481 : vector<16x32xf32>
    %483 = arith.mulf %482, %482 : vector<16x32xf32>
    %cst_264 = arith.constant dense<0.000000e+00> : vector<16xf32>
    %484 = vector.multi_reduction <add>, %483, %cst_264 [1] : vector<16x32xf32> to vector<16xf32>
    %485 = vector.shape_cast %484 : vector<16xf32> to vector<16x1xf32>
    %cst_265 = arith.constant 3.200000e+01 : f32
    %486 = vector.broadcast %cst_265 : f32 to vector<16x1xf32>
    %487 = arith.divf %485, %486 : vector<16x1xf32>
    %cst_266 = arith.constant 9.99999996E-13 : f32
    %488 = vector.broadcast %cst_266 : f32 to vector<16x1xf32>
    %489 = arith.addf %487, %488 : vector<16x1xf32>
    %490 = math.rsqrt %489 : vector<16x1xf32>
    %491 = vector.broadcast %490 : vector<16x1xf32> to vector<16x32xf32>
    %492 = arith.mulf %482, %491 : vector<16x32xf32>
    %493 = vector.broadcast %475 : vector<1x32xf32> to vector<16x32xf32>
    %494 = arith.mulf %492, %493 : vector<16x32xf32>
    %495 = vector.broadcast %476 : vector<1x32xf32> to vector<16x32xf32>
    %496 = arith.addf %494, %495 : vector<16x32xf32>
    %c0_267 = arith.constant 0 : index
    %c0_268 = arith.constant 0 : index
    %497 = vector.load %arg4[%c0_267, %c0_268] : memref<16x32xf32, #tpu.memory_space<vmem>>, vector<16x32xf32>
    tpu.vector_store %arg4[%c0_267, %c0_268], %496 {strides = array<i32>} : memref<16x32xf32, #tpu.memory_space<vmem>>, vector<16x32xf32>,
    return
  }
  func.func @transform_0(%arg0: i32) -> (i32, i32) {
    %c0_i32 = arith.constant 0 : i32
    %c0_i32_0 = arith.constant 0 : i32
    %c0_i32_1 = arith.constant 0 : i32
    return %c0_i32, %c0_i32_0 : i32, i32
  }
  func.func @transform_1(%arg0: i32) -> (i32, i32) {
    %c0_i32 = arith.constant 0 : i32
    %c0_i32_0 = arith.constant 0 : i32
    %c0_i32_1 = arith.constant 0 : i32
    return %c0_i32, %c0_i32_0 : i32, i32
  }
  func.func @transform_2(%arg0: i32) -> (i32, i32) {
    %c0_i32 = arith.constant 0 : i32
    %c0_i32_0 = arith.constant 0 : i32
    %c0_i32_1 = arith.constant 0 : i32
    return %c0_i32, %c0_i32_0 : i32, i32
  }
  func.func @transform_3(%arg0: i32) -> (i32, i32) {
    %c0_i32 = arith.constant 0 : i32
    %c0_i32_0 = arith.constant 0 : i32
    %c0_i32_1 = arith.constant 0 : i32
    return %c0_i32, %c0_i32_0 : i32, i32
  }
}

</mosaic_0001>

<bundles_post_ra>
// kernel: dna_embedding_forward.1
= control target key start
LH: loop header
LB: loop body
LE: loop exit
PB: predicated region body
PF: predicated region fallthrough
CT: control target
= control target key end

     0   :  { %8 = vsyncpa [#allocation3], 0  ;;  %s8757_s0 = inlined_call_operand.vmem [shape: f32[16,32], index: 0, kind: input, shape index: {}]   ;;  %s8758_s1 = inlined_call_operand.vmem [shape: f32[2,8], index: 1, kind: input, shape index: {}]   ;;  %s8759_s2 = inlined_call_operand.hbm [shape: f32[344,128], index: 2, kind: input, shape index: {}]   ;;  %s8760_s3 = inlined_call_operand.hbm [shape: f32[16,32], index: 3, kind: output, shape index: {}]  }
   0x1   :  { %9 = vsyncpa [#allocation4], 0  ;;  %s7767_s12 = smov [#allocation2]  }
   0x2   :  { %s19_s13 = sshll.u32 %s7767_s12, 4  ;;  %s20_s13 = int_to_ptr.vmem [resolvable:$true] %s19_s13 }
   0x3   :  { %s7731_s14 = scalar_lea.vmem %s20_s13, 5504  ;;  %p7736_p1 = scmp.lt.s32.totalorder %s20_s13, %s20_s13 }
   0x4   :  { %p7732_p0 = scmp.ne.s32.totalorder %s20_s13, %s7731_s14  ;;  %p7737_p2 = scmp.lt.s32.totalorder %s7731_s14, %s7731_s14 }
   0x6   :  { %p7738_p3 = por %p7737_p2, %p7736_p1 }
   0x8   :  { %p7739_p4 = pnand %p7738_p3, %p7732_p0 }
   0xa   :  { %7742 = shalt.err (!%p7739_p4)
}
   0xb   :  { %s7768_s15 = smov 128   ;;  %s7769_s16 = smov 8  }
   0xc   :  { %25 = dma.hbm_to_vmem [thread:$0]  %s8759_s2, 5504, %s20_s13, [#allocation3], %s7768_s15, %s7768_s15, %s7769_s16  }
   0xd   :  { %7763 = dma.done.wait [#allocation3], 5504  }
   0xe   :  { %7764 = vsyncadd [#allocation3], 4294961792  ;;  %vm33_vm0 = vcmask 261120   ;;  %v7813_v0 = vld [vmem:[%s8757_s0] sm:$0xff]  ;;  %v7818_v1 = vld [vmem:[%s8757_s0 + $0x8] sm:$0xff]  ;;  %s7770_s23 = smov 64  }
   0xf   :  { %v7820_v2 = vld [vmem:[#allocation2 + $0x28] sm:$0xff]  ;;  %v34_v3 = vsel %vm33_vm0, %v7813_v0, 0.0  ;;  %v7826_v4 = vld [vmem:[#allocation2 + $0x30] sm:$0xff]  ;;  %v37_v5 = vsel %vm33_vm0, %v7818_v1, 0.0  ;;  %s7771_s0 = smov 96   ;;  %v7835_v6 = vld [vmem:[#allocation2 + $0x20] sm:$0xff] }
  0x10   :  { %262 = vrot.lane.b32.xlu1 %v7820_v2, %s7770_s23  ;;  %35 = vadd.xlane.f32.xlu0 %v34_v3  ;;  %v7839_v7 = vld [vmem:[#allocation2 + $0x18] sm:$0xff]  ;;  %s7772_s2 = smov 120   ;;  %s7773_s24 = smov 112   ;;  %v7880_v8 = vld [vmem:[#allocation2 + $0x2] ss:$0 sm:$0xff]  ;;  %vm7782_vm1 = vmmov 0  }
  0x11   :  { %7048 = vmatprep.subr.mxu0 %v7826_v4  ;;  %s7774_s25 = smov 48   ;;  %s7775_s26 = smov 56   ;;  %v6636_v45 = vld [vmem:[#allocation2] ss:$0 sm:$0xff]  ;;  %v6637_v47 = vld [vmem:[#allocation2 + $0x1] ss:$0 sm:$0xff] }
  0x12   :  { %7049 = vmatpush3.msra.mxu0 %v7826_v4  ;;  %s7776_s27 = smov 80   ;;  %s7777_s28 = smov 104   ;;  %vm1158_vm2 = vcmask 64512   ;;  %vm3227_vm3 = vcmask 523264  }
  0x13   :  { %7050 = vmatprep.subr.mxu0 %v7820_v2  ;;  %s7778_s29 = smov 40   ;;  %s7779_s30 = smov 88  }
  0x14   :  { %173 = vrot.lane.b32.xlu1 %v7826_v4, %s7771_s0  ;;  %7051 = vmatpush3.msra.mxu0 %v7820_v2  ;;  %s7780_s4 = smov 72  }
  0x15   :  { %38 = vadd.xlane.f32.xlu0 %v37_v5  ;;  %7052 = vmatprep.subr.mxu0 %v7835_v6 }
  0x16   :  { %7053 = vmatpush3.msra.mxu0 %v7835_v6 }
  0x17   :  { %7054 = vmatprep.subr.mxu0 %v7839_v7 }
  0x18   :  { %260 = vrot.lane.b32.xlu1 %v7835_v6, %s7770_s23  ;;  %7055 = vmatpush3.msra.mxu0 %v7839_v7 }
  0x1c   :  { %258 = vrot.lane.b32.xlu1 %v7839_v7, %s7770_s23 }
  0x2b   :  { %264 = vrot.lane.b32.xlu0 %v7826_v4, %s7770_s23 }
  0x2f   :  { %171 = vrot.lane.b32.xlu0 %v7820_v2, %s7771_s0 }
  0x33   :  { %169 = vrot.lane.b32.xlu0 %v7835_v6, %s7771_s0 }
  0x37   :  { %167 = vrot.lane.b32.xlu0 %v7839_v7, %s7771_s0 }
  0x3b   :  { %354 = vrot.lane.b32.xlu0 %v7826_v4, %s7772_s2 }
  0x3f   :  { %352 = vrot.lane.b32.xlu0 %v7820_v2, %s7772_s2 }
  0x43   :  { %350 = vrot.lane.b32.xlu0 %v7835_v6, %s7772_s2 }
  0x47   :  { %624 = vrot.lane.b32.xlu0 %v7826_v4, %s7773_s24 }
  0x4b   :  { %620 = vrot.lane.b32.xlu0 %v7835_v6, %s7773_s24 }
  0x4f   :  { %804 = vrot.lane.b32.xlu0 %v7826_v4, %s7774_s25 }
  0x53   :  { %534 = vrot.lane.b32.xlu0 %v7826_v4, %s7775_s26 }
  0x57   :  { %532 = vrot.lane.b32.xlu0 %v7820_v2, %s7775_s26 }
  0x5b   :  { %530 = vrot.lane.b32.xlu0 %v7835_v6, %s7775_s26 }
  0x5f   :  { %528 = vrot.lane.b32.xlu0 %v7839_v7, %s7775_s26 }
  0x63   :  { %714 = vrot.lane.b32.xlu0 %v7826_v4, %s7776_s27 }
  0x67   :  { %712 = vrot.lane.b32.xlu0 %v7820_v2, %s7776_s27 }
  0x6b   :  { %180 = vrot.lane.b32.xlu0 %v7880_v8, %s7771_s0 }
  0x6f   :  { %708 = vrot.lane.b32.xlu0 %v7839_v7, %s7776_s27 }
  0x73   :  { %894 = vrot.lane.b32.xlu0 %v7826_v4, %s7777_s28 }
  0x77   :  { %892 = vrot.lane.b32.xlu0 %v7820_v2, %s7777_s28 }
  0x7b   :  { %888 = vrot.lane.b32.xlu0 %v7839_v7, %s7777_s28 }
  0x7f   :  { %1072 = vrot.lane.b32.xlu0 %v7820_v2, %s7778_s29 }
  0x82   :  { %v7894_v9 = vpop.permute.xlu1 %262 }
  0x83   :  { %1070 = vrot.lane.b32.xlu0 %v7835_v6, %s7778_s29 }
  0x86   :  { %v174_v10 = vpop.permute.xlu1 %173 }
  0x87   :  { %7059 = vmatprep.subr.mxu1 %v174_v10  ;;  %1068 = vrot.lane.b32.xlu0 %v7839_v7, %s7778_s29 }
  0x88   :  { %7060 = vmatpush3.msra.mxu1 %v174_v10 }
  0x8a   :  { %v261_v28 = vpop.permute.xlu1 %260 }
  0x8b   :  { %900 = vrot.lane.b32.xlu0 %v7880_v8, %s7777_s28 }
  0x8e   :  { %v259_v30 = vpop.permute.xlu1 %258 }
  0x99   :  { %v36_v11 = vpop.xlane.xlu0 %35 }
  0x9a   :  { %v41_v12 = vmul.f32 0.03125, %v36_v11 }
  0x9c   :  { %v7903_v13 = vsub.f32 %v7813_v0, %v41_v12 }
  0x9e   :  { %v39_v14 = vpop.xlane.xlu0 %38  ;;  %v45_v16 = vmul.f32 %v7903_v13, %v7903_v13 }
  0x9f   :  { %v42_v15 = vmul.f32 0.03125, %v39_v14 }
  0xa0   :  { %v47_v18 = vsel %vm33_vm0, %v45_v16, 0.0 }
  0xa1   :  { %v7908_v17 = vsub.f32 %v7818_v1, %v42_v15  ;;  %48 = vadd.xlane.f32.xlu1 %v47_v18 }
  0xa2   :  { %v7911_v19 = vpop.permute.xlu0 %264 }
  0xa3   :  { %v46_v20 = vmul.f32 %v7908_v17, %v7908_v17  ;;  %7070 = vmatprep.subr.mxu0 %v7911_v19 }
  0xa5   :  { %v50_v21 = vsel %vm33_vm0, %v46_v20, 0.0 }
  0xa6   :  { %51 = vadd.xlane.f32.xlu1 %v50_v21  ;;  %v172_v22 = vpop.permute.xlu0 %171 }
  0xa7   :  { %7061 = vmatprep.subr.mxu1 %v172_v22 }
  0xa8   :  { %7062 = vmatpush3.msra.mxu1 %v172_v22 }
  0xaa   :  { %v170_v23 = vpop.permute.xlu0 %169 }
  0xab   :  { %7063 = vmatprep.subr.mxu1 %v170_v23 }
  0xac   :  { %7064 = vmatpush3.msra.mxu1 %v170_v23 }
  0xae   :  { %v168_v24 = vpop.permute.xlu0 %167 }
  0xaf   :  { %7065 = vmatprep.subr.mxu1 %v168_v24 }
  0xb0   :  { %7066 = vmatpush3.msra.mxu1 %v168_v24 }
  0xb2   :  { %v7917_v25 = vpop.permute.xlu0 %354 }
  0xb3   :  { %7081 = vmatprep.subr.mxu1 %v7917_v25 }
  0xb6   :  { %v353_v26 = vpop.permute.xlu0 %352 }
  0xb7   :  { %444 = vrot.lane.b32.xlu1 %v7826_v4, %s7779_s30 }
  0xba   :  { %v351_v27 = vpop.permute.xlu0 %350 }
  0xbb   :  { %442 = vrot.lane.b32.xlu1 %v7820_v2, %s7779_s30 }
  0xbe   :  { %v7964_v29 = vpop.permute.xlu0 %624 }
  0xbf   :  { %440 = vrot.lane.b32.xlu1 %v7835_v6, %s7779_s30 }
  0xc2   :  { %v7966_v31 = vpop.permute.xlu0 %620 }
  0xc3   :  { %438 = vrot.lane.b32.xlu1 %v7839_v7, %s7779_s30 }
  0xc6   :  { %v7968_v34 = vpop.permute.xlu0 %804 }
  0xc7   :  { %348 = vrot.lane.b32.xlu1 %v7839_v7, %s7772_s2 }
  0xca   :  { %v535_v40 = vpop.permute.xlu0 %534 }
  0xcb   :  { %622 = vrot.lane.b32.xlu1 %v7820_v2, %s7773_s24 }
  0xce   :  { %v533_v42 = vpop.permute.xlu0 %532 }
  0xcf   :  { %618 = vrot.lane.b32.xlu1 %v7839_v7, %s7773_s24 }
  0xd2   :  { %v531_v49 = vpop.permute.xlu0 %530 }
  0xd3   :  { %802 = vrot.lane.b32.xlu1 %v7820_v2, %s7774_s25 }
  0xd6   :  { %v529_v56 = vpop.permute.xlu0 %528 }
  0xd7   :  { %800 = vrot.lane.b32.xlu1 %v7835_v6, %s7774_s25 }
  0xda   :  { %v715_v59 = vpop.permute.xlu0 %714 }
  0xdb   :  { %798 = vrot.lane.b32.xlu1 %v7839_v7, %s7774_s25 }
  0xde   :  { %v713_v62 = vpop.permute.xlu0 %712 }
  0xdf   :  { %984 = vrot.lane.b32.xlu1 %v7826_v4, %s7780_s4 }
  0xe2   :  { %v8000_v0 = vpop.permute.xlu0 %180 }
  0xe3   :  { %982 = vrot.lane.b32.xlu1 %v7820_v2, %s7780_s4 }
  0xe6   :  { %v709_v3 = vpop.permute.xlu0 %708 }
  0xe7   :  { %980 = vrot.lane.b32.xlu1 %v7835_v6, %s7780_s4 }
  0xea   :  { %v895_v5 = vpop.permute.xlu0 %894 }
  0xeb   :  { %978 = vrot.lane.b32.xlu1 %v7839_v7, %s7780_s4 }
  0xef   :  { %710 = vrot.lane.b32.xlu1 %v7835_v6, %s7776_s27 }
  0xf3   :  { %450 = vrot.lane.b32.xlu1 %v7880_v8, %s7779_s30 }
  0xf7   :  { %360 = vrot.lane.b32.xlu1 %v7880_v8, %s7772_s2 }
  0xfb   :  { %890 = vrot.lane.b32.xlu1 %v7835_v6, %s7777_s28 }
  0xff   :  { %1074 = vrot.lane.b32.xlu1 %v7826_v4, %s7778_s29 }
 0x103   :  { %720 = vrot.lane.b32.xlu1 %v7880_v8, %s7776_s27 }
 0x107   :  { %630 = vrot.lane.b32.xlu1 %v7880_v8, %s7773_s24 }
 0x10b   :  { %990 = vrot.lane.b32.xlu1 %v7880_v8, %s7780_s4 }
 0x12a   :  { %v49_v32 = vpop.xlane.xlu1 %48 }
 0x12b   :  { %v53_v33 = vmul.f32 0.03125, %v49_v32 }
 0x12d   :  { %v55_v35 = vadd.f32 1e-12, %v53_v33 }
 0x12f   :  { %v52_v36 = vpop.xlane.xlu1 %51  ;;  %7629 = vrsqrt.f32 %v55_v35 }
 0x130   :  { %v54_v37 = vmul.f32 0.03125, %v52_v36 }
 0x132   :  { %v56_v38 = vadd.f32 1e-12, %v54_v37 }
 0x133   :  { %v445_v39 = vpop.permute.xlu1 %444 }
 0x134   :  { %7631 = vrsqrt.f32 %v56_v38 }
 0x137   :  { %v443_v41 = vpop.permute.xlu1 %442 }
 0x13b   :  { %v441_v43 = vpop.permute.xlu1 %440 }
 0x13c   :  { %v7630_v44 = vpop.eup %7629 }
 0x13d   :  { %v59_v46 = vmul.f32 %v7630_v44, %v7903_v13 }
 0x13f   :  { %v439_v48 = vpop.permute.xlu1 %438  ;;  %v65_v50 = vmul.f32 %v6636_v45, %v59_v46 }
 0x141   :  { %v7632_v51 = vpop.eup %7631  ;;  %v7971_v52 = vadd.f32 %v6637_v47, %v65_v50 }
 0x142   :  { %v60_v53 = vmul.f32 %v7632_v51, %v7908_v17 }
 0x143   :  { %v349_v54 = vpop.permute.xlu1 %348  ;;  %7056 = vmatprep.mubr.msk.f32.mxu0 %vm33_vm0, %v7971_v52  ;;  %7067 = vmatprep.mubr.msk.f32.mxu1 %vm33_vm0, %v7971_v52 }
 0x144   :  { %v66_v55 = vmul.f32 %v6636_v45, %v60_v53 }
 0x146   :  { %v7978_v57 = vadd.f32 %v6637_v47, %v66_v55 }
 0x147   :  { %v623_v58 = vpop.permute.xlu1 %622 }
 0x148   :  { %7057 = vmatmul.mubr.msk.f32.vlgmr.msra.gmra.mxu0 %vm33_vm0, %v7978_v57  ;;  %7068 = vmatmul.mubr.msk.f32.vlgmr.msra.gmra.mxu1 %vm33_vm0, %v7978_v57 }
 0x149   :  { %7071 = vmatpush3.msra.mxu0 %v7911_v19  ;;  %7082 = vmatpush3.msra.mxu1 %v7917_v25  ;;  %v7781_v19 = vmov 0.0  }
 0x14a   :  { %7072 = vmatprep.subr.mxu0 %v7894_v9  ;;  %7078 = vmatprep.mubr.msk.f32.mxu0 %vm33_vm0, %v7971_v52 }
 0x14b   :  { %7083 = vmatprep.subr.mxu1 %v353_v26  ;;  %7089 = vmatprep.mubr.msk.f32.mxu1 %vm33_vm0, %v7971_v52  ;;  %v619_v60 = vpop.permute.xlu1 %618 }
 0x14c   :  { %7073 = vmatpush3.msra.mxu0 %v7894_v9  ;;  %7084 = vmatpush3.msra.mxu1 %v353_v26  ;;  %v893_v9 = vpop.permute.xlu0 %892 }
 0x14d   :  { %7074 = vmatprep.subr.mxu0 %v261_v28  ;;  %7085 = vmatprep.subr.mxu1 %v351_v27 }
 0x14e   :  { %7075 = vmatpush3.msra.mxu0 %v261_v28  ;;  %7086 = vmatpush3.msra.mxu1 %v351_v27 }
 0x14f   :  { %7076 = vmatprep.subr.mxu0 %v259_v30  ;;  %7087 = vmatprep.subr.mxu1 %v349_v54  ;;  %v803_v61 = vpop.permute.xlu1 %802 }
 0x150   :  { %7077 = vmatpush3.msra.mxu0 %v259_v30  ;;  %7088 = vmatpush3.msra.mxu1 %v349_v54  ;;  %v889_v11 = vpop.permute.xlu0 %888 }
 0x151   :  { %7079 = vmatmul.mubr.msk.f32.vlgmr.msra.gmra.mxu0 %vm33_vm0, %v7978_v57  ;;  %7090 = vmatmul.mubr.msk.f32.vlgmr.msra.gmra.mxu1 %vm33_vm0, %v7978_v57 }
 0x152   :  { %7092 = vmatprep.subr.mxu0 %v445_v39  ;;  %7103 = vmatprep.subr.mxu1 %v535_v40 }
 0x153   :  { %7093 = vmatpush3.msra.mxu0 %v445_v39  ;;  %7100 = vmatprep.mubr.msk.f32.mxu0 %vm33_vm0, %v7971_v52  ;;  %v801_v63 = vpop.permute.xlu1 %800 }
 0x154   :  { %7104 = vmatpush3.msra.mxu1 %v535_v40  ;;  %7111 = vmatprep.mubr.msk.f32.mxu1 %vm33_vm0, %v7971_v52  ;;  %v1073_v14 = vpop.permute.xlu0 %1072 }
 0x155   :  { %7094 = vmatprep.subr.mxu0 %v443_v41  ;;  %7105 = vmatprep.subr.mxu1 %v533_v42 }
 0x156   :  { %7095 = vmatpush3.msra.mxu0 %v443_v41  ;;  %7106 = vmatpush3.msra.mxu1 %v533_v42 }
 0x157   :  { %7096 = vmatprep.subr.mxu0 %v441_v43  ;;  %7107 = vmatprep.subr.mxu1 %v531_v49  ;;  %v799_v1 = vpop.permute.xlu1 %798 }
 0x158   :  { %7097 = vmatpush3.msra.mxu0 %v441_v43  ;;  %7108 = vmatpush3.msra.mxu1 %v531_v49  ;;  %v1071_v16 = vpop.permute.xlu0 %1070 }
 0x159   :  { %7098 = vmatprep.subr.mxu0 %v439_v48  ;;  %7109 = vmatprep.subr.mxu1 %v529_v56 }
 0x15a   :  { %7099 = vmatpush3.msra.mxu0 %v439_v48  ;;  %7110 = vmatpush3.msra.mxu1 %v529_v56 }
 0x15b   :  { %7101 = vmatmul.mubr.msk.f32.vlgmr.msra.gmra.mxu0 %vm33_vm0, %v7978_v57  ;;  %7112 = vmatmul.mubr.msk.f32.vlgmr.msra.gmra.mxu1 %vm33_vm0, %v7978_v57  ;;  %v985_v2 = vpop.permute.xlu1 %984 }
 0x15c   :  { %7114 = vmatprep.subr.mxu0 %v7964_v29  ;;  %7122 = vmatprep.mubr.msk.f32.mxu0 %vm33_vm0, %v7971_v52  ;;  %v1069_v18 = vpop.permute.xlu0 %1068 }
 0x15d   :  { %7115 = vmatpush3.msra.mxu0 %v7964_v29  ;;  %7133 = vmatprep.mubr.msk.f32.mxu1 %vm33_vm0, %v7971_v52 }
 0x15e   :  { %7116 = vmatprep.subr.mxu0 %v623_v58  ;;  %7125 = vmatprep.subr.mxu1 %v715_v59 }
 0x15f   :  { %7117 = vmatpush3.msra.mxu0 %v623_v58  ;;  %v983_v4 = vpop.permute.xlu1 %982  ;;  %7126 = vmatpush3.msra.mxu1 %v715_v59 }
 0x160   :  { %7118 = vmatprep.subr.mxu0 %v7966_v31  ;;  %7127 = vmatprep.subr.mxu1 %v713_v62  ;;  %v8104_v51 = vpop.permute.xlu0 %900 }
 0x161   :  { %7119 = vmatpush3.msra.mxu0 %v7966_v31  ;;  %7128 = vmatpush3.msra.mxu1 %v713_v62  ;;  %v6671_v62 = vld [vmem:[%s8758_s1] ss:$0 sm:$0xff] }
 0x162   :  { %7120 = vmatprep.subr.mxu0 %v619_v60 }
 0x163   :  { %7121 = vmatpush3.msra.mxu0 %v619_v60  ;;  %v981_v6 = vpop.permute.xlu1 %980 }
 0x164   :  { %7123 = vmatmul.mubr.msk.f32.vlgmr.msra.gmra.mxu0 %vm33_vm0, %v7978_v57  ;;  %7136 = vmatprep.subr.mxu0 %v7968_v34 }
 0x165   :  { %7137 = vmatpush3.msra.mxu0 %v7968_v34  ;;  %7144 = vmatprep.mubr.msk.f32.mxu0 %vm33_vm0, %v7971_v52 }
 0x166   :  { %7138 = vmatprep.subr.mxu0 %v803_v61 }
 0x167   :  { %7139 = vmatpush3.msra.mxu0 %v803_v61  ;;  %v979_v7 = vpop.permute.xlu1 %978 }
 0x168   :  { %7140 = vmatprep.subr.mxu0 %v801_v63 }
 0x169   :  { %7141 = vmatpush3.msra.mxu0 %v801_v63 }
 0x16a   :  { %7142 = vmatprep.subr.mxu0 %v799_v1 }
 0x16b   :  { %7143 = vmatpush3.msra.mxu0 %v799_v1  ;;  %v711_v10 = vpop.permute.xlu1 %710 }
 0x16c   :  { %7145 = vmatmul.mubr.msk.f32.vlgmr.msra.gmra.mxu0 %vm33_vm0, %v7978_v57  ;;  %7158 = vmatprep.subr.mxu0 %v985_v2 }
 0x16d   :  { %7159 = vmatpush3.msra.mxu0 %v985_v2  ;;  %7166 = vmatprep.mubr.msk.f32.mxu0 %vm33_vm0, %v7971_v52 }
 0x16e   :  { %7160 = vmatprep.subr.mxu0 %v983_v4  ;;  %7129 = vmatprep.subr.mxu1 %v711_v10 }
 0x16f   :  { %7161 = vmatpush3.msra.mxu0 %v983_v4  ;;  %7130 = vmatpush3.msra.mxu1 %v711_v10  ;;  %v8024_v12 = vpop.permute.xlu1 %450 }
 0x170   :  { %7162 = vmatprep.subr.mxu0 %v981_v6  ;;  %7131 = vmatprep.subr.mxu1 %v709_v3 }
 0x171   :  { %7163 = vmatpush3.msra.mxu0 %v981_v6  ;;  %7132 = vmatpush3.msra.mxu1 %v709_v3 }
 0x172   :  { %7164 = vmatprep.subr.mxu0 %v979_v7  ;;  %7134 = vmatmul.mubr.msk.f32.vlgmr.msra.gmra.mxu1 %vm33_vm0, %v7978_v57 }
 0x173   :  { %7165 = vmatpush3.msra.mxu0 %v979_v7  ;;  %7155 = vmatprep.mubr.msk.f32.mxu1 %vm33_vm0, %v7971_v52  ;;  %v8030_v13 = vpop.permute.xlu1 %360 }
 0x174   :  { %7167 = vmatmul.mubr.msk.f32.vlgmr.msra.gmra.mxu0 %vm33_vm0, %v7978_v57  ;;  %7147 = vmatprep.subr.mxu1 %v895_v5 }
 0x175   :  { %7148 = vmatpush3.msra.mxu1 %v895_v5  ;;  %7180 = vmatprep.subr.mxu0 %v7781_v19 }
 0x176   :  { %7149 = vmatprep.subr.mxu1 %v893_v9  ;;  %7182 = vmatprep.mubr.msk.f32.mxu0 %vm7782_vm1, %v7781_v19 }
 0x177   :  { %v891_v15 = vpop.permute.xlu1 %890  ;;  %7150 = vmatpush3.msra.mxu1 %v893_v9 }
 0x178   :  { %7151 = vmatprep.subr.mxu1 %v891_v15 }
 0x179   :  { %7152 = vmatpush3.msra.mxu1 %v891_v15 }
 0x17a   :  { %7153 = vmatprep.subr.mxu1 %v889_v11 }
 0x17b   :  { %v1075_v17 = vpop.permute.xlu1 %1074  ;;  %7154 = vmatpush3.msra.mxu1 %v889_v11 }
 0x17c   :  { %7156 = vmatmul.mubr.msk.f32.vlgmr.msra.gmra.mxu1 %vm33_vm0, %v7978_v57  ;;  %7169 = vmatprep.subr.mxu1 %v1075_v17 }
 0x17d   :  { %7170 = vmatpush3.msra.mxu1 %v1075_v17  ;;  %7177 = vmatprep.mubr.msk.f32.mxu1 %vm33_vm0, %v7971_v52 }
 0x17e   :  { %7171 = vmatprep.subr.mxu1 %v1073_v14 }
 0x17f   :  { %7172 = vmatpush3.msra.mxu1 %v1073_v14  ;;  %v8074_v35 = vpop.permute.xlu1 %720 }
 0x180   :  { %7173 = vmatprep.subr.mxu1 %v1071_v16 }
 0x181   :  { %7174 = vmatpush3.msra.mxu1 %v1071_v16 }
 0x182   :  { %7175 = vmatprep.subr.mxu1 %v1069_v18 }
 0x183   :  { %7176 = vmatpush3.msra.mxu1 %v1069_v18  ;;  %v8082_v40 = vpop.permute.xlu1 %630 }
 0x184   :  { %7178 = vmatmul.mubr.msk.f32.vlgmr.msra.gmra.mxu1 %vm33_vm0, %v7978_v57  ;;  %7195 = vmatprep.subr.mxu1 %v7781_v19 }
 0x185   :  { %7197 = vmatprep.mubr.msk.f32.mxu1 %vm7782_vm1, %v7781_v19 }
 0x187   :  { %v8091_v46 = vpop.permute.xlu1 %990 }
 0x208   :  { %v8046_v20 = vpop.f32.mrf.mxu0  ;;  %v8048_v21 = vpop.f32.mrf.mxu1 }
 0x20a   :  { %v249_v22 = vpop.f32.mrf.mxu1  ;;  %v154_v23 = vpop.f32.mrf.mxu0 }
 0x20b   :  { %v250_v24 = vadd.f32 %v249_v22, %v8000_v0  ;;  %v155_v25 = vadd.f32 %v7880_v8, %v154_v23 }
 0x20d   :  { %7181 = vmatpush3.xpose.msk.msra.mxu0 %vm1158_vm2, %v250_v24 }
 0x20e   :  { %7185 = vmatprep.subr.mxu0 %v7781_v19 }
 0x210   :  { %7183 = vmatmul.mubr.msk.f32.vlgmr.msra.gmra.mxu0 %vm1158_vm2, %v155_v25 }
 0x211   :  { %7187 = vmatprep.mubr.msk.f32.mxu0 %vm7782_vm1, %v7781_v19  ;;  %v8057_v26 = vpop.f32.mrf.mxu0  ;;  %v8061_v28 = vpop.f32.mrf.mxu1 }
 0x213   :  { %v8059_v27 = vpop.f32.mrf.mxu0  ;;  %v429_v31 = vpop.f32.mrf.mxu1 }
 0x214   :  { %v430_v33 = vadd.f32 %v429_v31, %v8030_v13 }
 0x21b   :  { %v8063_v29 = vpop.f32.mrf.mxu0  ;;  %v8076_v36 = vpop.f32.mrf.mxu1 }
 0x21d   :  { %v519_v30 = vpop.f32.mrf.mxu0  ;;  %v8080_v39 = vpop.f32.mrf.mxu1 }
 0x21e   :  { %v520_v32 = vadd.f32 %v519_v30, %v8024_v12 }
 0x220   :  { %7186 = vmatpush3.xpose.msk.msra.mxu0 %vm1158_vm2, %v520_v32 }
 0x221   :  { %7190 = vmatprep.subr.mxu0 %v7781_v19 }
 0x223   :  { %7188 = vmatmul.mubr.msk.f32.vlgmr.msra.gmra.mxu0 %vm1158_vm2, %v430_v33 }
 0x224   :  { %7192 = vmatprep.mubr.msk.f32.mxu0 %vm7782_vm1, %v7781_v19  ;;  %v8072_v34 = vpop.f32.mrf.mxu0 }
 0x226   :  { %v699_v37 = vpop.f32.mrf.mxu0 }
 0x227   :  { %v700_v49 = vadd.f32 %v699_v37, %v8082_v40 }
 0x22c   :  { %v8078_v38 = vpop.f32.mrf.mxu0 }
 0x22e   :  { %v8084_v41 = vpop.f32.mrf.mxu0 }
 0x232   :  { %v8086_v42 = vpop.f32.mrf.mxu1 }
 0x234   :  { %v8088_v43 = vpop.f32.mrf.mxu0  ;;  %v789_v44 = vpop.f32.mrf.mxu1 }
 0x235   :  { %v790_v45 = vadd.f32 %v789_v44, %v8074_v35 }
 0x236   :  { %v1059_v47 = vpop.f32.mrf.mxu0 }
 0x237   :  { %v1060_v48 = vadd.f32 %v1059_v47, %v8091_v46  ;;  %7191 = vmatpush3.xpose.msk.msra.mxu0 %vm1158_vm2, %v790_v45 }
 0x238   :  { %7200 = vmatprep.subr.mxu0 %v7781_v19 }
 0x239   :  { %7196 = vmatpush3.xpose.msk.msra.mxu1 %vm1158_vm2, %v1060_v48 }
 0x23a   :  { %7193 = vmatmul.mubr.msk.f32.vlgmr.msra.gmra.mxu0 %vm1158_vm2, %v700_v49  ;;  %7205 = vmatprep.subr.mxu1 %v7781_v19 }
 0x23b   :  { %7202 = vmatprep.mubr.msk.f32.mxu0 %vm7782_vm1, %v7781_v19 }
 0x23c   :  { %v8102_v50 = vpop.f32.mrf.mxu1 }
 0x23e   :  { %v969_v53 = vpop.f32.mrf.mxu1 }
 0x23f   :  { %v970_v54 = vadd.f32 %v969_v53, %v8104_v51 }
 0x241   :  { %7198 = vmatmul.mubr.msk.f32.vlgmr.msra.gmra.mxu1 %vm1158_vm2, %v970_v54 }
 0x242   :  { %7207 = vmatprep.mubr.msk.f32.mxu1 %vm7782_vm1, %v7781_v19 }
 0x244   :  { %v8115_v5 = vpop.f32.mrf.mxu1 }
 0x246   :  { %v8117_v10 = vpop.f32.mrf.mxu1 }
 0x2d0   :  { %v1231_v55 = vpop.f32.mrf.mxu0 }
 0x2d1   :  { %v1463_v59 = vmul.f32 0.35355338, %v1231_v55 }
 0x2d2   :  { %v7184_v56 = vpop.f32.mrf.mxu0 }
 0x2d3   :  { %v1472_v2 = vadd.f32 %v6671_v62, %v1463_v59 }
 0x2d5   :  { %v1476_v3 = vsel %vm1158_vm2, %v1472_v2, -inf }
 0x2e3   :  { %v1307_v58 = vpop.f32.mrf.mxu0 }
 0x2e4   :  { %v1464_v60 = vmul.f32 0.35355338, %v1307_v58 }
 0x2e5   :  { %v7189_v61 = vpop.f32.mrf.mxu0 }
 0x2e6   :  { %v1473_v63 = vadd.f32 %v6671_v62, %v1464_v60 }
 0x2e8   :  { %v1479_v1 = vsel %vm1158_vm2, %v1473_v63, -inf }
 0x2e9   :  { %1480 = vmax.xlane.f32.xlu1 %v1479_v1 }
 0x2ed   :  { %1477 = vmax.xlane.f32.xlu1 %v1476_v3 }
 0x2fa   :  { %v1383_v4 = vpop.f32.mrf.mxu0 }
 0x2fb   :  { %v1465_v6 = vmul.f32 0.35355338, %v1383_v4 }
 0x2fc   :  { %v7194_v7 = vpop.f32.mrf.mxu0 }
 0x2fd   :  { %v1474_v9 = vadd.f32 %v6671_v62, %v1465_v6 }
 0x2ff   :  { %v1482_v11 = vsel %vm1158_vm2, %v1474_v9, -inf }
 0x300   :  { %1483 = vmax.xlane.f32.xlu1 %v1482_v11  ;;  %v8142_v11 = vld [vmem:[#allocation2 + $0x40] sm:$0xff] }
 0x301   :  { %v1459_v14 = vpop.f32.mrf.mxu1 }
 0x302   :  { %v1466_v15 = vmul.f32 0.35355338, %v1459_v14 }
 0x303   :  { %v7199_v16 = vpop.f32.mrf.mxu1 }
 0x304   :  { %v1475_v17 = vadd.f32 %v6671_v62, %v1466_v15 }
 0x306   :  { %v1485_v18 = vsel %vm1158_vm2, %v1475_v17, -inf }
 0x307   :  { %1486 = vmax.xlane.f32.xlu1 %v1485_v18 }
 0x372   :  { %v1481_v22 = vpop.xlane.xlu1 %1480 }
 0x373   :  { %v1489_v23 = vsub.f32 %v1473_v63, %v1481_v22 }
 0x375   :  { %v1494_v24 = vmul.f32 1.442695, %v1489_v23 }
 0x376   :  { %v1478_v25 = vpop.xlane.xlu1 %1477 }
 0x377   :  { %7633 = vpow2.f32 %v1494_v24  ;;  %v1488_v30 = vsub.f32 %v1472_v2, %v1478_v25 }
 0x379   :  { %v1492_v31 = vmul.f32 1.442695, %v1488_v30  ;;  %v255_v30 = vadd.f32 %v8048_v21, %v8000_v0  ;;  %v705_v21 = vadd.f32 %v8072_v34, %v8082_v40  ;;  %v8200_v40 = vld [vmem:[#allocation2 + $0x50] sm:$0xff] }
 0x37b   :  { %7635 = vpow2.f32 %v1492_v31  ;;  %v795_v31 = vadd.f32 %v8086_v42, %v8074_v35  ;;  %v8196_v35 = vld [vmem:[#allocation2 + $0x48] sm:$0xff] }
 0x384   :  { %v7634_v32 = vpop.eup %7633 }
 0x385   :  { %v1503_v33 = vsel %vm1158_vm2, %v7634_v32, 0.0 }
 0x386   :  { %1504 = vadd.xlane.f32.xlu0 %v1503_v33  ;;  %v525_v33 = vadd.f32 %v8063_v29, %v8024_v12 }
 0x388   :  { %v7636_v37 = vpop.eup %7635 }
 0x389   :  { %v1500_v44 = vsel %vm1158_vm2, %v7636_v37, 0.0  ;;  %v1484_v45 = vpop.xlane.xlu1 %1483 }
 0x38a   :  { %1501 = vadd.xlane.f32.xlu1 %v1500_v44  ;;  %v1490_v47 = vsub.f32 %v1474_v9, %v1484_v45  ;;  %v435_v45 = vadd.f32 %v8061_v28, %v8030_v13 }
 0x38c   :  { %v1496_v48 = vmul.f32 1.442695, %v1490_v47  ;;  %v1065_v47 = vadd.f32 %v8088_v43, %v8091_v46 }
 0x38e   :  { %7637 = vpow2.f32 %v1496_v48 }
 0x390   :  { %v1487_v54 = vpop.xlane.xlu1 %1486 }
 0x391   :  { %v1491_v55 = vsub.f32 %v1475_v17, %v1487_v54 }
 0x393   :  { %v1498_v56 = vmul.f32 1.442695, %v1491_v55 }
 0x395   :  { %7639 = vpow2.f32 %v1498_v56 }
 0x39b   :  { %v7638_v49 = vpop.eup %7637 }
 0x39c   :  { %540 = vrot.lane.b32.xlu0 %v7880_v8, %s7775_s26  ;;  %v1506_v53 = vsel %vm1158_vm2, %v7638_v49, 0.0 }
 0x39d   :  { %1507 = vadd.xlane.f32.xlu1 %v1506_v53 }
 0x3a2   :  { %v7640_v58 = vpop.eup %7639 }
 0x3a3   :  { %v1509_v59 = vsel %vm1158_vm2, %v7640_v58, 0.0 }
 0x3ae   :  { %270 = vrot.lane.b32.xlu1 %v7880_v8, %s7770_s23 }
 0x3b2   :  { %810 = vrot.lane.b32.xlu1 %v7880_v8, %s7774_s25 }
 0x3b6   :  { %1080 = vrot.lane.b32.xlu1 %v7880_v8, %s7778_s29 }
 0x3bb   :  { %1510 = vadd.xlane.f32.xlu0 %v1509_v59 }
 0x40f   :  { %v1505_v60 = vpop.xlane.xlu0 %1504 }
 0x410   :  { %7641 = vrcp.f32 %v1505_v60 }
 0x413   :  { %v8133_v61 = vpop.permute.xlu0 %540  ;;  %v1502_v63 = vpop.xlane.xlu1 %1501 }
 0x414   :  { %v610_v62 = vadd.f32 %v8080_v39, %v8133_v61  ;;  %7643 = vrcp.f32 %v1502_v63  ;;  %v8150_v39 = vld [vmem:[#allocation2 + $0x38] sm:$0xff]  ;;  %v615_v13 = vadd.f32 %v8076_v36, %v8133_v61  ;;  %v6688_v61 = vld [vmem:[%s8758_s1 + $0x1] ss:$0 sm:$0xff] }
 0x416   :  { %7206 = vmatpush3.msra.mxu1 %v610_v62 }
 0x417   :  { %7215 = vmatprep.subr.mxu1 %v7781_v19 }
 0x41d   :  { %v7642_v1 = vpop.eup %7641 }
 0x41e   :  { %v1515_v2 = vmul.f32 %v7642_v1, %v7634_v32 }
 0x420   :  { %7208 = vmatmul.mubr.msk.f32.vlgmr.msra.gmra.mxu1 %vm1158_vm2, %v1515_v2 }
 0x421   :  { %7217 = vmatprep.mubr.msk.f32.mxu1 %vm7782_vm1, %v7781_v19  ;;  %v7644_v4 = vpop.eup %7643  ;;  %7216 = vmatpush3.msra.mxu1 %v8150_v39 }
 0x422   :  { %v1513_v9 = vmul.f32 %v7644_v4, %v7636_v37  ;;  %7225 = vmatprep.subr.mxu1 %v7781_v19 }
 0x426   :  { %v1508_v3 = vpop.xlane.xlu1 %1507 }
 0x427   :  { %7645 = vrcp.f32 %v1508_v3 }
 0x42a   :  { %v271_v6 = vpop.permute.xlu1 %270 }
 0x42b   :  { %v340_v7 = vadd.f32 %v8059_v27, %v271_v6 }
 0x42d   :  { %7201 = vmatpush3.msra.mxu0 %v340_v7 }
 0x42e   :  { %7203 = vmatmul.mubr.msk.f32.vlgmr.msra.gmra.mxu0 %vm1158_vm2, %v1513_v9  ;;  %7210 = vmatprep.subr.mxu0 %v7781_v19  ;;  %v8154_v14 = vpop.permute.xlu1 %810 }
 0x42f   :  { %7211 = vmatpush3.msra.mxu0 %v8142_v11  ;;  %7212 = vmatprep.mubr.msk.f32.mxu0 %vm7782_vm1, %v7781_v19  ;;  %v880_v16 = vadd.f32 %v8084_v41, %v8154_v14 }
 0x430   :  { %7220 = vmatprep.subr.mxu0 %v7781_v19 }
 0x432   :  { %v8158_v18 = vpop.permute.xlu1 %1080 }
 0x433   :  { %v1150_v25 = vadd.f32 %v8117_v10, %v8158_v18  ;;  %v160_v10 = vadd.f32 %v8046_v20, %v7880_v8  ;;  %v345_v8 = vadd.f32 %v8057_v26, %v271_v6 }
 0x434   :  { %v7646_v15 = vpop.eup %7645 }
 0x435   :  { %v1517_v23 = vmul.f32 %v7646_v15, %v7638_v49  ;;  %v975_v49 = vadd.f32 %v8102_v50, %v8104_v51 }
 0x444   :  { %v1511_v27 = vpop.xlane.xlu0 %1510 }
 0x445   :  { %7647 = vrcp.f32 %v1511_v27 }
 0x452   :  { %v7648_v24 = vpop.eup %7647 }
 0x453   :  { %v1519_v41 = vmul.f32 %v7648_v24, %v7640_v58 }
 0x4e0   :  { %v1663_v17 = vpop.f32.mrf.mxu1 }
 0x4e1   :  { %7213 = vmatmul.mubr.msk.f32.vlgmr.msra.gmra.mxu0 %vm1158_vm2, %v1663_v17 }
 0x4e2   :  { %7221 = vmatpush3.msra.mxu0 %v880_v16  ;;  %v7209_v22 = vpop.f32.mrf.mxu1  ;;  %7222 = vmatprep.mubr.msk.f32.mxu0 %vm7782_vm1, %v7781_v19 }
 0x4e3   :  { %7230 = vmatprep.subr.mxu0 %v7781_v19 }
 0x4e5   :  { %7223 = vmatmul.mubr.msk.f32.vlgmr.msra.gmra.mxu0 %vm1158_vm2, %v1517_v23 }
 0x4e6   :  { %7231 = vmatpush3.msra.mxu0 %v1150_v25  ;;  %7232 = vmatprep.mubr.msk.f32.mxu0 %vm7782_vm1, %v7781_v19 }
 0x4e7   :  { %7240 = vmatprep.subr.mxu0 %v7781_v19 }
 0x4e9   :  { %7233 = vmatmul.mubr.msk.f32.vlgmr.msra.gmra.mxu0 %vm1158_vm2, %v1519_v41 }
 0x4ea   :  { %7241 = vmatpush3.xpose.msk.msra.mxu0 %vm1158_vm2, %v255_v30  ;;  %7242 = vmatprep.mubr.msk.f32.mxu0 %vm7782_vm1, %v7781_v19 }
 0x4eb   :  { %7250 = vmatprep.subr.mxu0 %v7781_v19 }
 0x4ed   :  { %7243 = vmatmul.mubr.msk.f32.vlgmr.msra.gmra.mxu0 %vm1158_vm2, %v160_v10 }
 0x4ee   :  { %7251 = vmatpush3.xpose.msk.msra.mxu0 %vm1158_vm2, %v795_v31  ;;  %v1589_v0 = vpop.f32.mrf.mxu0  ;;  %7252 = vmatprep.mubr.msk.f32.mxu0 %vm7782_vm1, %v7781_v19 }
 0x4ef   :  { %7260 = vmatprep.subr.mxu0 %v7781_v19  ;;  %7218 = vmatmul.mubr.msk.f32.vlgmr.msra.gmra.mxu1 %vm1158_vm2, %v1589_v0 }
 0x4f0   :  { %v7204_v20 = vpop.f32.mrf.mxu0  ;;  %7227 = vmatprep.mubr.msk.f32.mxu1 %vm7782_vm1, %v7781_v19  ;;  %7226 = vmatpush3.msra.mxu1 %v8196_v35 }
 0x4f1   :  { %7253 = vmatmul.mubr.msk.f32.vlgmr.msra.gmra.mxu0 %vm1158_vm2, %v705_v21  ;;  %7235 = vmatprep.subr.mxu1 %v7781_v19 }
 0x4f2   :  { %7261 = vmatpush3.msra.mxu0 %v345_v8  ;;  %7262 = vmatprep.mubr.msk.f32.mxu0 %vm7782_vm1, %v7781_v19 }
 0x4f3   :  { %7270 = vmatprep.subr.mxu0 %v7781_v19 }
 0x5a1   :  { %v1737_v34 = vpop.f32.mrf.mxu0 }
 0x5a3   :  { %v7214_v26 = vpop.f32.mrf.mxu0 }
 0x5a5   :  { %v1883_v42 = vpop.f32.mrf.mxu0 }
 0x5a6   :  { %7228 = vmatmul.mubr.msk.f32.vlgmr.msra.gmra.mxu1 %vm1158_vm2, %v1883_v42 }
 0x5a7   :  { %v7224_v32 = vpop.f32.mrf.mxu0  ;;  %7236 = vmatpush3.msra.mxu1 %v8200_v40  ;;  %7237 = vmatprep.mubr.msk.f32.mxu1 %vm7782_vm1, %v7781_v19 }
 0x5a8   :  { %7245 = vmatprep.subr.mxu1 %v7781_v19 }
 0x5a9   :  { %v2031_v37 = vpop.f32.mrf.mxu0 }
 0x5aa   :  { %7238 = vmatmul.mubr.msk.f32.vlgmr.msra.gmra.mxu1 %vm1158_vm2, %v2031_v37 }
 0x5ab   :  { %7246 = vmatpush3.xpose.msk.msra.mxu1 %vm1158_vm2, %v525_v33  ;;  %v7234_v44 = vpop.f32.mrf.mxu0  ;;  %7247 = vmatprep.mubr.msk.f32.mxu1 %vm7782_vm1, %v7781_v19 }
 0x5ac   :  { %7255 = vmatprep.subr.mxu1 %v7781_v19 }
 0x5ad   :  { %v2182_v48 = vpop.f32.mrf.mxu0 }
 0x5ae   :  { %7248 = vmatmul.mubr.msk.f32.vlgmr.msra.gmra.mxu1 %vm1158_vm2, %v435_v45  ;;  %v2414_v7 = vmul.f32 0.35355338, %v2182_v48  ;;  %v8245_v45 = vld [vmem:[#allocation2 + $0x3] ss:$0 sm:$0xff] }
 0x5af   :  { %7256 = vmatpush3.xpose.msk.msra.mxu1 %vm1158_vm2, %v1065_v47  ;;  %v7244_v12 = vpop.f32.mrf.mxu0  ;;  %v1810_v29 = vpop.f32.mrf.mxu1  ;;  %7257 = vmatprep.mubr.msk.f32.mxu1 %vm7782_vm1, %v7781_v19 }
 0x5b0   :  { %v1811_v53 = vadd.f32 %v1810_v29, %v1737_v34  ;;  %7265 = vmatprep.subr.mxu1 %v7781_v19  ;;  %v2423_v16 = vadd.f32 %v6688_v61, %v2414_v7 }
 0x5b1   :  { %v2334_v28 = vpop.f32.mrf.mxu0  ;;  %v7219_v43 = vpop.f32.mrf.mxu1 }
 0x5b2   :  { %7258 = vmatmul.mubr.msk.f32.vlgmr.msra.gmra.mxu1 %vm1158_vm2, %v975_v49  ;;  %v2416_v27 = vmul.f32 0.35355338, %v2334_v28  ;;  %v2427_v22 = vsel %vm1158_vm2, %v2423_v16, -inf }
 0x5b3   :  { %7266 = vmatpush3.msra.mxu1 %v615_v13  ;;  %v7254_v46 = vpop.f32.mrf.mxu0  ;;  %7267 = vmatprep.mubr.msk.f32.mxu1 %vm7782_vm1, %v7781_v19 }
 0x5b4   :  { %7275 = vmatprep.subr.mxu1 %v7781_v19  ;;  %v2425_v23 = vadd.f32 %v6688_v61, %v2416_v27 }
 0x5b6   :  { %v2433_v24 = vsel %vm1158_vm2, %v2425_v23, -inf }
 0x666   :  { %v1957_v54 = vpop.f32.mrf.mxu1 }
 0x667   :  { %v1961_v55 = vadd.f32 %v1957_v54, %v1811_v53 }
 0x668   :  { %v7229_v50 = vpop.f32.mrf.mxu1 }
 0x66a   :  { %v2105_v51 = vpop.f32.mrf.mxu1 }
 0x66b   :  { %v2109_v56 = vadd.f32 %v2105_v51, %v1961_v55 }
 0x66c   :  { %v7239_v58 = vpop.f32.mrf.mxu1 }
 0x66d   :  { %v3062_v48 = vadd.f32 %v8245_v45, %v2109_v56 }
 0x66e   :  { %v2258_v59 = vpop.f32.mrf.mxu1 }
 0x66f   :  { %v2415_v60 = vmul.f32 0.35355338, %v2258_v59  ;;  %v3064_v49 = vadd.f32 %v3062_v48, %v7971_v52  ;;  %v885_v59 = vadd.f32 %v8078_v38, %v8154_v14 }
 0x670   :  { %v7249_v36 = vpop.f32.mrf.mxu1 }
 0x671   :  { %v2424_v62 = vadd.f32 %v6688_v61, %v2415_v60  ;;  %v3068_v53 = vsel %vm33_vm0, %v3064_v49, 0.0 }
 0x672   :  { %v2410_v63 = vpop.f32.mrf.mxu1 }
 0x673   :  { %v2430_v1 = vsel %vm1158_vm2, %v2424_v62, -inf  ;;  %v2417_v17 = vmul.f32 0.35355338, %v2410_v63 }
 0x674   :  { %2431 = vmax.xlane.f32.xlu1 %v2430_v1  ;;  %v7259_v2 = vpop.f32.mrf.mxu1 }
 0x675   :  { %v2426_v25 = vadd.f32 %v6688_v61, %v2417_v17 }
 0x677   :  { %v2436_v41 = vsel %vm1158_vm2, %v2426_v25, -inf }
 0x6fd   :  { %v2432_v3 = vpop.xlane.xlu1 %2431 }
 0x6fe   :  { %v2440_v4 = vsub.f32 %v2424_v62, %v2432_v3  ;;  %v1155_v62 = vadd.f32 %v8115_v5, %v8158_v18  ;;  %v6698_v3 = vld [vmem:[#allocation2 + $0x4] ss:$0 sm:$0xff] }
 0x700   :  { %v2445_v6 = vmul.f32 1.442695, %v2440_v4 }
 0x702   :  { %7649 = vpow2.f32 %v2445_v6  ;;  %v6699_v6 = vld [vmem:[#allocation2 + $0x5] ss:$0 sm:$0xff] }
 0x70f   :  { %v7650_v9 = vpop.eup %7649 }
 0x710   :  { %v2454_v15 = vsel %vm1158_vm2, %v7650_v9, 0.0 }
 0x711   :  { %2455 = vadd.xlane.f32.xlu0 %v2454_v15 }
 0x715   :  { %2428 = vmax.xlane.f32.xlu0 %v2427_v22 }
 0x719   :  { %2434 = vmax.xlane.f32.xlu0 %v2433_v24 }
 0x71d   :  { %2437 = vmax.xlane.f32.xlu0 %v2436_v41 }
 0x79a   :  { %v2456_v30 = vpop.xlane.xlu0 %2455 }
 0x79b   :  { %7651 = vrcp.f32 %v2456_v30 }
 0x79e   :  { %v2429_v10 = vpop.xlane.xlu0 %2428 }
 0x79f   :  { %v2439_v31 = vsub.f32 %v2423_v16, %v2429_v10 }
 0x7a1   :  { %v2443_v0 = vmul.f32 1.442695, %v2439_v31 }
 0x7a2   :  { %v2435_v21 = vpop.xlane.xlu0 %2434 }
 0x7a3   :  { %7653 = vpow2.f32 %v2443_v0  ;;  %v2441_v8 = vsub.f32 %v2425_v23, %v2435_v21 }
 0x7a5   :  { %v2447_v20 = vmul.f32 1.442695, %v2441_v8 }
 0x7a6   :  { %v2438_v34 = vpop.xlane.xlu0 %2437 }
 0x7a7   :  { %7655 = vpow2.f32 %v2447_v20  ;;  %v2442_v26 = vsub.f32 %v2426_v25, %v2438_v34 }
 0x7a8   :  { %v7652_v42 = vpop.eup %7651 }
 0x7a9   :  { %v2449_v32 = vmul.f32 1.442695, %v2442_v26  ;;  %v2466_v33 = vmul.f32 %v7652_v42, %v7650_v9 }
 0x7ab   :  { %7657 = vpow2.f32 %v2449_v32  ;;  %7268 = vmatmul.mubr.msk.f32.vlgmr.msra.gmra.mxu1 %vm1158_vm2, %v2466_v33 }
 0x7ac   :  { %7276 = vmatpush3.msra.mxu1 %v8150_v39  ;;  %7277 = vmatprep.mubr.msk.f32.mxu1 %vm7782_vm1, %v7781_v19 }
 0x7ad   :  { %7285 = vmatprep.subr.mxu1 %v7781_v19 }
 0x7b0   :  { %v7654_v37 = vpop.eup %7653 }
 0x7b1   :  { %v2451_v44 = vsel %vm1158_vm2, %v7654_v37, 0.0 }
 0x7b2   :  { %2452 = vadd.xlane.f32.xlu0 %v2451_v44  ;;  %v3108_v44 = vld [vmem:[#allocation2 + $0x68] sm:$0xff] }
 0x7b4   :  { %v7656_v47 = vpop.eup %7655 }
 0x7b5   :  { %v2457_v12 = vsel %vm1158_vm2, %v7656_v47, 0.0 }
 0x7b6   :  { %2458 = vadd.xlane.f32.xlu0 %v2457_v12 }
 0x7b8   :  { %v7658_v29 = vpop.eup %7657 }
 0x7b9   :  { %v2460_v39 = vsel %vm1158_vm2, %v7658_v29, 0.0 }
 0x7ba   :  { %2461 = vadd.xlane.f32.xlu0 %v2460_v39 }
 0x7be   :  { %3069 = vadd.xlane.f32.xlu0 %v3068_v53 }
 0x83b   :  { %v2453_v13 = vpop.xlane.xlu0 %2452 }
 0x83c   :  { %7659 = vrcp.f32 %v2453_v13  ;;  %v3117_v13 = vld [vmem:[#allocation2 + $0xb0] sm:$0xff] }
 0x83f   :  { %v2459_v28 = vpop.xlane.xlu0 %2458 }
 0x840   :  { %7661 = vrcp.f32 %v2459_v28  ;;  %v3116_v28 = vld [vmem:[#allocation2 + $0xa8] sm:$0xff] }
 0x843   :  { %v2462_v43 = vpop.xlane.xlu0 %2461 }
 0x844   :  { %7663 = vrcp.f32 %v2462_v43  ;;  %v3115_v43 = vld [vmem:[#allocation2 + $0xa0] sm:$0xff] }
 0x847   :  { %v3070_v46 = vpop.xlane.xlu0 %3069 }
 0x848   :  { %v3074_v54 = vmul.f32 0.03125, %v3070_v46  ;;  %v3114_v46 = vld [vmem:[#allocation2 + $0x98] sm:$0xff] }
 0x849   :  { %v7660_v55 = vpop.eup %7659 }
 0x84a   :  { %v3076_v50 = vsub.f32 %v3064_v49, %v3074_v54  ;;  %v2464_v51 = vmul.f32 %v7660_v55, %v7654_v37  ;;  %v3109_v37 = vld [vmem:[#allocation2 + $0x70] sm:$0xff]  ;;  %v3112_v55 = vld [vmem:[#allocation2 + $0x88] sm:$0xff] }
 0x84b   :  { %v3113_v54 = vld [vmem:[#allocation2 + $0x90] sm:$0xff] }
 0x84c   :  { %7263 = vmatmul.mubr.msk.f32.vlgmr.msra.gmra.mxu0 %vm1158_vm2, %v2464_v51  ;;  %v3078_v56 = vmul.f32 %v3076_v50, %v3076_v50  ;;  %v3110_v51 = vld [vmem:[#allocation2 + $0x78] sm:$0xff] }
 0x84d   :  { %7271 = vmatpush3.msra.mxu0 %v8142_v11  ;;  %7272 = vmatprep.mubr.msk.f32.mxu0 %vm7782_vm1, %v7781_v19  ;;  %v7662_v58 = vpop.eup %7661 }
 0x84e   :  { %v3080_v52 = vsel %vm33_vm0, %v3078_v56, 0.0  ;;  %7280 = vmatprep.subr.mxu0 %v7781_v19  ;;  %v2468_v11 = vmul.f32 %v7662_v58, %v7656_v47  ;;  %v3107_v47 = vld [vmem:[#allocation2 + $0x60] sm:$0xff] }
 0x84f   :  { %3081 = vadd.xlane.f32.xlu1 %v3080_v52  ;;  %v6700_v56 = vld [vmem:[#allocation2 + $0x6] ss:$0 sm:$0xff] }
 0x851   :  { %v7664_v61 = vpop.eup %7663 }
 0x852   :  { %v2470_v38 = vmul.f32 %v7664_v61, %v7658_v29 }
 0x86b   :  { %v2613_v60 = vpop.f32.mrf.mxu1 }
 0x86c   :  { %7273 = vmatmul.mubr.msk.f32.vlgmr.msra.gmra.mxu0 %vm1158_vm2, %v2613_v60 }
 0x86d   :  { %7281 = vmatpush3.msra.mxu0 %v885_v59  ;;  %v7269_v36 = vpop.f32.mrf.mxu1  ;;  %7282 = vmatprep.mubr.msk.f32.mxu0 %vm7782_vm1, %v7781_v19 }
 0x86e   :  { %7290 = vmatprep.subr.mxu0 %v7781_v19 }
 0x870   :  { %7283 = vmatmul.mubr.msk.f32.vlgmr.msra.gmra.mxu0 %vm1158_vm2, %v2468_v11 }
 0x871   :  { %7291 = vmatpush3.msra.mxu0 %v1155_v62  ;;  %7292 = vmatprep.mubr.msk.f32.mxu0 %vm7782_vm1, %v7781_v19 }
 0x872   :  { %7300 = vmatprep.subr.mxu0 %v3109_v37 }
 0x874   :  { %7293 = vmatmul.mubr.msk.f32.vlgmr.msra.gmra.mxu0 %vm1158_vm2, %v2470_v38 }
 0x875   :  { %7301 = vmatpush3.msra.mxu0 %v3109_v37 }
 0x876   :  { %7302 = vmatprep.subr.mxu0 %v3108_v44 }
 0x877   :  { %7303 = vmatpush3.msra.mxu0 %v3108_v44 }
 0x878   :  { %7304 = vmatprep.subr.mxu0 %v3107_v47 }
 0x879   :  { %7305 = vmatpush3.msra.mxu0 %v3107_v47 }
 0x8d8   :  { %v3082_v14 = vpop.xlane.xlu1 %3081 }
 0x8d9   :  { %v3086_v63 = vmul.f32 0.03125, %v3082_v14 }
 0x8db   :  { %v3088_v1 = vadd.f32 1e-12, %v3086_v63 }
 0x8dd   :  { %7665 = vrsqrt.f32 %v3088_v1 }
 0x8ea   :  { %v7666_v2 = vpop.eup %7665 }
 0x8eb   :  { %v3092_v4 = vmul.f32 %v7666_v2, %v3076_v50  ;;  %v3111_v50 = vld [vmem:[#allocation2 + $0x80] sm:$0xff] }
 0x8ed   :  { %v3098_v7 = vmul.f32 %v6698_v3, %v3092_v4 }
 0x8ef   :  { %v8270_v9 = vadd.f32 %v6699_v6, %v3098_v7 }
 0x8f1   :  { %7308 = vmatprep.mubr.msk.f32.mxu0 %vm33_vm0, %v8270_v9 }
 0x90c   :  { %v2540_v5 = vpop.f32.mrf.mxu0 }
 0x90d   :  { %7278 = vmatmul.mubr.msk.f32.vlgmr.msra.gmra.mxu1 %vm1158_vm2, %v2540_v5 }
 0x90e   :  { %v7264_v18 = vpop.f32.mrf.mxu0  ;;  %7286 = vmatpush3.msra.mxu1 %v8196_v35  ;;  %7287 = vmatprep.mubr.msk.f32.mxu1 %vm7782_vm1, %v7781_v19 }
 0x90f   :  { %7295 = vmatprep.subr.mxu1 %v7781_v19 }
 0x92c   :  { %v2686_v27 = vpop.f32.mrf.mxu0 }
 0x92e   :  { %v7274_v15 = vpop.f32.mrf.mxu0 }
 0x930   :  { %v2832_v16 = vpop.f32.mrf.mxu0 }
 0x931   :  { %7288 = vmatmul.mubr.msk.f32.vlgmr.msra.gmra.mxu1 %vm1158_vm2, %v2832_v16 }
 0x932   :  { %v7284_v17 = vpop.f32.mrf.mxu0  ;;  %7296 = vmatpush3.msra.mxu1 %v8200_v40  ;;  %7297 = vmatprep.mubr.msk.f32.mxu1 %vm7782_vm1, %v7781_v19 }
 0x933   :  { %7311 = vmatprep.subr.mxu1 %v3117_v13  ;;  %v8294_v17 = vld [vmem:[#allocation2 + $0xd0] sm:$0xff] }
 0x934   :  { %v2979_v22 = vpop.f32.mrf.mxu0 }
 0x935   :  { %7298 = vmatmul.mubr.msk.f32.vlgmr.msra.gmra.mxu1 %vm1158_vm2, %v2979_v22  ;;  %v8298_v22 = vld [vmem:[#allocation2 + $0xc8] sm:$0xff] }
 0x936   :  { %v7294_v35 = vpop.f32.mrf.mxu0  ;;  %7312 = vmatpush3.msra.mxu1 %v3117_v13 }
 0x937   :  { %7313 = vmatprep.subr.mxu1 %v3116_v28  ;;  %v8301_v35 = vld [vmem:[#allocation2 + $0xc0] sm:$0xff] }
 0x938   :  { %7314 = vmatpush3.msra.mxu1 %v3116_v28 }
 0x939   :  { %7315 = vmatprep.subr.mxu1 %v3115_v43 }
 0x93a   :  { %7316 = vmatpush3.msra.mxu1 %v3115_v43 }
 0x93b   :  { %7317 = vmatprep.subr.mxu1 %v3114_v46 }
 0x93c   :  { %7318 = vmatpush3.msra.mxu1 %v3114_v46 }
 0x93d   :  { %7319 = vmatprep.subr.mxu1 %v3113_v54 }
 0x93e   :  { %7320 = vmatpush3.msra.mxu1 %v3113_v54 }
 0x93f   :  { %7321 = vmatprep.subr.mxu1 %v3112_v55 }
 0x940   :  { %7322 = vmatpush3.msra.mxu1 %v3112_v55 }
 0x941   :  { %7323 = vmatprep.subr.mxu1 %v3111_v50 }
 0x942   :  { %7324 = vmatpush3.msra.mxu1 %v3111_v50 }
 0x943   :  { %7325 = vmatprep.subr.mxu1 %v3110_v51 }
 0x944   :  { %7326 = vmatpush3.msra.mxu1 %v3110_v51 }
 0x9cd   :  { %v2759_v23 = vpop.f32.mrf.mxu1 }
 0x9ce   :  { %v2760_v41 = vadd.f32 %v2759_v23, %v2686_v27  ;;  %v6703_v23 = vld [vmem:[#allocation2 + $0x7] ss:$0 sm:$0xff] }
 0x9cf   :  { %v7279_v24 = vpop.f32.mrf.mxu1 }
 0x9f1   :  { %v2905_v25 = vpop.f32.mrf.mxu1 }
 0x9f2   :  { %v2909_v10 = vadd.f32 %v2905_v25, %v2760_v41 }
 0x9f3   :  { %v7289_v30 = vpop.f32.mrf.mxu1 }
 0x9f5   :  { %v3052_v31 = vpop.f32.mrf.mxu1 }
 0x9f6   :  { %v3056_v0 = vadd.f32 %v3052_v31, %v2909_v10 }
 0x9f7   :  { %v7299_v21 = vpop.f32.mrf.mxu1 }
 0x9f8   :  { %v3063_v8 = vadd.f32 %v8245_v45, %v3056_v0  ;;  %v3106_v45 = vld [vmem:[#allocation2 + $0x58] sm:$0xff] }
 0x9f9   :  { %7306 = vmatprep.subr.mxu0 %v3106_v45 }
 0x9fa   :  { %v3065_v40 = vadd.f32 %v3063_v8, %v7978_v57  ;;  %7307 = vmatpush3.msra.mxu0 %v3106_v45  ;;  %v8312_v8 = vld [vmem:[#allocation2 + $0xb8] sm:$0xff] }
 0x9fb   :  { %7330 = vmatprep.subr.mxu0 %v8294_v17 }
 0x9fc   :  { %v3071_v20 = vsel %vm33_vm0, %v3065_v40, 0.0 }
 0x9fd   :  { %3072 = vadd.xlane.f32.xlu0 %v3071_v20 }
 0xa86   :  { %v3073_v34 = vpop.xlane.xlu0 %3072 }
 0xa87   :  { %v3075_v26 = vmul.f32 0.03125, %v3073_v34 }
 0xa89   :  { %v3077_v42 = vsub.f32 %v3065_v40, %v3075_v26 }
 0xa8b   :  { %v3079_v32 = vmul.f32 %v3077_v42, %v3077_v42 }
 0xa8d   :  { %v3083_v33 = vsel %vm33_vm0, %v3079_v32, 0.0 }
 0xa8e   :  { %3084 = vadd.xlane.f32.xlu0 %v3083_v33 }
 0xb17   :  { %v3085_v57 = vpop.xlane.xlu0 %3084 }
 0xb18   :  { %v3087_v48 = vmul.f32 0.03125, %v3085_v57 }
 0xb1a   :  { %v3089_v12 = vadd.f32 1e-12, %v3087_v48 }
 0xb1c   :  { %7667 = vrsqrt.f32 %v3089_v12  ;;  %v8389_v12 = vld [vmem:[#allocation2 + $0xa] ss:$0 sm:$0xff] }
 0xb29   :  { %v7668_v29 = vpop.eup %7667 }
 0xb2a   :  { %v3093_v39 = vmul.f32 %v7668_v29, %v3077_v42 }
 0xb2c   :  { %v3099_v49 = vmul.f32 %v6698_v3, %v3093_v39 }
 0xb2e   :  { %v8288_v53 = vadd.f32 %v6699_v6, %v3099_v49 }
 0xb30   :  { %7309 = vmatmul.mubr.msk.f32.vlgmr.msra.gmra.mxu0 %vm33_vm0, %v8288_v53 }
 0xb31   :  { %7331 = vmatpush3.msra.mxu0 %v8294_v17 }
 0xb32   :  { %7332 = vmatprep.subr.mxu0 %v8298_v22 }
 0xb33   :  { %7333 = vmatpush3.msra.mxu0 %v8298_v22 }
 0xb34   :  { %7334 = vmatprep.subr.mxu0 %v8301_v35 }
 0xb35   :  { %7335 = vmatpush3.msra.mxu0 %v8301_v35 }
 0xb36   :  { %7336 = vmatprep.subr.mxu0 %v8312_v8 }
 0xb37   :  { %7337 = vmatpush3.msra.mxu0 %v8312_v8 }
 0xbf0   :  { %v7310_v52 = vpop.f32.mrf.mxu0 }
 0xbf1   :  { %v3201_v58 = vadd.f32 %v7310_v52, %v6700_v56 }
 0xbf2   :  { %v3195_v59 = vpop.f32.mrf.mxu0 }
 0xbf3   :  { %v3205_v60 = vmul.f32 %v3201_v58, %v3201_v58  ;;  %v3196_v36 = vadd.f32 %v6700_v56, %v3195_v59 }
 0xbf5   :  { %v3207_v11 = vmul.f32 %v3205_v60, %v3201_v58  ;;  %v3204_v61 = vmul.f32 %v3196_v36, %v3196_v36 }
 0xbf7   :  { %v3209_v62 = vmul.f32 0.044715, %v3207_v11  ;;  %v3206_v38 = vmul.f32 %v3204_v61, %v3196_v36 }
 0xbf9   :  { %v3211_v14 = vadd.f32 %v3209_v62, %v3201_v58  ;;  %v3208_v63 = vmul.f32 0.044715, %v3206_v38 }
 0xbfb   :  { %v3213_v1 = vmul.f32 0.7978846, %v3211_v14  ;;  %v3210_v2 = vadd.f32 %v3208_v63, %v3196_v36 }
 0xbfd   :  { %7669 = vtanh.f32 %v3213_v1  ;;  %v3212_v3 = vmul.f32 0.7978846, %v3210_v2  ;;  %v6707_v1 = vld [vmem:[#allocation2 + $0x9] ss:$0 sm:$0xff] }
 0xbff   :  { %7671 = vtanh.f32 %v3212_v3 }
 0xc0a   :  { %v7670_v4 = vpop.eup %7669 }
 0xc0b   :  { %v3217_v6 = vadd.f32 1.0, %v7670_v4 }
 0xc0c   :  { %v7672_v7 = vpop.eup %7671 }
 0xc0d   :  { %v3216_v5 = vadd.f32 1.0, %v7672_v7  ;;  %v3219_v18 = vmul.f32 0.5, %v3217_v6 }
 0xc0f   :  { %v3218_v27 = vmul.f32 0.5, %v3216_v5  ;;  %v3221_v16 = vmul.f32 %v3219_v18, %v3201_v58 }
 0xc11   :  { %v3220_v15 = vmul.f32 %v3218_v27, %v3196_v36  ;;  %v6706_v36 = vld [vmem:[#allocation2 + $0x8] ss:$0 sm:$0xff] }
 0xc13   :  { %7327 = vmatprep.mubr.msk.f32.mxu1 %vm3227_vm3, %v3220_v15 }
 0xc14   :  { %7328 = vmatmul.mubr.msk.f32.vlgmr.msra.gmra.mxu1 %vm3227_vm3, %v3221_v16 }
 0xcd4   :  { %v7329_v24 = vpop.f32.mrf.mxu1 }
 0xcd5   :  { %v3306_v25 = vadd.f32 %v7329_v24, %v6703_v23 }
 0xcd6   :  { %v3300_v41 = vpop.f32.mrf.mxu1 }
 0xcd7   :  { %v3301_v30 = vadd.f32 %v6703_v23, %v3300_v41  ;;  %v3310_v10 = vadd.f32 %v3306_v25, %v8288_v53 }
 0xcd9   :  { %v3316_v31 = vsel %vm33_vm0, %v3310_v10, 0.0  ;;  %v3309_v0 = vadd.f32 %v3301_v30, %v8270_v9 }
 0xcda   :  { %3317 = vadd.xlane.f32.xlu0 %v3316_v31 }
 0xcdb   :  { %v3313_v21 = vsel %vm33_vm0, %v3309_v0, 0.0 }
 0xcdc   :  { %3314 = vadd.xlane.f32.xlu1 %v3313_v21 }
 0xced   :  { %3542 = vrot.lane.b32.xlu1 %v8294_v17, %s7770_s23 }
 0xcf0   :  { %3540 = vrot.lane.b32.xlu0 %v8298_v22, %s7770_s23 }
 0xcf1   :  { %3451 = vrot.lane.b32.xlu1 %v8294_v17, %s7771_s0 }
 0xcf5   :  { %3538 = vrot.lane.b32.xlu1 %v8301_v35, %s7770_s23 }
 0xcf9   :  { %3449 = vrot.lane.b32.xlu1 %v8298_v22, %s7771_s0 }
 0xcfd   :  { %3447 = vrot.lane.b32.xlu1 %v8301_v35, %s7771_s0 }
 0xd63   :  { %v3318_v9 = vpop.xlane.xlu0 %3317 }
 0xd64   :  { %v3320_v40 = vmul.f32 0.03125, %v3318_v9 }
 0xd65   :  { %v3315_v20 = vpop.xlane.xlu1 %3314 }
 0xd66   :  { %v8326_v34 = vsub.f32 %v3310_v10, %v3320_v40  ;;  %v3319_v26 = vmul.f32 0.03125, %v3315_v20 }
 0xd67   :  { %v3541_v37 = vpop.permute.xlu0 %3540 }
 0xd68   :  { %v8328_v42 = vsub.f32 %v3309_v0, %v3319_v26  ;;  %v3324_v32 = vmul.f32 %v8326_v34, %v8326_v34 }
 0xd69   :  { %v3543_v33 = vpop.permute.xlu1 %3542 }
 0xd6a   :  { %v3328_v44 = vsel %vm33_vm0, %v3324_v32, 0.0  ;;  %v3323_v47 = vmul.f32 %v8328_v42, %v8328_v42  ;;  %7352 = vmatprep.subr.mxu1 %v3543_v33 }
 0xd6b   :  { %3329 = vadd.xlane.f32.xlu0 %v3328_v44  ;;  %7353 = vmatpush3.msra.mxu1 %v3543_v33 }
 0xd6c   :  { %v3325_v45 = vsel %vm33_vm0, %v3323_v47, 0.0  ;;  %7354 = vmatprep.subr.mxu1 %v3541_v37 }
 0xd6d   :  { %3326 = vadd.xlane.f32.xlu1 %v3325_v45  ;;  %v8336_v57 = vpop.permute.xlu1 %3451  ;;  %7355 = vmatpush3.msra.mxu1 %v3541_v37 }
 0xd6e   :  { %7341 = vmatprep.subr.mxu0 %v8336_v57 }
 0xd71   :  { %v3539_v48 = vpop.permute.xlu1 %3538 }
 0xd72   :  { %7356 = vmatprep.subr.mxu1 %v3539_v48 }
 0xd73   :  { %7357 = vmatpush3.msra.mxu1 %v3539_v48 }
 0xd75   :  { %v3450_v29 = vpop.permute.xlu1 %3449 }
 0xd79   :  { %v3448_v39 = vpop.permute.xlu1 %3447 }
 0xd7e   :  { %3445 = vrot.lane.b32.xlu1 %v8312_v8, %s7771_s0 }
 0xd81   :  { %3536 = vrot.lane.b32.xlu0 %v8312_v8, %s7770_s23 }
 0xd82   :  { %3632 = vrot.lane.b32.xlu1 %v8294_v17, %s7772_s2 }
 0xd85   :  { %3722 = vrot.lane.b32.xlu0 %v8294_v17, %s7779_s30 }
 0xd86   :  { %3630 = vrot.lane.b32.xlu1 %v8298_v22, %s7772_s2 }
 0xd89   :  { %3720 = vrot.lane.b32.xlu0 %v8298_v22, %s7779_s30 }
 0xd8a   :  { %3628 = vrot.lane.b32.xlu1 %v8301_v35, %s7772_s2 }
 0xd8d   :  { %3718 = vrot.lane.b32.xlu0 %v8301_v35, %s7779_s30 }
 0xd8e   :  { %3902 = vrot.lane.b32.xlu1 %v8294_v17, %s7773_s24 }
 0xd91   :  { %3716 = vrot.lane.b32.xlu0 %v8312_v8, %s7779_s30 }
 0xd92   :  { %3898 = vrot.lane.b32.xlu1 %v8301_v35, %s7773_s24 }
 0xd95   :  { %3626 = vrot.lane.b32.xlu0 %v8312_v8, %s7772_s2 }
 0xd96   :  { %4082 = vrot.lane.b32.xlu1 %v8294_v17, %s7774_s25 }
 0xd99   :  { %3900 = vrot.lane.b32.xlu0 %v8298_v22, %s7773_s24 }
 0xd9a   :  { %3812 = vrot.lane.b32.xlu1 %v8294_v17, %s7775_s26 }
 0xd9d   :  { %3896 = vrot.lane.b32.xlu0 %v8312_v8, %s7773_s24 }
 0xd9e   :  { %3810 = vrot.lane.b32.xlu1 %v8298_v22, %s7775_s26 }
 0xda1   :  { %4080 = vrot.lane.b32.xlu0 %v8298_v22, %s7774_s25 }
 0xda2   :  { %3808 = vrot.lane.b32.xlu1 %v8301_v35, %s7775_s26 }
 0xda5   :  { %4078 = vrot.lane.b32.xlu0 %v8301_v35, %s7774_s25 }
 0xda6   :  { %3806 = vrot.lane.b32.xlu1 %v8312_v8, %s7775_s26 }
 0xda9   :  { %4076 = vrot.lane.b32.xlu0 %v8312_v8, %s7774_s25 }
 0xdaa   :  { %3992 = vrot.lane.b32.xlu1 %v8294_v17, %s7776_s27 }
 0xdad   :  { %4262 = vrot.lane.b32.xlu0 %v8294_v17, %s7780_s4 }
 0xdae   :  { %3990 = vrot.lane.b32.xlu1 %v8298_v22, %s7776_s27 }
 0xdb1   :  { %4260 = vrot.lane.b32.xlu0 %v8298_v22, %s7780_s4 }
 0xdb2   :  { %3458 = vrot.lane.b32.xlu1 %v8389_v12, %s7771_s0 }
 0xdb5   :  { %4258 = vrot.lane.b32.xlu0 %v8301_v35, %s7780_s4 }
 0xdb6   :  { %3986 = vrot.lane.b32.xlu1 %v8312_v8, %s7776_s27 }
 0xdb9   :  { %4256 = vrot.lane.b32.xlu0 %v8312_v8, %s7780_s4 }
 0xdba   :  { %4172 = vrot.lane.b32.xlu1 %v8294_v17, %s7777_s28 }
 0xdbd   :  { %3988 = vrot.lane.b32.xlu0 %v8301_v35, %s7776_s27 }
 0xdbe   :  { %4170 = vrot.lane.b32.xlu1 %v8298_v22, %s7777_s28 }
 0xdc1   :  { %3728 = vrot.lane.b32.xlu0 %v8389_v12, %s7779_s30 }
 0xdc2   :  { %4166 = vrot.lane.b32.xlu1 %v8312_v8, %s7777_s28 }
 0xdc5   :  { %3638 = vrot.lane.b32.xlu0 %v8389_v12, %s7772_s2 }
 0xdc6   :  { %4350 = vrot.lane.b32.xlu1 %v8298_v22, %s7778_s29 }
 0xdc9   :  { %4168 = vrot.lane.b32.xlu0 %v8301_v35, %s7777_s28 }
 0xdca   :  { %4346 = vrot.lane.b32.xlu1 %v8312_v8, %s7778_s29 }
 0xdcd   :  { %4352 = vrot.lane.b32.xlu0 %v8294_v17, %s7778_s29 }
 0xdce   :  { %3908 = vrot.lane.b32.xlu1 %v8389_v12, %s7773_s24 }
 0xdd1   :  { %4348 = vrot.lane.b32.xlu0 %v8301_v35, %s7778_s29 }
 0xdd2   :  { %4178 = vrot.lane.b32.xlu1 %v8389_v12, %s7777_s28 }
 0xdd5   :  { %3998 = vrot.lane.b32.xlu0 %v8389_v12, %s7776_s27 }
 0xdd9   :  { %4268 = vrot.lane.b32.xlu0 %v8389_v12, %s7780_s4 }
 0xdf4   :  { %v3330_v49 = vpop.xlane.xlu0 %3329 }
 0xdf5   :  { %v3332_v53 = vmul.f32 0.03125, %v3330_v49 }
 0xdf6   :  { %v3327_v13 = vpop.xlane.xlu1 %3326 }
 0xdf7   :  { %v3334_v28 = vadd.f32 1e-12, %v3332_v53  ;;  %v3331_v43 = vmul.f32 0.03125, %v3327_v13 }
 0xdf8   :  { %v3537_v46 = vpop.permute.xlu0 %3536 }
 0xdf9   :  { %7673 = vrsqrt.f32 %v3334_v28  ;;  %v3333_v54 = vadd.f32 1e-12, %v3331_v43  ;;  %7358 = vmatprep.subr.mxu1 %v3537_v46 }
 0xdfa   :  { %v3446_v55 = vpop.permute.xlu1 %3445  ;;  %7359 = vmatpush3.msra.mxu1 %v3537_v46 }
 0xdfb   :  { %7675 = vrsqrt.f32 %v3333_v54 }
 0xdfc   :  { %v3723_v50 = vpop.permute.xlu0 %3722 }
 0xdfd   :  { %7374 = vmatprep.subr.mxu1 %v3723_v50 }
 0xdfe   :  { %v3633_v51 = vpop.permute.xlu1 %3632 }
 0xe00   :  { %v3721_v56 = vpop.permute.xlu0 %3720 }
 0xe02   :  { %v3631_v52 = vpop.permute.xlu1 %3630 }
 0xe04   :  { %v3719_v58 = vpop.permute.xlu0 %3718 }
 0xe06   :  { %v7674_v59 = vpop.eup %7673  ;;  %v3629_v60 = vpop.permute.xlu1 %3628 }
 0xe07   :  { %v3338_v11 = vmul.f32 %v7674_v59, %v8326_v34 }
 0xe08   :  { %v7676_v61 = vpop.eup %7675  ;;  %v3717_v62 = vpop.permute.xlu0 %3716 }
 0xe09   :  { %v3337_v38 = vmul.f32 %v7676_v61, %v8328_v42  ;;  %v3344_v14 = vmul.f32 %v6706_v36, %v3338_v11 }
 0xe0a   :  { %v3903_v63 = vpop.permute.xlu1 %3902 }
 0xe0b   :  { %v3343_v2 = vmul.f32 %v6706_v36, %v3337_v38  ;;  %v8435_v6 = vadd.f32 %v6707_v1, %v3344_v14 }
 0xe0c   :  { %v3627_v3 = vpop.permute.xlu0 %3626 }
 0xe0d   :  { %v8433_v4 = vadd.f32 %v6707_v1, %v3343_v2 }
 0xe0e   :  { %v3899_v7 = vpop.permute.xlu1 %3898 }
 0xe0f   :  { %7338 = vmatprep.mubr.msk.f32.mxu0 %vm33_vm0, %v8433_v4  ;;  %7360 = vmatprep.mubr.msk.f32.mxu1 %vm33_vm0, %v8433_v4 }
 0xe10   :  { %v3901_v5 = vpop.permute.xlu0 %3900  ;;  %7339 = vmatmul.mubr.msk.f32.vlgmr.msra.gmra.mxu0 %vm33_vm0, %v8435_v6  ;;  %7361 = vmatmul.mubr.msk.f32.vlgmr.msra.gmra.mxu1 %vm33_vm0, %v8435_v6 }
 0xe11   :  { %7342 = vmatpush3.msra.mxu0 %v8336_v57  ;;  %7375 = vmatpush3.msra.mxu1 %v3723_v50 }
 0xe12   :  { %7343 = vmatprep.subr.mxu0 %v3450_v29  ;;  %7349 = vmatprep.mubr.msk.f32.mxu0 %vm33_vm0, %v8433_v4  ;;  %v4083_v18 = vpop.permute.xlu1 %4082 }
 0xe13   :  { %7376 = vmatprep.subr.mxu1 %v3721_v56  ;;  %7382 = vmatprep.mubr.msk.f32.mxu1 %vm33_vm0, %v8433_v4 }
 0xe14   :  { %7344 = vmatpush3.msra.mxu0 %v3450_v29  ;;  %7377 = vmatpush3.msra.mxu1 %v3721_v56  ;;  %v3897_v27 = vpop.permute.xlu0 %3896 }
 0xe15   :  { %7345 = vmatprep.subr.mxu0 %v3448_v39  ;;  %7378 = vmatprep.subr.mxu1 %v3719_v58 }
 0xe16   :  { %7346 = vmatpush3.msra.mxu0 %v3448_v39  ;;  %7379 = vmatpush3.msra.mxu1 %v3719_v58  ;;  %v3813_v15 = vpop.permute.xlu1 %3812 }
 0xe17   :  { %7347 = vmatprep.subr.mxu0 %v3446_v55  ;;  %7380 = vmatprep.subr.mxu1 %v3717_v62 }
 0xe18   :  { %7348 = vmatpush3.msra.mxu0 %v3446_v55  ;;  %7381 = vmatpush3.msra.mxu1 %v3717_v62  ;;  %v4081_v16 = vpop.permute.xlu0 %4080 }
 0xe19   :  { %7350 = vmatmul.mubr.msk.f32.vlgmr.msra.gmra.mxu0 %vm33_vm0, %v8435_v6  ;;  %7363 = vmatprep.subr.mxu0 %v3633_v51 }
 0xe1a   :  { %7383 = vmatmul.mubr.msk.f32.vlgmr.msra.gmra.mxu1 %vm33_vm0, %v8435_v6  ;;  %7396 = vmatprep.subr.mxu1 %v3903_v63  ;;  %v3811_v17 = vpop.permute.xlu1 %3810 }
 0xe1b   :  { %7364 = vmatpush3.msra.mxu0 %v3633_v51  ;;  %7371 = vmatprep.mubr.msk.f32.mxu0 %vm33_vm0, %v8433_v4 }
 0xe1c   :  { %7397 = vmatpush3.msra.mxu1 %v3903_v63  ;;  %7404 = vmatprep.mubr.msk.f32.mxu1 %vm33_vm0, %v8433_v4  ;;  %v4079_v22 = vpop.permute.xlu0 %4078 }
 0xe1d   :  { %7365 = vmatprep.subr.mxu0 %v3631_v52  ;;  %7398 = vmatprep.subr.mxu1 %v3901_v5 }
 0xe1e   :  { %7366 = vmatpush3.msra.mxu0 %v3631_v52  ;;  %7399 = vmatpush3.msra.mxu1 %v3901_v5  ;;  %v3809_v35 = vpop.permute.xlu1 %3808 }
 0xe1f   :  { %7367 = vmatprep.subr.mxu0 %v3629_v60  ;;  %7400 = vmatprep.subr.mxu1 %v3899_v7 }
 0xe20   :  { %7368 = vmatpush3.msra.mxu0 %v3629_v60  ;;  %7401 = vmatpush3.msra.mxu1 %v3899_v7  ;;  %v4077_v23 = vpop.permute.xlu0 %4076 }
 0xe21   :  { %7369 = vmatprep.subr.mxu0 %v3627_v3  ;;  %7402 = vmatprep.subr.mxu1 %v3897_v27 }
 0xe22   :  { %7370 = vmatpush3.msra.mxu0 %v3627_v3  ;;  %7403 = vmatpush3.msra.mxu1 %v3897_v27  ;;  %v3807_v24 = vpop.permute.xlu1 %3806 }
 0xe23   :  { %7372 = vmatmul.mubr.msk.f32.vlgmr.msra.gmra.mxu0 %vm33_vm0, %v8435_v6  ;;  %7385 = vmatprep.subr.mxu0 %v3813_v15 }
 0xe24   :  { %7405 = vmatmul.mubr.msk.f32.vlgmr.msra.gmra.mxu1 %vm33_vm0, %v8435_v6  ;;  %7418 = vmatprep.subr.mxu1 %v4083_v18  ;;  %v4263_v25 = vpop.permute.xlu0 %4262 }
 0xe25   :  { %7386 = vmatpush3.msra.mxu0 %v3813_v15  ;;  %7393 = vmatprep.mubr.msk.f32.mxu0 %vm33_vm0, %v8433_v4 }
 0xe26   :  { %7419 = vmatpush3.msra.mxu1 %v4083_v18  ;;  %7426 = vmatprep.mubr.msk.f32.mxu1 %vm33_vm0, %v8433_v4  ;;  %v3993_v41 = vpop.permute.xlu1 %3992 }
 0xe27   :  { %7387 = vmatprep.subr.mxu0 %v3811_v17  ;;  %7420 = vmatprep.subr.mxu1 %v4081_v16 }
 0xe28   :  { %7388 = vmatpush3.msra.mxu0 %v3811_v17  ;;  %7421 = vmatpush3.msra.mxu1 %v4081_v16  ;;  %v4261_v30 = vpop.permute.xlu0 %4260 }
 0xe29   :  { %7389 = vmatprep.subr.mxu0 %v3809_v35  ;;  %7422 = vmatprep.subr.mxu1 %v4079_v22 }
 0xe2a   :  { %7390 = vmatpush3.msra.mxu0 %v3809_v35  ;;  %7423 = vmatpush3.msra.mxu1 %v4079_v22  ;;  %v3991_v10 = vpop.permute.xlu1 %3990 }
 0xe2b   :  { %7391 = vmatprep.subr.mxu0 %v3807_v24  ;;  %7424 = vmatprep.subr.mxu1 %v4077_v23 }
 0xe2c   :  { %7392 = vmatpush3.msra.mxu0 %v3807_v24  ;;  %7425 = vmatpush3.msra.mxu1 %v4077_v23  ;;  %v4259_v31 = vpop.permute.xlu0 %4258  ;;  %v7721_v23 = vld [vmem:[%s8758_s1] ss:$0 sm:$0xff] }
 0xe2d   :  { %7394 = vmatmul.mubr.msk.f32.vlgmr.msra.gmra.mxu0 %vm33_vm0, %v8435_v6  ;;  %7427 = vmatmul.mubr.msk.f32.vlgmr.msra.gmra.mxu1 %vm33_vm0, %v8435_v6 }
 0xe2e   :  { %7415 = vmatprep.mubr.msk.f32.mxu0 %vm33_vm0, %v8433_v4  ;;  %7448 = vmatprep.mubr.msk.f32.mxu1 %vm33_vm0, %v8433_v4  ;;  %v8474_v0 = vpop.permute.xlu1 %3458 }
 0xe2f   :  { %7440 = vmatprep.subr.mxu1 %v4263_v25  ;;  %7407 = vmatprep.subr.mxu0 %v3993_v41 }
 0xe30   :  { %7441 = vmatpush3.msra.mxu1 %v4263_v25  ;;  %v4257_v21 = vpop.permute.xlu0 %4256  ;;  %7408 = vmatpush3.msra.mxu0 %v3993_v41 }
 0xe31   :  { %7442 = vmatprep.subr.mxu1 %v4261_v30  ;;  %7409 = vmatprep.subr.mxu0 %v3991_v10 }
 0xe32   :  { %7443 = vmatpush3.msra.mxu1 %v4261_v30  ;;  %7410 = vmatpush3.msra.mxu0 %v3991_v10  ;;  %v3987_v8 = vpop.permute.xlu1 %3986 }
 0xe33   :  { %7444 = vmatprep.subr.mxu1 %v4259_v31 }
 0xe34   :  { %7445 = vmatpush3.msra.mxu1 %v4259_v31  ;;  %v3989_v9 = vpop.permute.xlu0 %3988 }
 0xe35   :  { %7446 = vmatprep.subr.mxu1 %v4257_v21  ;;  %7411 = vmatprep.subr.mxu0 %v3989_v9 }
 0xe36   :  { %7447 = vmatpush3.msra.mxu1 %v4257_v21  ;;  %7412 = vmatpush3.msra.mxu0 %v3989_v9  ;;  %v4173_v40 = vpop.permute.xlu1 %4172 }
 0xe37   :  { %7449 = vmatmul.mubr.msk.f32.vlgmr.msra.gmra.mxu1 %vm33_vm0, %v8435_v6  ;;  %7413 = vmatprep.subr.mxu0 %v3987_v8 }
 0xe38   :  { %v8478_v20 = vpop.permute.xlu0 %3728  ;;  %7414 = vmatpush3.msra.mxu0 %v3987_v8  ;;  %7462 = vmatprep.subr.mxu1 %v7781_v19 }
 0xe39   :  { %7416 = vmatmul.mubr.msk.f32.vlgmr.msra.gmra.mxu0 %vm33_vm0, %v8435_v6  ;;  %7429 = vmatprep.subr.mxu0 %v4173_v40 }
 0xe3a   :  { %7437 = vmatprep.mubr.msk.f32.mxu0 %vm33_vm0, %v8433_v4  ;;  %7430 = vmatpush3.msra.mxu0 %v4173_v40  ;;  %v4171_v34 = vpop.permute.xlu1 %4170 }
 0xe3b   :  { %7431 = vmatprep.subr.mxu0 %v4171_v34  ;;  %7464 = vmatprep.mubr.msk.f32.mxu1 %vm7782_vm1, %v7781_v19 }
 0xe3c   :  { %v8487_v26 = vpop.permute.xlu0 %3638  ;;  %7432 = vmatpush3.msra.mxu0 %v4171_v34 }
 0xe3e   :  { %v4167_v42 = vpop.permute.xlu1 %4166 }
 0xe40   :  { %v4169_v32 = vpop.permute.xlu0 %4168 }
 0xe41   :  { %7433 = vmatprep.subr.mxu0 %v4169_v32 }
 0xe42   :  { %7434 = vmatpush3.msra.mxu0 %v4169_v32  ;;  %v4351_v33 = vpop.permute.xlu1 %4350 }
 0xe43   :  { %7435 = vmatprep.subr.mxu0 %v4167_v42 }
 0xe44   :  { %v4353_v37 = vpop.permute.xlu0 %4352  ;;  %7436 = vmatpush3.msra.mxu0 %v4167_v42 }
 0xe45   :  { %7438 = vmatmul.mubr.msk.f32.vlgmr.msra.gmra.mxu0 %vm33_vm0, %v8435_v6  ;;  %7451 = vmatprep.subr.mxu0 %v4353_v37 }
 0xe46   :  { %7452 = vmatpush3.msra.mxu0 %v4353_v37  ;;  %7459 = vmatprep.mubr.msk.f32.mxu0 %vm33_vm0, %v8433_v4  ;;  %v4347_v47 = vpop.permute.xlu1 %4346 }
 0xe47   :  { %7453 = vmatprep.subr.mxu0 %v4351_v33 }
 0xe48   :  { %v4349_v44 = vpop.permute.xlu0 %4348  ;;  %7454 = vmatpush3.msra.mxu0 %v4351_v33 }
 0xe49   :  { %7455 = vmatprep.subr.mxu0 %v4349_v44 }
 0xe4a   :  { %7456 = vmatpush3.msra.mxu0 %v4349_v44  ;;  %v8544_v2 = vpop.permute.xlu1 %3908 }
 0xe4b   :  { %7457 = vmatprep.subr.mxu0 %v4347_v47 }
 0xe4c   :  { %7458 = vmatpush3.msra.mxu0 %v4347_v47  ;;  %v8528_v58 = vpop.permute.xlu0 %3998 }
 0xe4d   :  { %7460 = vmatmul.mubr.msk.f32.vlgmr.msra.gmra.mxu0 %vm33_vm0, %v8435_v6  ;;  %7472 = vmatprep.subr.mxu0 %v7781_v19 }
 0xe4e   :  { %7474 = vmatprep.mubr.msk.f32.mxu0 %vm7782_vm1, %v7781_v19  ;;  %v8554_v5 = vpop.permute.xlu1 %4178 }
 0xe50   :  { %v8536_v61 = vpop.permute.xlu0 %4268 }
 0xed0   :  { %v8498_v45 = vpop.f32.mrf.mxu0  ;;  %v8500_v57 = vpop.f32.mrf.mxu1 }
 0xed2   :  { %v3432_v48 = vpop.f32.mrf.mxu0  ;;  %v8502_v29 = vpop.f32.mrf.mxu1 }
 0xed3   :  { %v3433_v43 = vadd.f32 %v8389_v12, %v3432_v48 }
 0xed9   :  { %v8504_v39 = vpop.f32.mrf.mxu0 }
 0xeda   :  { %v8506_v49 = vpop.f32.mrf.mxu1 }
 0xedb   :  { %v3527_v53 = vpop.f32.mrf.mxu0 }
 0xedc   :  { %v3528_v13 = vadd.f32 %v3527_v53, %v8474_v0  ;;  %v3797_v28 = vpop.f32.mrf.mxu1 }
 0xedd   :  { %v3798_v46 = vadd.f32 %v3797_v28, %v8478_v20 }
 0xede   :  { %7463 = vmatpush3.xpose.msk.msra.mxu1 %vm1158_vm2, %v3528_v13 }
 0xedf   :  { %7467 = vmatprep.subr.mxu1 %v7781_v19 }
 0xee1   :  { %7465 = vmatmul.mubr.msk.f32.vlgmr.msra.gmra.mxu1 %vm1158_vm2, %v3433_v43 }
 0xee2   :  { %7468 = vmatpush3.xpose.msk.msra.mxu1 %vm1158_vm2, %v3798_v46  ;;  %7469 = vmatprep.mubr.msk.f32.mxu1 %vm7782_vm1, %v7781_v19 }
 0xee3   :  { %v8517_v54 = vpop.f32.mrf.mxu0  ;;  %7477 = vmatprep.subr.mxu1 %v7781_v19 }
 0xee4   :  { %v8524_v51 = vpop.f32.mrf.mxu1 }
 0xee5   :  { %v3707_v55 = vpop.f32.mrf.mxu0 }
 0xee6   :  { %v3708_v50 = vadd.f32 %v3707_v55, %v8487_v26  ;;  %v3977_v56 = vpop.f32.mrf.mxu1 }
 0xee7   :  { %v3978_v3 = vadd.f32 %v3977_v56, %v8544_v2 }
 0xee8   :  { %7470 = vmatmul.mubr.msk.f32.vlgmr.msra.gmra.mxu1 %vm1158_vm2, %v3708_v50 }
 0xee9   :  { %7479 = vmatprep.mubr.msk.f32.mxu1 %vm7782_vm1, %v7781_v19 }
 0xeed   :  { %v8526_v52 = vpop.f32.mrf.mxu1  ;;  %v8530_v59 = vpop.f32.mrf.mxu0 }
 0xeef   :  { %v8532_v60 = vpop.f32.mrf.mxu1  ;;  %v3887_v36 = vpop.f32.mrf.mxu0 }
 0xef7   :  { %v8534_v11 = vpop.f32.mrf.mxu1 }
 0xef9   :  { %v4337_v62 = vpop.f32.mrf.mxu1  ;;  %v8538_v38 = vpop.f32.mrf.mxu0 }
 0xefa   :  { %v4338_v14 = vadd.f32 %v4337_v62, %v8536_v61 }
 0xefb   :  { %v4067_v63 = vpop.f32.mrf.mxu0 }
 0xefc   :  { %7478 = vmatpush3.xpose.msk.msra.mxu1 %vm1158_vm2, %v4338_v14  ;;  %v4068_v1 = vadd.f32 %v4067_v63, %v8528_v58 }
 0xefd   :  { %7487 = vmatprep.subr.mxu1 %v7781_v19 }
 0xefe   :  { %7473 = vmatpush3.xpose.msk.msra.mxu0 %vm1158_vm2, %v4068_v1 }
 0xeff   :  { %7482 = vmatprep.subr.mxu0 %v7781_v19 }
 0xf01   :  { %7475 = vmatmul.mubr.msk.f32.vlgmr.msra.gmra.mxu0 %vm1158_vm2, %v3978_v3 }
 0xf02   :  { %7484 = vmatprep.mubr.msk.f32.mxu0 %vm7782_vm1, %v7781_v19 }
 0xf05   :  { %v8552_v7 = vpop.f32.mrf.mxu0 }
 0xf07   :  { %v4247_v18 = vpop.f32.mrf.mxu0 }
 0xf08   :  { %v4248_v27 = vadd.f32 %v4247_v18, %v8554_v5 }
 0xf0a   :  { %7480 = vmatmul.mubr.msk.f32.vlgmr.msra.gmra.mxu1 %vm1158_vm2, %v4248_v27 }
 0xf0b   :  { %7489 = vmatprep.mubr.msk.f32.mxu1 %vm7782_vm1, %v7781_v19 }
 0xf0d   :  { %v8564_v41 = vpop.f32.mrf.mxu0 }
 0xf0f   :  { %v8566_v30 = vpop.f32.mrf.mxu0 }
 0xfa1   :  { %v4508_v15 = vpop.f32.mrf.mxu1 }
 0xfa2   :  { %v4740_v33 = vmul.f32 0.35355338, %v4508_v15 }
 0xfa3   :  { %v7466_v16 = vpop.f32.mrf.mxu1 }
 0xfa4   :  { %v4744_v44 = vadd.f32 %v7721_v23, %v4740_v33 }
 0xfa6   :  { %v4748_v28 = vsel %vm1158_vm2, %v4744_v44, -inf }
 0xfa8   :  { %v4584_v17 = vpop.f32.mrf.mxu1 }
 0xfa9   :  { %v4741_v22 = vmul.f32 0.35355338, %v4584_v17 }
 0xfaa   :  { %v7471_v35 = vpop.f32.mrf.mxu1 }
 0xfab   :  { %v4745_v24 = vadd.f32 %v7721_v23, %v4741_v22 }
 0xfad   :  { %v4751_v25 = vsel %vm1158_vm2, %v4745_v24, -inf }
 0xfae   :  { %4752 = vmax.xlane.f32.xlu0 %v4751_v25 }
 0xfc1   :  { %v4660_v10 = vpop.f32.mrf.mxu0 }
 0xfc2   :  { %v4742_v47 = vmul.f32 0.35355338, %v4660_v10 }
 0xfc3   :  { %v7476_v31 = vpop.f32.mrf.mxu0 }
 0xfc4   :  { %3818 = vrot.lane.b32.xlu0 %v8389_v12, %s7775_s26  ;;  %v4746_v53 = vadd.f32 %v7721_v23, %v4742_v47 }
 0xfc6   :  { %v4754_v46 = vsel %vm1158_vm2, %v4746_v53, -inf }
 0xfca   :  { %v4736_v21 = vpop.f32.mrf.mxu1 }
 0xfcb   :  { %v4743_v13 = vmul.f32 0.35355338, %v4736_v21 }
 0xfcc   :  { %v7481_v8 = vpop.f32.mrf.mxu1 }
 0xfcd   :  { %v4747_v43 = vadd.f32 %v7721_v23, %v4743_v13 }
 0xfcf   :  { %v4757_v55 = vsel %vm1158_vm2, %v4747_v43, -inf }
0x1037   :  { %v4753_v9 = vpop.xlane.xlu0 %4752 }
0x1038   :  { %v4761_v40 = vsub.f32 %v4745_v24, %v4753_v9 }
0x103a   :  { %v4766_v34 = vmul.f32 1.442695, %v4761_v40  ;;  %v8592_v40 = vld [vmem:[#allocation2 + $0xe0] sm:$0xff] }
0x103b   :  { %v8570_v42 = vpop.permute.xlu0 %3818 }
0x103c   :  { %7677 = vpow2.f32 %v4766_v34  ;;  %v3888_v32 = vadd.f32 %v3887_v36, %v8570_v42 }
0x103e   :  { %7488 = vmatpush3.msra.mxu1 %v3888_v32 }
0x103f   :  { %7497 = vmatprep.subr.mxu1 %v7781_v19 }
0x1049   :  { %v7678_v37 = vpop.eup %7677 }
0x104a   :  { %v4775_v48 = vsel %vm1158_vm2, %v7678_v37, 0.0 }
0x104b   :  { %4776 = vadd.xlane.f32.xlu1 %v4775_v48 }
0x104f   :  { %4749 = vmax.xlane.f32.xlu1 %v4748_v28 }
0x1053   :  { %4755 = vmax.xlane.f32.xlu1 %v4754_v46  ;;  %v3438_v46 = vadd.f32 %v8498_v45, %v8389_v12  ;;  %v8642_v45 = vld [vmem:[#allocation2 + $0xe8] sm:$0xff] }
0x1057   :  { %4758 = vmax.xlane.f32.xlu1 %v4757_v55 }
0x10d4   :  { %v4777_v50 = vpop.xlane.xlu1 %4776 }
0x10d5   :  { %7679 = vrcp.f32 %v4777_v50 }
0x10d8   :  { %v4750_v56 = vpop.xlane.xlu1 %4749 }
0x10d9   :  { %v4760_v36 = vsub.f32 %v4744_v44, %v4750_v56  ;;  %v3803_v56 = vadd.f32 %v8506_v49, %v8478_v20  ;;  %v4253_v49 = vadd.f32 %v8552_v7, %v8554_v5 }
0x10db   :  { %v4764_v62 = vmul.f32 1.442695, %v4760_v36 }
0x10dc   :  { %v4756_v14 = vpop.xlane.xlu1 %4755 }
0x10dd   :  { %7681 = vpow2.f32 %v4764_v62  ;;  %v4762_v63 = vsub.f32 %v4746_v53, %v4756_v14  ;;  %v3713_v14 = vadd.f32 %v8517_v54, %v8487_v26  ;;  %v3893_v26 = vadd.f32 %v8530_v59, %v8570_v42 }
0x10df   :  { %v4768_v1 = vmul.f32 1.442695, %v4762_v63  ;;  %v4343_v63 = vadd.f32 %v8534_v11, %v8536_v61 }
0x10e0   :  { %v4759_v22 = vpop.xlane.xlu1 %4758 }
0x10e1   :  { %7683 = vpow2.f32 %v4768_v1  ;;  %v4763_v35 = vsub.f32 %v4747_v43, %v4759_v22  ;;  %v3533_v43 = vadd.f32 %v8504_v39, %v8474_v0  ;;  %v3983_v0 = vadd.f32 %v8524_v51, %v8544_v2  ;;  %v8649_v2 = vld [vmem:[#allocation2 + $0xf0] sm:$0xff] }
0x10e2   :  { %v7680_v3 = vpop.eup %7679 }
0x10e3   :  { %v4787_v18 = vmul.f32 %v7680_v3, %v7678_v37  ;;  %v4770_v23 = vmul.f32 1.442695, %v4763_v35 }
0x10e5   :  { %7490 = vmatmul.mubr.msk.f32.vlgmr.msra.gmra.mxu1 %vm1158_vm2, %v4787_v18  ;;  %7685 = vpow2.f32 %v4770_v23  ;;  %v7722_v23 = vld [vmem:[%s8758_s1 + $0x1] ss:$0 sm:$0xff]  ;;  %s7783_s1 = smov [#allocation5]  }
0x10e6   :  { %7499 = vmatprep.mubr.msk.f32.mxu1 %vm7782_vm1, %v7781_v19  ;;  %s6624_s13 = sshll.u32 %s7783_s1, 4  ;;  %s6625_s13 = int_to_ptr.vmem [resolvable:$true] %s6624_s13 }
0x10e7   :  { %s7743_s14 = scalar_lea.vmem %s6625_s13, 256  ;;  %p7748_p6 = scmp.lt.s32.totalorder %s6625_s13, %s6625_s13 }
0x10e8   :  { %p7744_p5 = scmp.ne.s32.totalorder %s6625_s13, %s7743_s14  ;;  %p7749_p7 = scmp.lt.s32.totalorder %s7743_s14, %s7743_s14 }
0x10ea   :  { %v7682_v27 = vpop.eup %7681  ;;  %p7750_p8 = por %p7749_p7, %p7748_p6 }
0x10eb   :  { %v4772_v15 = vsel %vm1158_vm2, %v7682_v27, 0.0 }
0x10ec   :  { %4773 = vadd.xlane.f32.xlu1 %v4772_v15  ;;  %p7751_p9 = pnand %p7750_p8, %p7744_p5 }
0x10ee   :  { %v7684_v16 = vpop.eup %7683 }
0x10ef   :  { %v4778_v17 = vsel %vm1158_vm2, %v7684_v16, 0.0 }
0x10f0   :  { %4779 = vadd.xlane.f32.xlu0 %v4778_v17 }
0x10f2   :  { %v7686_v24 = vpop.eup %7685 }
0x10f3   :  { %v4781_v25 = vsel %vm1158_vm2, %v7686_v24, 0.0 }
0x10fd   :  { %3548 = vrot.lane.b32.xlu1 %v8389_v12, %s7770_s23 }
0x1101   :  { %4088 = vrot.lane.b32.xlu1 %v8389_v12, %s7774_s25 }
0x1125   :  { %4782 = vadd.xlane.f32.xlu1 %v4781_v25 }
0x1136   :  { %4358 = vrot.lane.b32.xlu1 %v8389_v12, %s7778_s29  ;;  %v8634_v12 = vld [vmem:[#allocation2 + $0xd8] sm:$0xff] }
0x1137   :  { %7498 = vmatpush3.msra.mxu1 %v8634_v12 }
0x1138   :  { %7507 = vmatprep.subr.mxu1 %v7781_v19 }
0x1175   :  { %v4774_v10 = vpop.xlane.xlu1 %4773 }
0x1176   :  { %7687 = vrcp.f32 %v4774_v10 }
0x1179   :  { %v3549_v31 = vpop.permute.xlu1 %3548  ;;  %v4780_v34 = vpop.xlane.xlu0 %4779 }
0x117a   :  { %v3618_v21 = vadd.f32 %v8502_v29, %v3549_v31  ;;  %7689 = vrcp.f32 %v4780_v34  ;;  %v3623_v39 = vadd.f32 %v8500_v57, %v3549_v31 }
0x117c   :  { %7483 = vmatpush3.msra.mxu0 %v3618_v21 }
0x117d   :  { %7492 = vmatprep.subr.mxu0 %v7781_v19  ;;  %v8599_v32 = vpop.permute.xlu1 %4088 }
0x117e   :  { %v4158_v33 = vadd.f32 %v8532_v60, %v8599_v32 }
0x1183   :  { %v7688_v8 = vpop.eup %7687 }
0x1184   :  { %v4785_v9 = vmul.f32 %v7688_v8, %v7682_v27 }
0x1186   :  { %7485 = vmatmul.mubr.msk.f32.vlgmr.msra.gmra.mxu0 %vm1158_vm2, %v4785_v9 }
0x1187   :  { %7493 = vmatpush3.msra.mxu0 %v8592_v40  ;;  %7494 = vmatprep.mubr.msk.f32.mxu0 %vm7782_vm1, %v7781_v19  ;;  %v7690_v29 = vpop.eup %7689 }
0x1188   :  { %7502 = vmatprep.subr.mxu0 %v7781_v19  ;;  %v4789_v47 = vmul.f32 %v7690_v29, %v7684_v16 }
0x11a5   :  { %v4935_v37 = vpop.f32.mrf.mxu1 }
0x11a6   :  { %7495 = vmatmul.mubr.msk.f32.vlgmr.msra.gmra.mxu0 %vm1158_vm2, %v4935_v37 }
0x11a7   :  { %7503 = vmatpush3.msra.mxu0 %v4158_v33  ;;  %v7491_v44 = vpop.f32.mrf.mxu1  ;;  %7504 = vmatprep.mubr.msk.f32.mxu0 %vm7782_vm1, %v7781_v19 }
0x11a8   :  { %7512 = vmatprep.subr.mxu0 %v7781_v19 }
0x11aa   :  { %7505 = vmatmul.mubr.msk.f32.vlgmr.msra.gmra.mxu0 %vm1158_vm2, %v4789_v47 }
0x11ab   :  { %7514 = vmatprep.mubr.msk.f32.mxu0 %vm7782_vm1, %v7781_v19 }
0x11ae   :  { %v4783_v48 = vpop.xlane.xlu1 %4782 }
0x11af   :  { %7691 = vrcp.f32 %v4783_v48 }
0x11b2   :  { %v8610_v53 = vpop.permute.xlu1 %4358 }
0x11b3   :  { %v4428_v60 = vadd.f32 %v8566_v30, %v8610_v53  ;;  %v4073_v30 = vadd.f32 %v8538_v38, %v8528_v58 }
0x11b5   :  { %7513 = vmatpush3.msra.mxu0 %v4428_v60 }
0x11b6   :  { %7522 = vmatprep.subr.mxu0 %v7781_v19 }
0x11bc   :  { %v7692_v13 = vpop.eup %7691 }
0x11bd   :  { %v4791_v28 = vmul.f32 %v7692_v13, %v7686_v24 }
0x11bf   :  { %7515 = vmatmul.mubr.msk.f32.vlgmr.msra.gmra.mxu0 %vm1158_vm2, %v4791_v28 }
0x11c0   :  { %7523 = vmatpush3.xpose.msk.msra.mxu0 %vm1158_vm2, %v3533_v43  ;;  %7524 = vmatprep.mubr.msk.f32.mxu0 %vm7782_vm1, %v7781_v19 }
0x11c1   :  { %7532 = vmatprep.subr.mxu0 %v7781_v19 }
0x11c3   :  { %7525 = vmatmul.mubr.msk.f32.vlgmr.msra.gmra.mxu0 %vm1158_vm2, %v3438_v46 }
0x11c4   :  { %7533 = vmatpush3.xpose.msk.msra.mxu0 %vm1158_vm2, %v4073_v30  ;;  %7534 = vmatprep.mubr.msk.f32.mxu0 %vm7782_vm1, %v7781_v19 }
0x11c5   :  { %7542 = vmatprep.subr.mxu0 %v7781_v19 }
0x11c7   :  { %7535 = vmatmul.mubr.msk.f32.vlgmr.msra.gmra.mxu0 %vm1158_vm2, %v3983_v0 }
0x11c8   :  { %7543 = vmatpush3.msra.mxu0 %v3623_v39  ;;  %7544 = vmatprep.mubr.msk.f32.mxu0 %vm7782_vm1, %v7781_v19 }
0x11c9   :  { %7552 = vmatprep.subr.mxu0 %v7781_v19 }
0x1246   :  { %v4861_v51 = vpop.f32.mrf.mxu0 }
0x1247   :  { %7500 = vmatmul.mubr.msk.f32.vlgmr.msra.gmra.mxu1 %vm1158_vm2, %v4861_v51 }
0x1248   :  { %v7486_v57 = vpop.f32.mrf.mxu0  ;;  %7508 = vmatpush3.msra.mxu1 %v8642_v45  ;;  %7509 = vmatprep.mubr.msk.f32.mxu1 %vm7782_vm1, %v7781_v19 }
0x1249   :  { %7517 = vmatprep.subr.mxu1 %v7781_v19 }
0x1266   :  { %v5009_v58 = vpop.f32.mrf.mxu0 }
0x1268   :  { %v7496_v38 = vpop.f32.mrf.mxu0 }
0x126a   :  { %v5155_v55 = vpop.f32.mrf.mxu0 }
0x126b   :  { %7510 = vmatmul.mubr.msk.f32.vlgmr.msra.gmra.mxu1 %vm1158_vm2, %v5155_v55 }
0x126c   :  { %v7506_v50 = vpop.f32.mrf.mxu0  ;;  %7518 = vmatpush3.msra.mxu1 %v8649_v2  ;;  %7519 = vmatprep.mubr.msk.f32.mxu1 %vm7782_vm1, %v7781_v19 }
0x126d   :  { %7527 = vmatprep.subr.mxu1 %v7781_v19 }
0x127f   :  { %v5303_v36 = vpop.f32.mrf.mxu0 }
0x1280   :  { %7520 = vmatmul.mubr.msk.f32.vlgmr.msra.gmra.mxu1 %vm1158_vm2, %v5303_v36 }
0x1281   :  { %7528 = vmatpush3.xpose.msk.msra.mxu1 %vm1158_vm2, %v3803_v56  ;;  %v7516_v62 = vpop.f32.mrf.mxu0  ;;  %7529 = vmatprep.mubr.msk.f32.mxu1 %vm7782_vm1, %v7781_v19  ;;  %v8689_v56 = vld [vmem:[#allocation2 + $0xb] ss:$0 sm:$0xff] }
0x1282   :  { %7537 = vmatprep.subr.mxu1 %v7781_v19 }
0x1283   :  { %v5454_v1 = vpop.f32.mrf.mxu0 }
0x1284   :  { %7530 = vmatmul.mubr.msk.f32.vlgmr.msra.gmra.mxu1 %vm1158_vm2, %v3713_v14  ;;  %v5686_v42 = vmul.f32 0.35355338, %v5454_v1 }
0x1285   :  { %7538 = vmatpush3.xpose.msk.msra.mxu1 %vm1158_vm2, %v4343_v63  ;;  %v7526_v20 = vpop.f32.mrf.mxu0  ;;  %7539 = vmatprep.mubr.msk.f32.mxu1 %vm7782_vm1, %v7781_v19 }
0x1286   :  { %7547 = vmatprep.subr.mxu1 %v7781_v19  ;;  %v5690_v10 = vadd.f32 %v7722_v23, %v5686_v42 }
0x1287   :  { %v5606_v54 = vpop.f32.mrf.mxu0 }
0x1288   :  { %7540 = vmatmul.mubr.msk.f32.vlgmr.msra.gmra.mxu1 %vm1158_vm2, %v4253_v49  ;;  %v5688_v31 = vmul.f32 0.35355338, %v5606_v54  ;;  %v5694_v29 = vsel %vm1158_vm2, %v5690_v10, -inf }
0x1289   :  { %7548 = vmatpush3.msra.mxu1 %v3893_v26  ;;  %v7536_v11 = vpop.f32.mrf.mxu0  ;;  %7549 = vmatprep.mubr.msk.f32.mxu1 %vm7782_vm1, %v7781_v19 }
0x128a   :  { %7557 = vmatprep.subr.mxu1 %v7781_v19  ;;  %v5692_v9 = vadd.f32 %v7722_v23, %v5688_v31 }
0x128c   :  { %v5700_v37 = vsel %vm1158_vm2, %v5692_v9, -inf }
0x1307   :  { %v5082_v61 = vpop.f32.mrf.mxu1 }
0x1308   :  { %v5083_v18 = vadd.f32 %v5082_v61, %v5009_v58 }
0x1309   :  { %v7501_v3 = vpop.f32.mrf.mxu1 }
0x132b   :  { %v5229_v27 = vpop.f32.mrf.mxu1 }
0x132c   :  { %v5233_v7 = vadd.f32 %v5229_v27, %v5083_v18 }
0x132d   :  { %v7511_v5 = vpop.f32.mrf.mxu1 }
0x1340   :  { %v5377_v15 = vpop.f32.mrf.mxu1 }
0x1341   :  { %v5381_v16 = vadd.f32 %v5377_v15, %v5233_v7  ;;  %v4163_v7 = vadd.f32 %v8526_v52, %v8599_v32 }
0x1342   :  { %v7521_v17 = vpop.f32.mrf.mxu1 }
0x1343   :  { %v6329_v62 = vadd.f32 %v8689_v56, %v5381_v16  ;;  %v4433_v17 = vadd.f32 %v8564_v41, %v8610_v53 }
0x1344   :  { %v5530_v59 = vpop.f32.mrf.mxu1 }
0x1345   :  { %v5687_v22 = vmul.f32 0.35355338, %v5530_v59  ;;  %v8695_v20 = vadd.f32 %v6329_v62, %v8433_v4  ;;  %v6373_v62 = vld [vmem:[#allocation2 + $0xf8] sm:$0xff] }
0x1346   :  { %v7531_v35 = vpop.f32.mrf.mxu1 }
0x1347   :  { %v5691_v24 = vadd.f32 %v7722_v23, %v5687_v22  ;;  %v6335_v49 = vsel %vm33_vm0, %v8695_v20, 0.0 }
0x1348   :  { %v5682_v25 = vpop.f32.mrf.mxu1 }
0x1349   :  { %v5697_v21 = vsel %vm1158_vm2, %v5691_v24, -inf  ;;  %v5689_v34 = vmul.f32 0.35355338, %v5682_v25 }
0x134a   :  { %5698 = vmax.xlane.f32.xlu0 %v5697_v21  ;;  %v7541_v8 = vpop.f32.mrf.mxu1 }
0x134b   :  { %v5693_v33 = vadd.f32 %v7722_v23, %v5689_v34 }
0x134d   :  { %v5703_v44 = vsel %vm1158_vm2, %v5693_v33, -inf }
0x134e   :  { %5695 = vmax.xlane.f32.xlu0 %v5694_v29 }
0x1352   :  { %5701 = vmax.xlane.f32.xlu0 %v5700_v37 }
0x1356   :  { %5704 = vmax.xlane.f32.xlu0 %v5703_v44 }
0x13d3   :  { %v5699_v47 = vpop.xlane.xlu0 %5698 }
0x13d4   :  { %v5707_v48 = vsub.f32 %v5691_v24, %v5699_v47 }
0x13d6   :  { %v5712_v60 = vmul.f32 1.442695, %v5707_v48 }
0x13d7   :  { %v5696_v13 = vpop.xlane.xlu0 %5695 }
0x13d8   :  { %7693 = vpow2.f32 %v5712_v60  ;;  %v5706_v28 = vsub.f32 %v5690_v10, %v5696_v13 }
0x13da   :  { %v5710_v43 = vmul.f32 1.442695, %v5706_v28 }
0x13db   :  { %v5702_v46 = vpop.xlane.xlu0 %5701 }
0x13dc   :  { %7695 = vpow2.f32 %v5710_v43  ;;  %v5708_v30 = vsub.f32 %v5692_v9, %v5702_v46 }
0x13de   :  { %v5714_v0 = vmul.f32 1.442695, %v5708_v30 }
0x13df   :  { %v5705_v39 = vpop.xlane.xlu0 %5704 }
0x13e0   :  { %7697 = vpow2.f32 %v5714_v0  ;;  %v5709_v51 = vsub.f32 %v5693_v33, %v5705_v39 }
0x13e2   :  { %v5716_v57 = vmul.f32 1.442695, %v5709_v51 }
0x13e4   :  { %7699 = vpow2.f32 %v5716_v57 }
0x13e5   :  { %v7694_v58 = vpop.eup %7693 }
0x13e6   :  { %v5721_v38 = vsel %vm1158_vm2, %v7694_v58, 0.0 }
0x13e7   :  { %5722 = vadd.xlane.f32.xlu1 %v5721_v38 }
0x13e9   :  { %v7696_v55 = vpop.eup %7695 }
0x13ea   :  { %v5718_v50 = vsel %vm1158_vm2, %v7696_v55, 0.0 }
0x13eb   :  { %5719 = vadd.xlane.f32.xlu0 %v5718_v50  ;;  %v6376_v50 = vld [vmem:[#allocation2 + $0x110] sm:$0xff] }
0x13ed   :  { %v7698_v36 = vpop.eup %7697 }
0x13ee   :  { %v5724_v14 = vsel %vm1158_vm2, %v7698_v36, 0.0 }
0x13ef   :  { %5725 = vadd.xlane.f32.xlu0 %v5724_v14 }
0x13f1   :  { %v7700_v63 = vpop.eup %7699 }
0x13f2   :  { %v5727_v1 = vsel %vm1158_vm2, %v7700_v63, 0.0 }
0x13f3   :  { %5728 = vadd.xlane.f32.xlu0 %v5727_v1 }
0x13f7   :  { %6336 = vadd.xlane.f32.xlu0 %v6335_v49 }
0x1470   :  { %v5723_v26 = vpop.xlane.xlu1 %5722 }
0x1471   :  { %7701 = vrcp.f32 %v5723_v26 }
0x1474   :  { %v5720_v54 = vpop.xlane.xlu0 %5719 }
0x1475   :  { %7703 = vrcp.f32 %v5720_v54 }
0x1478   :  { %v5726_v18 = vpop.xlane.xlu0 %5725 }
0x1479   :  { %7705 = vrcp.f32 %v5726_v18  ;;  %v6380_v18 = vld [vmem:[#allocation2 + $0x130] sm:$0xff] }
0x147c   :  { %v5729_v27 = vpop.xlane.xlu0 %5728 }
0x147d   :  { %7707 = vrcp.f32 %v5729_v27  ;;  %v6379_v27 = vld [vmem:[#allocation2 + $0x128] sm:$0xff] }
0x147e   :  { %v7702_v11 = vpop.eup %7701 }
0x147f   :  { %v5733_v61 = vmul.f32 %v7702_v11, %v7694_v58  ;;  %v6767_v58 = vld [vmem:[#allocation2 + $0xd] ss:$0 sm:$0xff]  ;;  %v6384_v11 = vld [vmem:[#allocation2 + $0x150] sm:$0xff] }
0x1480   :  { %v6337_v10 = vpop.xlane.xlu0 %6336 }
0x1481   :  { %7550 = vmatmul.mubr.msk.f32.vlgmr.msra.gmra.mxu1 %vm1158_vm2, %v5733_v61  ;;  %v6341_v8 = vmul.f32 0.03125, %v6337_v10  ;;  %v6383_v61 = vld [vmem:[#allocation2 + $0x148] sm:$0xff] }
0x1482   :  { %v7704_v3 = vpop.eup %7703  ;;  %7558 = vmatpush3.msra.mxu1 %v8634_v12  ;;  %7559 = vmatprep.mubr.msk.f32.mxu1 %vm7782_vm1, %v7781_v19 }
0x1483   :  { %v5731_v4 = vmul.f32 %v7704_v3, %v7696_v55  ;;  %7567 = vmatprep.subr.mxu1 %v7781_v19  ;;  %v6343_v37 = vsub.f32 %v8695_v20, %v6341_v8  ;;  %v6382_v3 = vld [vmem:[#allocation2 + $0x140] sm:$0xff] }
0x1485   :  { %7545 = vmatmul.mubr.msk.f32.vlgmr.msra.gmra.mxu0 %vm1158_vm2, %v5731_v4  ;;  %v6345_v47 = vmul.f32 %v6343_v37, %v6343_v37  ;;  %v6381_v4 = vld [vmem:[#allocation2 + $0x138] sm:$0xff] }
0x1486   :  { %7553 = vmatpush3.msra.mxu0 %v8592_v40  ;;  %7554 = vmatprep.mubr.msk.f32.mxu0 %vm7782_vm1, %v7781_v19  ;;  %v7706_v12 = vpop.eup %7705 }
0x1487   :  { %7562 = vmatprep.subr.mxu0 %v7781_v19  ;;  %v5735_v40 = vmul.f32 %v7706_v12, %v7698_v36  ;;  %v6347_v48 = vsel %vm33_vm0, %v6345_v47, 0.0  ;;  %v6374_v36 = vld [vmem:[#allocation2 + $0x100] sm:$0xff] }
0x1488   :  { %v6378_v12 = vld [vmem:[#allocation2 + $0x120] sm:$0xff] }
0x148a   :  { %v7708_v16 = vpop.eup %7707 }
0x148b   :  { %v5737_v32 = vmul.f32 %v7708_v16, %v7700_v63 }
0x1541   :  { %v5880_v5 = vpop.f32.mrf.mxu1 }
0x1542   :  { %7555 = vmatmul.mubr.msk.f32.vlgmr.msra.gmra.mxu0 %vm1158_vm2, %v5880_v5  ;;  %v6768_v5 = vld [vmem:[#allocation2 + $0xe] ss:$0 sm:$0xff] }
0x1543   :  { %7563 = vmatpush3.msra.mxu0 %v4163_v7  ;;  %v7551_v15 = vpop.f32.mrf.mxu1  ;;  %7564 = vmatprep.mubr.msk.f32.mxu0 %vm7782_vm1, %v7781_v19  ;;  %v6377_v7 = vld [vmem:[#allocation2 + $0x118] sm:$0xff] }
0x1544   :  { %7572 = vmatprep.subr.mxu0 %v7781_v19 }
0x1545   :  { %v5807_v59 = vpop.f32.mrf.mxu0 }
0x1546   :  { %7560 = vmatmul.mubr.msk.f32.vlgmr.msra.gmra.mxu1 %vm1158_vm2, %v5807_v59  ;;  %7565 = vmatmul.mubr.msk.f32.vlgmr.msra.gmra.mxu0 %vm1158_vm2, %v5735_v40 }
0x1547   :  { %7573 = vmatpush3.msra.mxu0 %v4433_v17  ;;  %v7546_v52 = vpop.f32.mrf.mxu0  ;;  %7574 = vmatprep.mubr.msk.f32.mxu0 %vm7782_vm1, %v7781_v19 }
0x1548   :  { %7568 = vmatpush3.msra.mxu1 %v8642_v45  ;;  %7569 = vmatprep.mubr.msk.f32.mxu1 %vm7782_vm1, %v7781_v19 }
0x1549   :  { %7577 = vmatprep.subr.mxu1 %v7781_v19  ;;  %7582 = vmatprep.subr.mxu0 %v6376_v50 }
0x154a   :  { %7575 = vmatmul.mubr.msk.f32.vlgmr.msra.gmra.mxu0 %vm1158_vm2, %v5737_v32 }
0x154b   :  { %7583 = vmatpush3.msra.mxu0 %v6376_v50 }
0x1602   :  { %v5953_v41 = vpop.f32.mrf.mxu0 }
0x1604   :  { %v7556_v53 = vpop.f32.mrf.mxu0 }
0x1606   :  { %v6026_v42 = vpop.f32.mrf.mxu1  ;;  %v6099_v22 = vpop.f32.mrf.mxu0 }
0x1607   :  { %v6027_v35 = vadd.f32 %v6026_v42, %v5953_v41  ;;  %7570 = vmatmul.mubr.msk.f32.vlgmr.msra.gmra.mxu1 %vm1158_vm2, %v6099_v22 }
0x1608   :  { %v7561_v23 = vpop.f32.mrf.mxu1  ;;  %v7566_v24 = vpop.f32.mrf.mxu0  ;;  %7578 = vmatpush3.msra.mxu1 %v8649_v2  ;;  %7579 = vmatprep.mubr.msk.f32.mxu1 %vm7782_vm1, %v7781_v19 }
0x1609   :  { %7593 = vmatprep.subr.mxu1 %v6384_v11 }
0x160a   :  { %v6246_v45 = vpop.f32.mrf.mxu0 }
0x160b   :  { %7580 = vmatmul.mubr.msk.f32.vlgmr.msra.gmra.mxu1 %vm1158_vm2, %v6246_v45 }
0x160c   :  { %v7576_v25 = vpop.f32.mrf.mxu0  ;;  %7594 = vmatpush3.msra.mxu1 %v6384_v11 }
0x160d   :  { %7595 = vmatprep.subr.mxu1 %v6383_v61 }
0x160e   :  { %7596 = vmatpush3.msra.mxu1 %v6383_v61 }
0x160f   :  { %7597 = vmatprep.subr.mxu1 %v6382_v3 }
0x1610   :  { %7598 = vmatpush3.msra.mxu1 %v6382_v3 }
0x1611   :  { %7599 = vmatprep.subr.mxu1 %v6381_v4 }
0x1612   :  { %7600 = vmatpush3.msra.mxu1 %v6381_v4 }
0x1613   :  { %7601 = vmatprep.subr.mxu1 %v6380_v18 }
0x1614   :  { %7602 = vmatpush3.msra.mxu1 %v6380_v18 }
0x1615   :  { %7603 = vmatprep.subr.mxu1 %v6379_v27 }
0x1616   :  { %7604 = vmatpush3.msra.mxu1 %v6379_v27 }
0x1617   :  { %7605 = vmatprep.subr.mxu1 %v6378_v12 }
0x1618   :  { %7606 = vmatpush3.msra.mxu1 %v6378_v12 }
0x1619   :  { %7607 = vmatprep.subr.mxu1 %v6377_v7 }
0x161a   :  { %7608 = vmatpush3.msra.mxu1 %v6377_v7 }
0x16c7   :  { %v6172_v31 = vpop.f32.mrf.mxu1 }
0x16c8   :  { %v6176_v9 = vadd.f32 %v6172_v31, %v6027_v35 }
0x16c9   :  { %v7571_v21 = vpop.f32.mrf.mxu1 }
0x16cb   :  { %v6319_v34 = vpop.f32.mrf.mxu1 }
0x16cc   :  { %v6323_v29 = vadd.f32 %v6319_v34, %v6176_v9 }
0x16cd   :  { %v7581_v33 = vpop.f32.mrf.mxu1 }
0x16ce   :  { %v6330_v44 = vadd.f32 %v8689_v56, %v6323_v29  ;;  %v6375_v56 = vld [vmem:[#allocation2 + $0x108] sm:$0xff] }
0x16cf   :  { %7584 = vmatprep.subr.mxu0 %v6375_v56  ;;  %v6771_v29 = vld [vmem:[#allocation2 + $0xf] ss:$0 sm:$0xff] }
0x16d0   :  { %v6332_v2 = vadd.f32 %v6330_v44, %v8435_v6  ;;  %v6766_v6 = vld [vmem:[#allocation2 + $0xc] ss:$0 sm:$0xff]  ;;  %7585 = vmatpush3.msra.mxu0 %v6375_v56 }
0x16d1   :  { %7586 = vmatprep.subr.mxu0 %v6374_v36 }
0x16d2   :  { %v6338_v19 = vsel %vm33_vm0, %v6332_v2, 0.0  ;;  %7587 = vmatpush3.msra.mxu0 %v6374_v36 }
0x16d3   :  { %6339 = vadd.xlane.f32.xlu0 %v6338_v19  ;;  %7588 = vmatprep.subr.mxu0 %v6373_v62 }
0x16d4   :  { %7589 = vmatpush3.msra.mxu0 %v6373_v62 }
0x16d7   :  { %6348 = vadd.xlane.f32.xlu0 %v6347_v48 }
0x175c   :  { %v6340_v60 = vpop.xlane.xlu0 %6339 }
0x175d   :  { %v6342_v13 = vmul.f32 0.03125, %v6340_v60 }
0x175f   :  { %v6344_v28 = vsub.f32 %v6332_v2, %v6342_v13 }
0x1760   :  { %v6349_v43 = vpop.xlane.xlu0 %6348 }
0x1761   :  { %v6353_v46 = vmul.f32 0.03125, %v6349_v43  ;;  %v6346_v30 = vmul.f32 %v6344_v28, %v6344_v28 }
0x1763   :  { %v6355_v0 = vadd.f32 1e-12, %v6353_v46  ;;  %v6350_v39 = vsel %vm33_vm0, %v6346_v30, 0.0 }
0x1764   :  { %6351 = vadd.xlane.f32.xlu1 %v6350_v39 }
0x1765   :  { %7709 = vrsqrt.f32 %v6355_v0 }
0x1772   :  { %v7710_v51 = vpop.eup %7709 }
0x1773   :  { %v6359_v57 = vmul.f32 %v7710_v51, %v6343_v37 }
0x1775   :  { %v6365_v38 = vmul.f32 %v6766_v6, %v6359_v57 }
0x1777   :  { %v8737_v55 = vadd.f32 %v6767_v58, %v6365_v38 }
0x1779   :  { %7590 = vmatprep.mubr.msk.f32.mxu0 %vm33_vm0, %v8737_v55 }
0x17ed   :  { %v6352_v14 = vpop.xlane.xlu1 %6351 }
0x17ee   :  { %v6354_v63 = vmul.f32 0.03125, %v6352_v14  ;;  %v6774_v14 = vld [vmem:[#allocation2 + $0x10] ss:$0 sm:$0xff] }
0x17f0   :  { %v6356_v1 = vadd.f32 1e-12, %v6354_v63 }
0x17f2   :  { %7711 = vrsqrt.f32 %v6356_v1 }
0x17ff   :  { %v7712_v20 = vpop.eup %7711 }
0x1800   :  { %v6360_v49 = vmul.f32 %v7712_v20, %v6344_v28  ;;  %v6775_v20 = vld [vmem:[#allocation2 + $0x11] ss:$0 sm:$0xff] }
0x1802   :  { %v6366_v26 = vmul.f32 %v6766_v6, %v6360_v49 }
0x1804   :  { %v6372_v54 = vadd.f32 %v6767_v58, %v6366_v26 }
0x1806   :  { %7591 = vmatmul.mubr.msk.f32.vlgmr.msra.gmra.mxu0 %vm33_vm0, %v6372_v54 }
0x18c6   :  { %v7592_v15 = vpop.f32.mrf.mxu0 }
0x18c7   :  { %v6468_v40 = vadd.f32 %v7592_v15, %v6768_v5 }
0x18c8   :  { %v6462_v16 = vpop.f32.mrf.mxu0 }
0x18c9   :  { %v6472_v17 = vmul.f32 %v6468_v40, %v6468_v40  ;;  %v6463_v59 = vadd.f32 %v6768_v5, %v6462_v16 }
0x18cb   :  { %v6474_v52 = vmul.f32 %v6472_v17, %v6468_v40  ;;  %v6471_v32 = vmul.f32 %v6463_v59, %v6463_v59 }
0x18cd   :  { %v6476_v41 = vmul.f32 0.044715, %v6474_v52  ;;  %v6473_v53 = vmul.f32 %v6471_v32, %v6463_v59 }
0x18cf   :  { %v6478_v42 = vadd.f32 %v6476_v41, %v6468_v40  ;;  %v6475_v22 = vmul.f32 0.044715, %v6473_v53 }
0x18d1   :  { %v6480_v35 = vmul.f32 0.7978846, %v6478_v42  ;;  %v6477_v23 = vadd.f32 %v6475_v22, %v6463_v59 }
0x18d3   :  { %7713 = vtanh.f32 %v6480_v35  ;;  %v6479_v24 = vmul.f32 0.7978846, %v6477_v23 }
0x18d5   :  { %7715 = vtanh.f32 %v6479_v24 }
0x18e0   :  { %v7714_v45 = vpop.eup %7713 }
0x18e1   :  { %v6484_v25 = vadd.f32 1.0, %v7714_v45 }
0x18e2   :  { %v7716_v10 = vpop.eup %7715 }
0x18e3   :  { %v6483_v31 = vadd.f32 1.0, %v7716_v10  ;;  %v6486_v21 = vmul.f32 0.5, %v6484_v25 }
0x18e5   :  { %v6485_v8 = vmul.f32 0.5, %v6483_v31  ;;  %v6488_v34 = vmul.f32 %v6486_v21, %v6468_v40 }
0x18e7   :  { %v6487_v9 = vmul.f32 %v6485_v8, %v6463_v59 }
0x18e9   :  { %7609 = vmatprep.mubr.msk.f32.mxu1 %vm3227_vm3, %v6487_v9 }
0x18ea   :  { %7610 = vmatmul.mubr.msk.f32.vlgmr.msra.gmra.mxu1 %vm3227_vm3, %v6488_v34 }
0x19aa   :  { %v7611_v33 = vpop.f32.mrf.mxu1 }
0x19ab   :  { %v6572_v37 = vadd.f32 %v7611_v33, %v6771_v29 }
0x19ac   :  { %v6566_v44 = vpop.f32.mrf.mxu1 }
0x19ad   :  { %v6576_v2 = vadd.f32 %v6572_v37, %v6372_v54  ;;  %v6567_v19 = vadd.f32 %v6771_v29, %v6566_v44 }
0x19af   :  { %v6575_v47 = vadd.f32 %v6567_v19, %v8737_v55  ;;  %v6582_v48 = vsel %vm33_vm0, %v6576_v2, 0.0 }
0x19b0   :  { %6583 = vadd.xlane.f32.xlu1 %v6582_v48 }
0x19b1   :  { %v6579_v60 = vsel %vm33_vm0, %v6575_v47, 0.0 }
0x19b2   :  { %6580 = vadd.xlane.f32.xlu0 %v6579_v60 }
0x1a39   :  { %v6584_v13 = vpop.xlane.xlu1 %6583 }
0x1a3a   :  { %v6586_v28 = vmul.f32 0.03125, %v6584_v13 }
0x1a3b   :  { %v6581_v43 = vpop.xlane.xlu0 %6580 }
0x1a3c   :  { %v6588_v46 = vsub.f32 %v6576_v2, %v6586_v28  ;;  %v6585_v30 = vmul.f32 0.03125, %v6581_v43 }
0x1a3e   :  { %v6587_v0 = vsub.f32 %v6575_v47, %v6585_v30  ;;  %v6590_v39 = vmul.f32 %v6588_v46, %v6588_v46 }
0x1a40   :  { %v6594_v51 = vsel %vm33_vm0, %v6590_v39, 0.0  ;;  %v6589_v6 = vmul.f32 %v6587_v0, %v6587_v0 }
0x1a41   :  { %6595 = vadd.xlane.f32.xlu1 %v6594_v51 }
0x1a42   :  { %v6591_v57 = vsel %vm33_vm0, %v6589_v6, 0.0 }
0x1a43   :  { %6592 = vadd.xlane.f32.xlu0 %v6591_v57 }
0x1aca   :  { %v6596_v58 = vpop.xlane.xlu1 %6595 }
0x1acb   :  { %v6598_v38 = vmul.f32 0.03125, %v6596_v58 }
0x1acc   :  { %v6593_v55 = vpop.xlane.xlu0 %6592 }
0x1acd   :  { %v6600_v50 = vadd.f32 1e-12, %v6598_v38  ;;  %v6597_v56 = vmul.f32 0.03125, %v6593_v55 }
0x1acf   :  { %7717 = vrsqrt.f32 %v6600_v50  ;;  %v6599_v36 = vadd.f32 1e-12, %v6597_v56 }
0x1ad1   :  { %7719 = vrsqrt.f32 %v6599_v36 }
0x1adc   :  { %v7718_v62 = vpop.eup %7717 }
0x1add   :  { %v6604_v63 = vmul.f32 %v7718_v62, %v6588_v46 }
0x1ade   :  { %v7720_v1 = vpop.eup %7719 }
0x1adf   :  { %v6603_v49 = vmul.f32 %v7720_v1, %v6587_v0  ;;  %v6610_v26 = vmul.f32 %v6774_v14, %v6604_v63 }
0x1ae1   :  { %v6609_v54 = vmul.f32 %v6774_v14, %v6603_v49  ;;  %v6616_v11 = vadd.f32 %v6775_v20, %v6610_v26 }
0x1ae3   :  { %v6615_v61 = vadd.f32 %v6775_v20, %v6609_v54  ;;  %6618 = vst.msk [vmem:[#allocation5 + $0x8] sm:$0xff] %vm33_vm0, %v6616_v11 }
0x1ae5   :  { %6617 = vst.msk [vmem:[#allocation5] sm:$0xff] %vm33_vm0, %v6615_v61 }
0x1ae6   :  { %7754 = shalt.err (!%p7751_p9)
}
0x1ae7   :  { %6630 = dma.vmem_to_hbm [thread:$0]  %s6625_s13, 256, %s8760_s3, [#allocation4], %s7768_s15, %s7768_s15, %s7769_s16  }
0x1ae8   :  { %7765 = dma.done.wait [#allocation4], 256  }
0x1ae9   :  { %7766 = vsyncadd [#allocation4], 4294967040 }
0x1aea   :  { %6634 = vsyncpa [#allocation3], 1 }
0x1aeb   :  { %6635 = vsyncpa [#allocation4], 1 }

</bundles_post_ra>
